<compile_context>
chip_gen: v7x
topology: tpu7x:2x2x1
jax: 0.10.0
libtpu: 0.0.40
codegen_flags: <defaults>
</compile_context>

<pallas_src>
import functools
import jax
import jax.numpy as jnp
from jax.experimental import pallas as pl
from jax.experimental.pallas import tpu as pltpu


def _round_up(x, m):
    return ((x + m - 1) // m) * m


def _m_parallel_splits():
    """2-way M split feeds both v7x TensorCores; single tile on v5e/v6e."""
    try:
        kind = jax.devices()[0].device_kind.lower()
    except Exception:
        return 1
    return 2 if "v7" in kind else 1


# ----------------------------------------------------------------------------
# Fused matmul + shift + activation Pallas kernel
# ----------------------------------------------------------------------------
def _make_fused_kernel(act: str):
    def kernel(x_ref, w_ref, shift_ref, o_ref):
        acc = jnp.dot(x_ref[...], w_ref[...],
                      preferred_element_type=jnp.float32)   # bf16 in, f32 acc
        y = acc + shift_ref[...]                             # f32 epilogue
        if act == "leaky":
            y = jnp.where(y > 0, y, 0.2 * y)   # module uses LeakyReLU(0.2)
        elif act == "relu":
            y = jnp.maximum(y, 0.0)
        elif act == "tanh":
            y = jnp.tanh(y)
        # act == "none": identity
        o_ref[...] = y.astype(o_ref.dtype)
    return kernel


def _choose_tm(M, n_splits):
    """Single full-M tile on 1-TC chips; >=2 parallel grid steps on v7x."""
    if n_splits <= 1 or M <= 256:
        return min(_round_up(M, 16), 4096)
    return min(2048, _round_up(-(-M // n_splits), 16))


def fused_matmul(patches, w2d, scale, shift, act, out_dtype=jnp.bfloat16):
    """patches: (M, K), w2d: (K, N), scale/shift: (N,) -> (M, N) out_dtype.

    Folds scale into the (bf16) weight at trace time.  Pads N to a multiple
    of 128 (lane-dense unmasked stores), K to a multiple of 16 (bf16 sublane
    packing), M to a multiple of the chosen row tile (multiple of 16).
    """
    M, K = patches.shape
    Kw, N = w2d.shape
    assert K == Kw
    Np = _round_up(N, 128)
    Kp = _round_up(K, 16)
    tm = _choose_tm(M, _m_parallel_splits())
    Mp = _round_up(M, tm)

    xp = jnp.pad(patches.astype(jnp.bfloat16), ((0, Mp - M), (0, Kp - K)))
    w_folded = (w2d.astype(jnp.float32)
                * scale.astype(jnp.float32)[None, :]).astype(jnp.bfloat16)
    wp = jnp.pad(w_folded, ((0, Kp - K), (0, Np - N)))
    bp = jnp.pad(shift.astype(jnp.float32).reshape(1, N),
                 ((0, 0), (0, Np - N)))

    out_isize = jnp.dtype(out_dtype).itemsize
    work = tm * Kp * 2 + Kp * Np * 2 + Np * 4 + tm * Np * out_isize
    vmem_limit = int(min(max(2 * work + (1 << 20), 4 << 20), 16 << 20))

    out = pl.pallas_call(
        _make_fused_kernel(act),
        out_shape=jax.ShapeDtypeStruct((Mp, Np), out_dtype),
        grid=(Mp // tm,),
        in_specs=[
            pl.BlockSpec((tm, Kp), lambda i: (i, 0)),
            pl.BlockSpec((Kp, Np), lambda i: (0, 0)),
            pl.BlockSpec((1, Np), lambda i: (0, 0)),
        ],
        out_specs=pl.BlockSpec((tm, Np), lambda i: (i, 0)),
        compiler_params=pltpu.CompilerParams(
            dimension_semantics=("parallel",),
            vmem_limit_bytes=vmem_limit),
    )(xp, wp, bp)
    return out[:M, :N]


# ----------------------------------------------------------------------------
# Plain-JAX glue: im2col, conv / conv-transpose wrappers
# ----------------------------------------------------------------------------
def im2col(x_nhwc, kh, kw, stride, pad):
    N, H, W, C = x_nhwc.shape
    xp = jnp.pad(x_nhwc, ((0, 0), (pad, pad), (pad, pad), (0, 0)))
    OH = (H + 2 * pad - kh) // stride + 1
    OW = (W + 2 * pad - kw) // stride + 1
    cols = []
    for i in range(kh):
        for j in range(kw):
            cols.append(xp[:, i:i + stride * OH:stride,
                           j:j + stride * OW:stride, :])
    # (N, OH, OW, kh*kw, C)  -- index order matches weight reshape below
    patches = jnp.stack(cols, axis=3)
    return patches.reshape(N * OH * OW, kh * kw * C), (N, OH, OW)


def conv2d_fused(x_nhwc, w_oihw, stride, pad, scale, shift, act,
                 out_dtype=jnp.bfloat16):
    """Regular conv, weight in PyTorch (OC, IC, KH, KW) layout."""
    OC, IC, KH, KW = w_oihw.shape
    patches, (N, OH, OW) = im2col(x_nhwc.astype(jnp.bfloat16), KH, KW, stride, pad)
    K = KH * KW * IC
    w2d = jnp.transpose(w_oihw, (2, 3, 1, 0)).reshape(K, OC)  # (KH*KW*IC, OC)
    out = fused_matmul(patches, w2d, scale, shift, act, out_dtype)
    return out.reshape(N, OH, OW, OC)


def conv_transpose2d_s1_fused(x_nhwc, wt_iokk, pad, scale, shift, act,
                              out_dtype=jnp.bfloat16):
    """ConvTranspose2d with stride=1: exact flipped-kernel regular conv."""
    IC, OC, KH, KW = wt_iokk.shape
    w_conv = jnp.transpose(jnp.flip(wt_iokk, axis=(2, 3)), (1, 0, 2, 3))
    return conv2d_fused(x_nhwc, w_conv, 1, KH - 1 - pad, scale, shift, act,
                        out_dtype)


def conv_transpose2d_1x1in_fused(x_nhwc, wt_iokk, scale, shift, act,
                                 out_dtype=jnp.bfloat16):
    """ConvTranspose2d(stride=1, pad=0) on a 1x1 spatial input:
    y[b, kh, kw, oc] = sum_ic x[b, ic] * w[ic, oc, kh, kw]  -> dense matmul."""
    N, IH, IW, IC = x_nhwc.shape
    assert IH == 1 and IW == 1
    _, OC, KH, KW = wt_iokk.shape
    w2d = jnp.transpose(wt_iokk, (0, 2, 3, 1)).reshape(IC, KH * KW * OC)
    sc = jnp.tile(scale, KH * KW)
    sh = jnp.tile(shift, KH * KW)
    out = fused_matmul(x_nhwc.reshape(N, IC).astype(jnp.bfloat16),
                       w2d, sc, sh, act, out_dtype)
    return out.reshape(N, KH, KW, OC)


def _subpixel_weight_k4s2p1(wt_iokk):
    """Build the phase-split weight (9*IC, 4*OC) for ConvTranspose2d(k=4,s=2,p=1).

    Output phase (r, s) of y is a 2x2-tap conv over the 1-padded input; all
    four phases share one 3x3 im2col of the input.  kh used at patch row dh:
      r=0: dh=0 -> kh=3, dh=1 -> kh=1 ; r=1: dh=1 -> kh=2, dh=2 -> kh=0.
    """
    IC, OC, KH, KW = wt_iokk.shape
    assert KH == 4 and KW == 4
    kmap = {0: {0: 3, 1: 1}, 1: {1: 2, 2: 0}}
    zero = jnp.zeros((IC, OC), wt_iokk.dtype)
    cols = []
    for r in (0, 1):
        for s in (0, 1):
            rows = []
            for dh in range(3):
                for dw in range(3):
                    if dh in kmap[r] and dw in kmap[s]:
                        rows.append(wt_iokk[:, :, kmap[r][dh], kmap[s][dw]])
                    else:
                        rows.append(zero)
            cols.append(jnp.concatenate(rows, axis=0))     # (9*IC, OC)
    return jnp.concatenate(cols, axis=1)                   # (9*IC, 4*OC)


def conv_transpose2d_s2_fused(x_nhwc, wt_iokk, scale, shift, act,
                              out_dtype=jnp.bfloat16):
    """ConvTranspose2d(k=4, stride=2, pad=1) via sub-pixel phase split."""
    N, IH, IW, IC = x_nhwc.shape
    _, OC, _, _ = wt_iokk.shape
    patches, _ = im2col(x_nhwc.astype(jnp.bfloat16), 3, 3, 1, 1)  # (N*IH*IW, 9*IC)
    w2d = _subpixel_weight_k4s2p1(wt_iokk)                 # (9*IC, 4*OC)
    sc = jnp.tile(scale, 4)
    sh = jnp.tile(shift, 4)
    out = fused_matmul(patches, w2d, sc, sh, act, out_dtype)   # (N*IH*IW, 4*OC)
    out = out.reshape(N, IH, IW, 2, 2, OC)                 # (n, m, iw, r, s, oc)
    out = jnp.transpose(out, (0, 1, 3, 2, 4, 5))           # (n, m, r, iw, s, oc)
    return out.reshape(N, 2 * IH, 2 * IW, OC)


def dilate_zeros(x_nhwc, s):
    if s == 1:
        return x_nhwc
    N, H, W, C = x_nhwc.shape
    out = jnp.zeros((N, (H - 1) * s + 1, (W - 1) * s + 1, C), x_nhwc.dtype)
    return out.at[:, ::s, ::s, :].set(x_nhwc)


def conv_transpose2d_general_fused(x_nhwc, wt_iokk, stride, pad, scale, shift,
                                   act, out_dtype=jnp.bfloat16):
    """Generic fallback (zero-dilation + flipped kernel). Not used on the
    hot path for this model, kept for arbitrary configs."""
    IC, OC, KH, KW = wt_iokk.shape
    w_conv = jnp.transpose(jnp.flip(wt_iokk, axis=(2, 3)), (1, 0, 2, 3))
    x_dil = dilate_zeros(x_nhwc, stride)
    return conv2d_fused(x_dil, w_conv, 1, KH - 1 - pad, scale, shift, act,
                        out_dtype)


# ----------------------------------------------------------------------------
# Deterministic parameter initialization (shapes from VAE.__init__, 32x32 branch)
# ----------------------------------------------------------------------------
def _conv_w(key, oc, ic, kh, kw):
    return 0.05 * jax.random.normal(key, (oc, ic, kh, kw), jnp.float32)


def _convt_w(key, ic, oc, kh, kw):
    return 0.05 * jax.random.normal(key, (ic, oc, kh, kw), jnp.float32)


def _bn_affine(key, c, eps=1e-5):
    k1, k2, k3 = jax.random.split(key, 3)
    gamma = 1.0 + 0.1 * jax.random.normal(k1, (c,), jnp.float32)
    beta = 0.1 * jax.random.normal(k2, (c,), jnp.float32)
    rmean = 0.05 * jax.random.normal(k3, (c,), jnp.float32)
    rvar = jnp.ones((c,), jnp.float32)
    scale = gamma / jnp.sqrt(rvar + eps)
    shift = beta - rmean * scale
    return scale, shift


def init_vae_params(key, in_c, h_dim, Qb, Pb):
    keys = jax.random.split(key, 32)
    ki = iter(keys)
    p = {}

    # qnet: conv(c->Qb,3,1,1) / conv(->2Qb,4,2,1) / conv(->4Qb,4,2,1) / conv(->8Qb,4,2,1)
    q_channels = [(in_c, Qb, 3, 1, 1), (Qb, 2 * Qb, 4, 2, 1),
                  (2 * Qb, 4 * Qb, 4, 2, 1), (4 * Qb, 8 * Qb, 4, 2, 1)]
    p["qnet"] = []
    for (ic, oc, k, s, pad) in q_channels:
        w = _conv_w(next(ki), oc, ic, k, k)
        scale, shift = _bn_affine(next(ki), oc)
        p["qnet"].append(dict(w=w, stride=s, pad=pad, scale=scale, shift=shift))

    p["mu_w"] = _conv_w(next(ki), h_dim, 8 * Qb, 4, 4)
    p["mu_b"] = 0.05 * jax.random.normal(next(ki), (h_dim,), jnp.float32)
    p["var_w"] = _conv_w(next(ki), h_dim, 8 * Qb, 4, 4)
    p["var_b"] = 0.05 * jax.random.normal(next(ki), (h_dim,), jnp.float32)

    # pnet: convT(h->8Pb,4,1,0) / (8Pb->8Pb,4,2,1) / (8Pb->4Pb,4,2,1) / (4Pb->2Pb,4,2,1)
    pt_channels = [(h_dim, 8 * Pb, 4, 1, 0), (8 * Pb, 8 * Pb, 4, 2, 1),
                   (8 * Pb, 4 * Pb, 4, 2, 1), (4 * Pb, 2 * Pb, 4, 2, 1)]
    p["pnet"] = []
    for (ic, oc, k, s, pad) in pt_channels:
        w = _convt_w(next(ki), ic, oc, k, k)
        scale, shift = _bn_affine(next(ki), oc)
        p["pnet"].append(dict(w=w, stride=s, pad=pad, scale=scale, shift=shift))

    # final convT(2Pb -> in_c, 3,1,1) with bias, then tanh
    p["pout_w"] = _convt_w(next(ki), 2 * Pb, in_c, 3, 3)
    p["pout_b"] = 0.05 * jax.random.normal(next(ki), (in_c,), jnp.float32)
    return p


# ----------------------------------------------------------------------------
# VAE forward (mode in {"inference", "sample"}), NCHW in / NCHW out
# ----------------------------------------------------------------------------
def vae_forward(params, x_nchw, mode):
    # -> NHWC, bf16 activations between layers (f32 accumulation in-kernel)
    x = jnp.transpose(x_nchw, (0, 2, 3, 1)).astype(jnp.bfloat16)

    if mode == "inference":
        out = x
        for layer in params["qnet"]:
            out = conv2d_fused(out, layer["w"], layer["stride"], layer["pad"],
                               layer["scale"], layer["shift"], act="leaky")
        # mu and log_var share patches -> one lane-dense matmul, split after.
        h_dim = params["mu_w"].shape[0]
        w_cat = jnp.concatenate([params["mu_w"], params["var_w"]], axis=0)
        b_cat = jnp.concatenate([params["mu_b"], params["var_b"]])
        ones = jnp.ones((2 * h_dim,), jnp.float32)
        mv = conv2d_fused(out, w_cat, 1, 0, ones, b_cat, act="none",
                          out_dtype=jnp.float32)
        mu = jnp.transpose(mv[..., :h_dim], (0, 3, 1, 2))       # back to NCHW
        log_var = jnp.transpose(mv[..., h_dim:], (0, 3, 1, 2))
        return mu, log_var

    elif mode == "sample":
        out = x
        for layer in params["pnet"]:
            w = layer["w"]
            if (layer["stride"] == 1 and layer["pad"] == 0
                    and out.shape[1] == 1 and out.shape[2] == 1):
                out = conv_transpose2d_1x1in_fused(
                    out, w, layer["scale"], layer["shift"], act="relu")
            elif layer["stride"] == 2 and layer["pad"] == 1 and w.shape[2] == 4:
                out = conv_transpose2d_s2_fused(
                    out, w, layer["scale"], layer["shift"], act="relu")
            elif layer["stride"] == 1:
                out = conv_transpose2d_s1_fused(
                    out, w, layer["pad"], layer["scale"], layer["shift"],
                    act="relu")
            else:
                out = conv_transpose2d_general_fused(
                    out, w, layer["stride"], layer["pad"], layer["scale"],
                    layer["shift"], act="relu")
        ones_o = jnp.ones((params["pout_w"].shape[1],), jnp.float32)
        v = conv_transpose2d_s1_fused(out, params["pout_w"], 1, ones_o,
                                      params["pout_b"], act="tanh",
                                      out_dtype=jnp.float32)
        return jnp.transpose(v, (0, 3, 1, 2))                   # back to NCHW

    else:
        raise NotImplementedError


# ----------------------------------------------------------------------------
if __name__ == "__main__":
    # v_shape = [b, c, 32, 32]  (32x32 branch of the module)
    B, C, H, W = 2, 4, 32, 32
    h_dim, Qbasec, Pbasec = 16, 8, 8

    key = jax.random.PRNGKey(0)
    kp, kv, kh = jax.random.split(key, 3)
    params = init_vae_params(kp, C, h_dim, Qbasec, Pbasec)

    v = jax.random.normal(kv, (B, C, H, W), jnp.float32)
    h = jax.random.normal(kh, (B, h_dim, 1, 1), jnp.float32)

    infer = jax.jit(functools.partial(vae_forward, params, mode="inference"))
    sample = jax.jit(functools.partial(vae_forward, params, mode="sample"))

    mu, log_var = infer(v)
    recon = sample(h)
    jax.block_until_ready((mu, log_var, recon))

    assert mu.shape == (B, h_dim, 1, 1), mu.shape
    assert log_var.shape == (B, h_dim, 1, 1), log_var.shape
    assert recon.shape == (B, C, H, W), recon.shape
    assert bool(jnp.all(jnp.abs(recon) <= 1.0))  # tanh output range
    assert mu.dtype == jnp.float32 and recon.dtype == jnp.float32

    # TODO(synk): BatchNorm implemented in inference mode (running stats);
    # training-mode batch statistics are not reproduced.
    print("KERNEL_OK")
</pallas_src>

<mosaic_0001>
module attributes {stable_mosaic.version = 11 : i64} {
  func.func @kernel(%arg0: i32, %arg1: memref<2048x48xbf16, #tpu.memory_space<vmem>>, %arg2: memref<48x128xbf16, #tpu.memory_space<vmem>>, %arg3: memref<1x128xf32, #tpu.memory_space<vmem>>, %arg4: memref<2048x128xbf16, #tpu.memory_space<vmem>>) attributes {dimension_semantics = [#tpu.dimension_semantics<parallel>], iteration_bounds = array<i64: 1>, scalar_prefetch = 0 : i64, scratch_operands = 0 : i64, tpu.core_type = #tpu.core_type<tc>, window_params = [{transform_indices = @transform_0, window_bounds = array<i64: 2048, 48>}, {pipeline_mode = #tpu.pipeline_mode<synchronous>, transform_indices = @transform_1, window_bounds = array<i64: 48, 128>}, {pipeline_mode = #tpu.pipeline_mode<synchronous>, transform_indices = @transform_2, window_bounds = array<i64: 1, 128>}, {transform_indices = @transform_3, window_bounds = array<i64: 2048, 128>}]} {
    %c0 = arith.constant 0 : index
    %c0_0 = arith.constant 0 : index
    %0 = vector.load %arg1[%c0, %c0_0] : memref<2048x48xbf16, #tpu.memory_space<vmem>>, vector<2048x48xbf16>
    %c0_1 = arith.constant 0 : index
    %c0_2 = arith.constant 0 : index
    %1 = vector.load %arg2[%c0_1, %c0_2] : memref<48x128xbf16, #tpu.memory_space<vmem>>, vector<48x128xbf16>
    %cst = arith.constant dense<0.000000e+00> : vector<2048x128xf32>
    %2 = tpu.matmul %0, %1, %cst {dimension_numbers = #tpu.dot_dimension_numbers<[1], [0], [0], [1], [0, 0, 1, 1], [], []>} : vector<2048x48xbf16>, vector<48x128xbf16>, vector<2048x128xf32> -> vector<2048x128xf32>
    %c0_3 = arith.constant 0 : index
    %c0_4 = arith.constant 0 : index
    %3 = vector.load %arg3[%c0_3, %c0_4] : memref<1x128xf32, #tpu.memory_space<vmem>>, vector<1x128xf32>
    %4 = vector.broadcast %3 : vector<1x128xf32> to vector<2048x128xf32>
    %5 = arith.addf %2, %4 : vector<2048x128xf32>
    %cst_5 = arith.constant 0.000000e+00 : f32
    %6 = vector.broadcast %cst_5 : f32 to vector<2048x128xf32>
    %7 = arith.cmpf ogt, %5, %6 : vector<2048x128xf32>
    %cst_6 = arith.constant 2.000000e-01 : f32
    %8 = vector.broadcast %cst_6 : f32 to vector<2048x128xf32>
    %9 = arith.mulf %8, %5 : vector<2048x128xf32>
    %10 = arith.select %7, %5, %9 : vector<2048x128xi1>, vector<2048x128xf32>
    %11 = arith.truncf %10 : vector<2048x128xf32> to vector<2048x128xbf16>
    %c0_7 = arith.constant 0 : index
    %c0_8 = arith.constant 0 : index
    %12 = vector.load %arg4[%c0_7, %c0_8] : memref<2048x128xbf16, #tpu.memory_space<vmem>>, vector<2048x128xbf16>
    tpu.vector_store %arg4[%c0_7, %c0_8], %11 {strides = array<i32>} : memref<2048x128xbf16, #tpu.memory_space<vmem>>, vector<2048x128xbf16>,
    return
  }
  func.func @transform_0(%arg0: i32) -> (i32, i32) {
    %c0_i32 = arith.constant 0 : i32
    %c0_i32_0 = arith.constant 0 : i32
    return %arg0, %c0_i32 : i32, i32
  }
  func.func @transform_1(%arg0: i32) -> (i32, i32) {
    %c0_i32 = arith.constant 0 : i32
    %c0_i32_0 = arith.constant 0 : i32
    %c0_i32_1 = arith.constant 0 : i32
    return %c0_i32, %c0_i32_0 : i32, i32
  }
  func.func @transform_2(%arg0: i32) -> (i32, i32) {
    %c0_i32 = arith.constant 0 : i32
    %c0_i32_0 = arith.constant 0 : i32
    %c0_i32_1 = arith.constant 0 : i32
    return %c0_i32, %c0_i32_0 : i32, i32
  }
  func.func @transform_3(%arg0: i32) -> (i32, i32) {
    %c0_i32 = arith.constant 0 : i32
    %c0_i32_0 = arith.constant 0 : i32
    return %arg0, %c0_i32 : i32, i32
  }
}

module attributes {stable_mosaic.version = 11 : i64} {
  func.func @kernel(%arg0: i32, %arg1: memref<512x128xbf16, #tpu.memory_space<vmem>>, %arg2: memref<128x128xbf16, #tpu.memory_space<vmem>>, %arg3: memref<1x128xf32, #tpu.memory_space<vmem>>, %arg4: memref<512x128xbf16, #tpu.memory_space<vmem>>) attributes {dimension_semantics = [#tpu.dimension_semantics<parallel>], iteration_bounds = array<i64: 1>, scalar_prefetch = 0 : i64, scratch_operands = 0 : i64, tpu.core_type = #tpu.core_type<tc>, window_params = [{transform_indices = @transform_0, window_bounds = array<i64: 512, 128>}, {pipeline_mode = #tpu.pipeline_mode<synchronous>, transform_indices = @transform_1, window_bounds = array<i64: 128, 128>}, {pipeline_mode = #tpu.pipeline_mode<synchronous>, transform_indices = @transform_2, window_bounds = array<i64: 1, 128>}, {transform_indices = @transform_3, window_bounds = array<i64: 512, 128>}]} {
    %c0 = arith.constant 0 : index
    %c0_0 = arith.constant 0 : index
    %0 = vector.load %arg1[%c0, %c0_0] : memref<512x128xbf16, #tpu.memory_space<vmem>>, vector<512x128xbf16>
    %c0_1 = arith.constant 0 : index
    %c0_2 = arith.constant 0 : index
    %1 = vector.load %arg2[%c0_1, %c0_2] : memref<128x128xbf16, #tpu.memory_space<vmem>>, vector<128x128xbf16>
    %cst = arith.constant dense<0.000000e+00> : vector<512x128xf32>
    %2 = tpu.matmul %0, %1, %cst {dimension_numbers = #tpu.dot_dimension_numbers<[1], [0], [0], [1], [0, 0, 1, 1], [], []>} : vector<512x128xbf16>, vector<128x128xbf16>, vector<512x128xf32> -> vector<512x128xf32>
    %c0_3 = arith.constant 0 : index
    %c0_4 = arith.constant 0 : index
    %3 = vector.load %arg3[%c0_3, %c0_4] : memref<1x128xf32, #tpu.memory_space<vmem>>, vector<1x128xf32>
    %4 = vector.broadcast %3 : vector<1x128xf32> to vector<512x128xf32>
    %5 = arith.addf %2, %4 : vector<512x128xf32>
    %cst_5 = arith.constant 0.000000e+00 : f32
    %6 = vector.broadcast %cst_5 : f32 to vector<512x128xf32>
    %7 = arith.cmpf ogt, %5, %6 : vector<512x128xf32>
    %cst_6 = arith.constant 2.000000e-01 : f32
    %8 = vector.broadcast %cst_6 : f32 to vector<512x128xf32>
    %9 = arith.mulf %8, %5 : vector<512x128xf32>
    %10 = arith.select %7, %5, %9 : vector<512x128xi1>, vector<512x128xf32>
    %11 = arith.truncf %10 : vector<512x128xf32> to vector<512x128xbf16>
    %c0_7 = arith.constant 0 : index
    %c0_8 = arith.constant 0 : index
    %12 = vector.load %arg4[%c0_7, %c0_8] : memref<512x128xbf16, #tpu.memory_space<vmem>>, vector<512x128xbf16>
    tpu.vector_store %arg4[%c0_7, %c0_8], %11 {strides = array<i32>} : memref<512x128xbf16, #tpu.memory_space<vmem>>, vector<512x128xbf16>,
    return
  }
  func.func @transform_0(%arg0: i32) -> (i32, i32) {
    %c0_i32 = arith.constant 0 : i32
    %c0_i32_0 = arith.constant 0 : i32
    return %arg0, %c0_i32 : i32, i32
  }
  func.func @transform_1(%arg0: i32) -> (i32, i32) {
    %c0_i32 = arith.constant 0 : i32
    %c0_i32_0 = arith.constant 0 : i32
    %c0_i32_1 = arith.constant 0 : i32
    return %c0_i32, %c0_i32_0 : i32, i32
  }
  func.func @transform_2(%arg0: i32) -> (i32, i32) {
    %c0_i32 = arith.constant 0 : i32
    %c0_i32_0 = arith.constant 0 : i32
    %c0_i32_1 = arith.constant 0 : i32
    return %c0_i32, %c0_i32_0 : i32, i32
  }
  func.func @transform_3(%arg0: i32) -> (i32, i32) {
    %c0_i32 = arith.constant 0 : i32
    %c0_i32_0 = arith.constant 0 : i32
    return %arg0, %c0_i32 : i32, i32
  }
}

module attributes {stable_mosaic.version = 11 : i64} {
  func.func @kernel(%arg0: i32, %arg1: memref<128x256xbf16, #tpu.memory_space<vmem>>, %arg2: memref<256x128xbf16, #tpu.memory_space<vmem>>, %arg3: memref<1x128xf32, #tpu.memory_space<vmem>>, %arg4: memref<128x128xbf16, #tpu.memory_space<vmem>>) attributes {dimension_semantics = [#tpu.dimension_semantics<parallel>], iteration_bounds = array<i64: 1>, scalar_prefetch = 0 : i64, scratch_operands = 0 : i64, tpu.core_type = #tpu.core_type<tc>, window_params = [{transform_indices = @transform_0, window_bounds = array<i64: 128, 256>}, {pipeline_mode = #tpu.pipeline_mode<synchronous>, transform_indices = @transform_1, window_bounds = array<i64: 256, 128>}, {pipeline_mode = #tpu.pipeline_mode<synchronous>, transform_indices = @transform_2, window_bounds = array<i64: 1, 128>}, {transform_indices = @transform_3, window_bounds = array<i64: 128, 128>}]} {
    %c0 = arith.constant 0 : index
    %c0_0 = arith.constant 0 : index
    %0 = vector.load %arg1[%c0, %c0_0] : memref<128x256xbf16, #tpu.memory_space<vmem>>, vector<128x256xbf16>
    %c0_1 = arith.constant 0 : index
    %c0_2 = arith.constant 0 : index
    %1 = vector.load %arg2[%c0_1, %c0_2] : memref<256x128xbf16, #tpu.memory_space<vmem>>, vector<256x128xbf16>
    %cst = arith.constant dense<0.000000e+00> : vector<128x128xf32>
    %2 = tpu.matmul %0, %1, %cst {dimension_numbers = #tpu.dot_dimension_numbers<[1], [0], [0], [1], [0, 0, 1, 1], [], []>} : vector<128x256xbf16>, vector<256x128xbf16>, vector<128x128xf32> -> vector<128x128xf32>
    %c0_3 = arith.constant 0 : index
    %c0_4 = arith.constant 0 : index
    %3 = vector.load %arg3[%c0_3, %c0_4] : memref<1x128xf32, #tpu.memory_space<vmem>>, vector<1x128xf32>
    %4 = vector.broadcast %3 : vector<1x128xf32> to vector<128x128xf32>
    %5 = arith.addf %2, %4 : vector<128x128xf32>
    %cst_5 = arith.constant 0.000000e+00 : f32
    %6 = vector.broadcast %cst_5 : f32 to vector<128x128xf32>
    %7 = arith.cmpf ogt, %5, %6 : vector<128x128xf32>
    %cst_6 = arith.constant 2.000000e-01 : f32
    %8 = vector.broadcast %cst_6 : f32 to vector<128x128xf32>
    %9 = arith.mulf %8, %5 : vector<128x128xf32>
    %10 = arith.select %7, %5, %9 : vector<128x128xi1>, vector<128x128xf32>
    %11 = arith.truncf %10 : vector<128x128xf32> to vector<128x128xbf16>
    %c0_7 = arith.constant 0 : index
    %c0_8 = arith.constant 0 : index
    %12 = vector.load %arg4[%c0_7, %c0_8] : memref<128x128xbf16, #tpu.memory_space<vmem>>, vector<128x128xbf16>
    tpu.vector_store %arg4[%c0_7, %c0_8], %11 {strides = array<i32>} : memref<128x128xbf16, #tpu.memory_space<vmem>>, vector<128x128xbf16>,
    return
  }
  func.func @transform_0(%arg0: i32) -> (i32, i32) {
    %c0_i32 = arith.constant 0 : i32
    %c0_i32_0 = arith.constant 0 : i32
    return %arg0, %c0_i32 : i32, i32
  }
  func.func @transform_1(%arg0: i32) -> (i32, i32) {
    %c0_i32 = arith.constant 0 : i32
    %c0_i32_0 = arith.constant 0 : i32
    %c0_i32_1 = arith.constant 0 : i32
    return %c0_i32, %c0_i32_0 : i32, i32
  }
  func.func @transform_2(%arg0: i32) -> (i32, i32) {
    %c0_i32 = arith.constant 0 : i32
    %c0_i32_0 = arith.constant 0 : i32
    %c0_i32_1 = arith.constant 0 : i32
    return %c0_i32, %c0_i32_0 : i32, i32
  }
  func.func @transform_3(%arg0: i32) -> (i32, i32) {
    %c0_i32 = arith.constant 0 : i32
    %c0_i32_0 = arith.constant 0 : i32
    return %arg0, %c0_i32 : i32, i32
  }
}

module attributes {stable_mosaic.version = 11 : i64} {
  func.func @kernel(%arg0: i32, %arg1: memref<32x512xbf16, #tpu.memory_space<vmem>>, %arg2: memref<512x128xbf16, #tpu.memory_space<vmem>>, %arg3: memref<1x128xf32, #tpu.memory_space<vmem>>, %arg4: memref<32x128xbf16, #tpu.memory_space<vmem>>) attributes {dimension_semantics = [#tpu.dimension_semantics<parallel>], iteration_bounds = array<i64: 1>, scalar_prefetch = 0 : i64, scratch_operands = 0 : i64, tpu.core_type = #tpu.core_type<tc>, window_params = [{transform_indices = @transform_0, window_bounds = array<i64: 32, 512>}, {pipeline_mode = #tpu.pipeline_mode<synchronous>, transform_indices = @transform_1, window_bounds = array<i64: 512, 128>}, {pipeline_mode = #tpu.pipeline_mode<synchronous>, transform_indices = @transform_2, window_bounds = array<i64: 1, 128>}, {transform_indices = @transform_3, window_bounds = array<i64: 32, 128>}]} {
    %c0 = arith.constant 0 : index
    %c0_0 = arith.constant 0 : index
    %0 = vector.load %arg1[%c0, %c0_0] : memref<32x512xbf16, #tpu.memory_space<vmem>>, vector<32x512xbf16>
    %c0_1 = arith.constant 0 : index
    %c0_2 = arith.constant 0 : index
    %1 = vector.load %arg2[%c0_1, %c0_2] : memref<512x128xbf16, #tpu.memory_space<vmem>>, vector<512x128xbf16>
    %cst = arith.constant dense<0.000000e+00> : vector<32x128xf32>
    %2 = tpu.matmul %0, %1, %cst {dimension_numbers = #tpu.dot_dimension_numbers<[1], [0], [0], [1], [0, 0, 1, 1], [], []>} : vector<32x512xbf16>, vector<512x128xbf16>, vector<32x128xf32> -> vector<32x128xf32>
    %c0_3 = arith.constant 0 : index
    %c0_4 = arith.constant 0 : index
    %3 = vector.load %arg3[%c0_3, %c0_4] : memref<1x128xf32, #tpu.memory_space<vmem>>, vector<1x128xf32>
    %4 = vector.broadcast %3 : vector<1x128xf32> to vector<32x128xf32>
    %5 = arith.addf %2, %4 : vector<32x128xf32>
    %cst_5 = arith.constant 0.000000e+00 : f32
    %6 = vector.broadcast %cst_5 : f32 to vector<32x128xf32>
    %7 = arith.cmpf ogt, %5, %6 : vector<32x128xf32>
    %cst_6 = arith.constant 2.000000e-01 : f32
    %8 = vector.broadcast %cst_6 : f32 to vector<32x128xf32>
    %9 = arith.mulf %8, %5 : vector<32x128xf32>
    %10 = arith.select %7, %5, %9 : vector<32x128xi1>, vector<32x128xf32>
    %11 = arith.truncf %10 : vector<32x128xf32> to vector<32x128xbf16>
    %c0_7 = arith.constant 0 : index
    %c0_8 = arith.constant 0 : index
    %12 = vector.load %arg4[%c0_7, %c0_8] : memref<32x128xbf16, #tpu.memory_space<vmem>>, vector<32x128xbf16>
    tpu.vector_store %arg4[%c0_7, %c0_8], %11 {strides = array<i32>} : memref<32x128xbf16, #tpu.memory_space<vmem>>, vector<32x128xbf16>,
    return
  }
  func.func @transform_0(%arg0: i32) -> (i32, i32) {
    %c0_i32 = arith.constant 0 : i32
    %c0_i32_0 = arith.constant 0 : i32
    return %arg0, %c0_i32 : i32, i32
  }
  func.func @transform_1(%arg0: i32) -> (i32, i32) {
    %c0_i32 = arith.constant 0 : i32
    %c0_i32_0 = arith.constant 0 : i32
    %c0_i32_1 = arith.constant 0 : i32
    return %c0_i32, %c0_i32_0 : i32, i32
  }
  func.func @transform_2(%arg0: i32) -> (i32, i32) {
    %c0_i32 = arith.constant 0 : i32
    %c0_i32_0 = arith.constant 0 : i32
    %c0_i32_1 = arith.constant 0 : i32
    return %c0_i32, %c0_i32_0 : i32, i32
  }
  func.func @transform_3(%arg0: i32) -> (i32, i32) {
    %c0_i32 = arith.constant 0 : i32
    %c0_i32_0 = arith.constant 0 : i32
    return %arg0, %c0_i32 : i32, i32
  }
}

module attributes {stable_mosaic.version = 11 : i64} {
  func.func @kernel(%arg0: i32, %arg1: memref<16x1024xbf16, #tpu.memory_space<vmem>>, %arg2: memref<1024x128xbf16, #tpu.memory_space<vmem>>, %arg3: memref<1x128xf32, #tpu.memory_space<vmem>>, %arg4: memref<16x128xf32, #tpu.memory_space<vmem>>) attributes {dimension_semantics = [#tpu.dimension_semantics<parallel>], iteration_bounds = array<i64: 1>, scalar_prefetch = 0 : i64, scratch_operands = 0 : i64, tpu.core_type = #tpu.core_type<tc>, window_params = [{transform_indices = @transform_0, window_bounds = array<i64: 16, 1024>}, {pipeline_mode = #tpu.pipeline_mode<synchronous>, transform_indices = @transform_1, window_bounds = array<i64: 1024, 128>}, {pipeline_mode = #tpu.pipeline_mode<synchronous>, transform_indices = @transform_2, window_bounds = array<i64: 1, 128>}, {transform_indices = @transform_3, window_bounds = array<i64: 16, 128>}]} {
    %c0 = arith.constant 0 : index
    %c0_0 = arith.constant 0 : index
    %0 = vector.load %arg1[%c0, %c0_0] : memref<16x1024xbf16, #tpu.memory_space<vmem>>, vector<16x1024xbf16>
    %c0_1 = arith.constant 0 : index
    %c0_2 = arith.constant 0 : index
    %1 = vector.load %arg2[%c0_1, %c0_2] : memref<1024x128xbf16, #tpu.memory_space<vmem>>, vector<1024x128xbf16>
    %cst = arith.constant dense<0.000000e+00> : vector<16x128xf32>
    %2 = tpu.matmul %0, %1, %cst {dimension_numbers = #tpu.dot_dimension_numbers<[1], [0], [0], [1], [0, 0, 1, 1], [], []>} : vector<16x1024xbf16>, vector<1024x128xbf16>, vector<16x128xf32> -> vector<16x128xf32>
    %c0_3 = arith.constant 0 : index
    %c0_4 = arith.constant 0 : index
    %3 = vector.load %arg3[%c0_3, %c0_4] : memref<1x128xf32, #tpu.memory_space<vmem>>, vector<1x128xf32>
    %4 = vector.broadcast %3 : vector<1x128xf32> to vector<16x128xf32>
    %5 = arith.addf %2, %4 : vector<16x128xf32>
    %c0_5 = arith.constant 0 : index
    %c0_6 = arith.constant 0 : index
    %6 = vector.load %arg4[%c0_5, %c0_6] : memref<16x128xf32, #tpu.memory_space<vmem>>, vector<16x128xf32>
    tpu.vector_store %arg4[%c0_5, %c0_6], %5 {strides = array<i32>} : memref<16x128xf32, #tpu.memory_space<vmem>>, vector<16x128xf32>,
    return
  }
  func.func @transform_0(%arg0: i32) -> (i32, i32) {
    %c0_i32 = arith.constant 0 : i32
    %c0_i32_0 = arith.constant 0 : i32
    return %arg0, %c0_i32 : i32, i32
  }
  func.func @transform_1(%arg0: i32) -> (i32, i32) {
    %c0_i32 = arith.constant 0 : i32
    %c0_i32_0 = arith.constant 0 : i32
    %c0_i32_1 = arith.constant 0 : i32
    return %c0_i32, %c0_i32_0 : i32, i32
  }
  func.func @transform_2(%arg0: i32) -> (i32, i32) {
    %c0_i32 = arith.constant 0 : i32
    %c0_i32_0 = arith.constant 0 : i32
    %c0_i32_1 = arith.constant 0 : i32
    return %c0_i32, %c0_i32_0 : i32, i32
  }
  func.func @transform_3(%arg0: i32) -> (i32, i32) {
    %c0_i32 = arith.constant 0 : i32
    %c0_i32_0 = arith.constant 0 : i32
    return %arg0, %c0_i32 : i32, i32
  }
}

</mosaic_0001>

<bundles_post_ra>
// kernel: vae_forward.5
= control target key start
LH: loop header
LB: loop body
LE: loop exit
PB: predicated region body
PF: predicated region fallthrough
CT: control target
= control target key end

     0   :  { %vm942_vm0 = vcmask 392192   ;;  %s8235_s1 = inlined_call_operand.vmem [shape: bf16[48,128], index: 1, kind: input, shape index: {}]   ;;  %s8236_s0 = inlined_call_operand.vmem [shape: bf16[2048,48], index: 0, kind: input, shape index: {}]   ;;  %s8237_s2 = inlined_call_operand.vmem [shape: f32[1,128], index: 2, kind: input, shape index: {}]   ;;  %s8238_s3 = inlined_call_operand.vmem [shape: bf16[2048,128], index: 3, kind: output, shape index: {}]  }
   0x1   :  { %v6374_v0 = vld [vmem:[%s8235_s1] sm:$0xff]   ;;  %v6375_v1 = vld [vmem:[%s8235_s1 + $0x8] sm:$0xff]   ;;  %v6376_v2 = vld [vmem:[%s8235_s1 + $0x10] sm:$0xff]  }
   0x2   :  { %6106 = vmatprep.subr.bf16.mxu0 %v6374_v0  ;;  %6368 = vmatprep.subr.bf16.mxu1 %v6374_v0  ;;  %v6377_v3 = vld [vmem:[%s8236_s0] sm:$0xff]   ;;  %v6379_v5 = vld [vmem:[%s8236_s0 + $0x8] sm:$0xff]   ;;  %v6381_v7 = vld [vmem:[%s8236_s0 + $0x10] sm:$0xff]  }
   0x3   :  { %6107 = vmatpush3.bf16.msra.mxu0 %v6374_v0  ;;  %6371 = vmatpush3.bf16.msra.mxu1 %v6374_v0  ;;  %v6378_v4 = vld [vmem:[%s8236_s0 + $0x200] sm:$0xff]   ;;  %v6380_v6 = vld [vmem:[%s8236_s0 + $0x208] sm:$0xff]   ;;  %v6382_v8 = vld [vmem:[%s8236_s0 + $0x210] sm:$0xff]  }
   0x4   :  { %6108 = vmatprep.subr.bf16.mxu0 %v6375_v1  ;;  %6369 = vmatprep.subr.bf16.mxu1 %v6375_v1  ;;  %v6383_v9 = vld [vmem:[%s8236_s0 + $0x18] sm:$0xff]   ;;  %v6385_v11 = vld [vmem:[%s8236_s0 + $0x20] sm:$0xff]   ;;  %v6387_v13 = vld [vmem:[%s8236_s0 + $0x28] sm:$0xff]  }
   0x5   :  { %6112 = vmatprep.mubr.msk.bf16.mxu0 %vm942_vm0, %v6377_v3  ;;  %6240 = vmatprep.mubr.msk.bf16.mxu1 %vm942_vm0, %v6378_v4  ;;  %v6384_v10 = vld [vmem:[%s8236_s0 + $0x218] sm:$0xff]   ;;  %v6386_v12 = vld [vmem:[%s8236_s0 + $0x220] sm:$0xff]   ;;  %v6388_v14 = vld [vmem:[%s8236_s0 + $0x228] sm:$0xff]  }
   0x6   :  { %v6389_v15 = vld [vmem:[%s8236_s0 + $0x30] sm:$0xff]   ;;  %v6391_v17 = vld [vmem:[%s8236_s0 + $0x38] sm:$0xff]   ;;  %v6393_v19 = vld [vmem:[%s8236_s0 + $0x40] sm:$0xff]  }
   0x7   :  { %6109 = vmatpush3.bf16.msra.mxu0 %v6375_v1  ;;  %6372 = vmatpush3.bf16.msra.mxu1 %v6375_v1  ;;  %v6390_v16 = vld [vmem:[%s8236_s0 + $0x230] sm:$0xff]   ;;  %v6392_v18 = vld [vmem:[%s8236_s0 + $0x238] sm:$0xff]   ;;  %v6394_v20 = vld [vmem:[%s8236_s0 + $0x240] sm:$0xff]  }
   0x8   :  { %6110 = vmatprep.subr.bf16.mxu0 %v6376_v2  ;;  %6370 = vmatprep.subr.bf16.mxu1 %v6376_v2  ;;  %v6395_v21 = vld [vmem:[%s8236_s0 + $0x48] sm:$0xff]   ;;  %v6397_v23 = vld [vmem:[%s8236_s0 + $0x50] sm:$0xff]   ;;  %v6399_v25 = vld [vmem:[%s8236_s0 + $0x58] sm:$0xff]  }
   0x9   :  { %v6396_v22 = vld [vmem:[%s8236_s0 + $0x248] sm:$0xff]   ;;  %v6398_v24 = vld [vmem:[%s8236_s0 + $0x250] sm:$0xff]   ;;  %v6400_v26 = vld [vmem:[%s8236_s0 + $0x258] sm:$0xff]  }
   0xa   :  { %v6401_v27 = vld [vmem:[%s8236_s0 + $0x60] sm:$0xff]   ;;  %v6403_v29 = vld [vmem:[%s8236_s0 + $0x68] sm:$0xff]   ;;  %v6405_v31 = vld [vmem:[%s8236_s0 + $0x70] sm:$0xff]  }
   0xb   :  { %6111 = vmatpush3.bf16.msra.mxu0 %v6376_v2  ;;  %6373 = vmatpush3.bf16.msra.mxu1 %v6376_v2  ;;  %v6402_v28 = vld [vmem:[%s8236_s0 + $0x260] sm:$0xff]   ;;  %v6404_v30 = vld [vmem:[%s8236_s0 + $0x268] sm:$0xff]   ;;  %v6406_v32 = vld [vmem:[%s8236_s0 + $0x270] sm:$0xff]  }
   0xc   :  { %v6407_v33 = vld [vmem:[%s8236_s0 + $0x78] sm:$0xff]   ;;  %v6409_v35 = vld [vmem:[%s8236_s0 + $0x80] sm:$0xff]   ;;  %v6411_v37 = vld [vmem:[%s8236_s0 + $0x88] sm:$0xff]  }
   0xd   :  { %v6408_v34 = vld [vmem:[%s8236_s0 + $0x278] sm:$0xff]   ;;  %v6410_v36 = vld [vmem:[%s8236_s0 + $0x280] sm:$0xff]   ;;  %v6412_v38 = vld [vmem:[%s8236_s0 + $0x288] sm:$0xff]  }
   0xe   :  { %6113 = vmatmul.mubr.msk.bf16.vlgmr.msra.gmra.mrb[0].mxu0 %vm942_vm0, %v6379_v5  ;;  %6241 = vmatmul.mubr.msk.bf16.vlgmr.msra.gmra.mrb[0].mxu1 %vm942_vm0, %v6380_v6  ;;  %v6413_v39 = vld [vmem:[%s8236_s0 + $0x90] sm:$0xff]   ;;  %v6415_v41 = vld [vmem:[%s8236_s0 + $0x98] sm:$0xff]   ;;  %v6417_v43 = vld [vmem:[%s8236_s0 + $0xa0] sm:$0xff]  }
   0xf   :  { %6116 = vmatprep.mubr.msk.bf16.mxu0 %vm942_vm0, %v6381_v7  ;;  %6244 = vmatprep.mubr.msk.bf16.mxu1 %vm942_vm0, %v6382_v8  ;;  %v6414_v40 = vld [vmem:[%s8236_s0 + $0x290] sm:$0xff]   ;;  %v6416_v42 = vld [vmem:[%s8236_s0 + $0x298] sm:$0xff]   ;;  %v6418_v44 = vld [vmem:[%s8236_s0 + $0x2a0] sm:$0xff]  }
  0x10   :  { %v6419_v45 = vld [vmem:[%s8236_s0 + $0xa8] sm:$0xff]   ;;  %v6421_v47 = vld [vmem:[%s8236_s0 + $0xb0] sm:$0xff]   ;;  %v6423_v49 = vld [vmem:[%s8236_s0 + $0xb8] sm:$0xff]  }
  0x11   :  { %v6420_v46 = vld [vmem:[%s8236_s0 + $0x2a8] sm:$0xff]   ;;  %v6422_v48 = vld [vmem:[%s8236_s0 + $0x2b0] sm:$0xff]   ;;  %v6424_v50 = vld [vmem:[%s8236_s0 + $0x2b8] sm:$0xff]  }
  0x12   :  { %v6425_v51 = vld [vmem:[%s8236_s0 + $0xc0] sm:$0xff]   ;;  %v6427_v53 = vld [vmem:[%s8236_s0 + $0xc8] sm:$0xff]   ;;  %v6429_v55 = vld [vmem:[%s8236_s0 + $0xd0] sm:$0xff]  }
  0x13   :  { %v6426_v52 = vld [vmem:[%s8236_s0 + $0x2c0] sm:$0xff]   ;;  %v6428_v54 = vld [vmem:[%s8236_s0 + $0x2c8] sm:$0xff]   ;;  %v6430_v56 = vld [vmem:[%s8236_s0 + $0x2d0] sm:$0xff]  }
  0x14   :  { %v6431_v57 = vld [vmem:[%s8236_s0 + $0xd8] sm:$0xff]   ;;  %v6433_v59 = vld [vmem:[%s8236_s0 + $0xe0] sm:$0xff]   ;;  %v6435_v61 = vld [vmem:[%s8236_s0 + $0xe8] sm:$0xff]  }
  0x15   :  { %v6432_v58 = vld [vmem:[%s8236_s0 + $0x2d8] sm:$0xff]   ;;  %v6434_v60 = vld [vmem:[%s8236_s0 + $0x2e0] sm:$0xff]   ;;  %v6436_v62 = vld [vmem:[%s8236_s0 + $0x2e8] sm:$0xff]  }
  0x16   :  { %6117 = vmatmul.mubr.msk.bf16.gmra.mrb[4].mxu0 %vm942_vm0, %v6383_v9  ;;  %6245 = vmatmul.mubr.msk.bf16.gmra.mrb[4].mxu1 %vm942_vm0, %v6384_v10  ;;  %v6437_v63 = vld [vmem:[%s8236_s0 + $0xf0] sm:$0xff]   ;;  %v6439_v1 = vld [vmem:[%s8236_s0 + $0xf8] sm:$0xff]   ;;  %v6441_v3 = vld [vmem:[%s8236_s0 + $0x100] sm:$0xff]  }
  0x17   :  { %6120 = vmatprep.mubr.msk.bf16.mxu0 %vm942_vm0, %v6385_v11  ;;  %6248 = vmatprep.mubr.msk.bf16.mxu1 %vm942_vm0, %v6386_v12  ;;  %v6438_v0 = vld [vmem:[%s8236_s0 + $0x2f0] sm:$0xff]   ;;  %v6440_v2 = vld [vmem:[%s8236_s0 + $0x2f8] sm:$0xff]   ;;  %v6442_v4 = vld [vmem:[%s8236_s0 + $0x300] sm:$0xff]  }
  0x18   :  { %v6443_v5 = vld [vmem:[%s8236_s0 + $0x108] sm:$0xff]   ;;  %v6445_v7 = vld [vmem:[%s8236_s0 + $0x110] sm:$0xff]   ;;  %v6447_v9 = vld [vmem:[%s8236_s0 + $0x118] sm:$0xff]  }
  0x19   :  { %v6444_v6 = vld [vmem:[%s8236_s0 + $0x308] sm:$0xff]   ;;  %v6446_v8 = vld [vmem:[%s8236_s0 + $0x310] sm:$0xff]   ;;  %v6448_v10 = vld [vmem:[%s8236_s0 + $0x318] sm:$0xff]  }
  0x1a   :  { %v6449_v11 = vld [vmem:[%s8236_s0 + $0x120] sm:$0xff]  }
  0x1b   :  { %v6450_v12 = vld [vmem:[%s8236_s0 + $0x320] sm:$0xff]  }
  0x1e   :  { %6121 = vmatmul.mubr.msk.bf16.gmra.mrb[8].mxu0 %vm942_vm0, %v6387_v13  ;;  %6249 = vmatmul.mubr.msk.bf16.gmra.mrb[8].mxu1 %vm942_vm0, %v6388_v14  ;;  %v6451_v13 = vld [vmem:[%s8236_s0 + $0x128] sm:$0xff]  }
  0x1f   :  { %6124 = vmatprep.mubr.msk.bf16.mxu0 %vm942_vm0, %v6389_v15  ;;  %6252 = vmatprep.mubr.msk.bf16.mxu1 %vm942_vm0, %v6390_v16  ;;  %v6452_v14 = vld [vmem:[%s8236_s0 + $0x328] sm:$0xff]   ;;  %v6453_v15 = vld [vmem:[%s8236_s0 + $0x130] sm:$0xff]  }
  0x20   :  { %v6454_v16 = vld [vmem:[%s8236_s0 + $0x330] sm:$0xff]  }
  0x26   :  { %6125 = vmatmul.mubr.msk.bf16.gmra.mrb[12].mxu0 %vm942_vm0, %v6391_v17  ;;  %6253 = vmatmul.mubr.msk.bf16.gmra.mrb[12].mxu1 %vm942_vm0, %v6392_v18  ;;  %v6455_v17 = vld [vmem:[%s8236_s0 + $0x138] sm:$0xff]  }
  0x27   :  { %6128 = vmatprep.mubr.msk.bf16.mxu0 %vm942_vm0, %v6393_v19  ;;  %6256 = vmatprep.mubr.msk.bf16.mxu1 %vm942_vm0, %v6394_v20  ;;  %v6456_v18 = vld [vmem:[%s8236_s0 + $0x338] sm:$0xff]   ;;  %v6457_v19 = vld [vmem:[%s8236_s0 + $0x140] sm:$0xff]  }
  0x28   :  { %v6458_v20 = vld [vmem:[%s8236_s0 + $0x340] sm:$0xff]  }
  0x2e   :  { %6129 = vmatmul.mubr.msk.bf16.gmra.mrb[16].mxu0 %vm942_vm0, %v6395_v21  ;;  %6257 = vmatmul.mubr.msk.bf16.gmra.mrb[16].mxu1 %vm942_vm0, %v6396_v22  ;;  %v6459_v21 = vld [vmem:[%s8236_s0 + $0x148] sm:$0xff]  }
  0x2f   :  { %6132 = vmatprep.mubr.msk.bf16.mxu0 %vm942_vm0, %v6397_v23  ;;  %6260 = vmatprep.mubr.msk.bf16.mxu1 %vm942_vm0, %v6398_v24  ;;  %v6460_v22 = vld [vmem:[%s8236_s0 + $0x348] sm:$0xff]   ;;  %v6461_v23 = vld [vmem:[%s8236_s0 + $0x150] sm:$0xff]  }
  0x30   :  { %v6462_v24 = vld [vmem:[%s8236_s0 + $0x350] sm:$0xff]  }
  0x36   :  { %6133 = vmatmul.mubr.msk.bf16.gmra.mrb[20].mxu0 %vm942_vm0, %v6399_v25  ;;  %6261 = vmatmul.mubr.msk.bf16.gmra.mrb[20].mxu1 %vm942_vm0, %v6400_v26  ;;  %v6463_v25 = vld [vmem:[%s8236_s0 + $0x158] sm:$0xff]  }
  0x37   :  { %6136 = vmatprep.mubr.msk.bf16.mxu0 %vm942_vm0, %v6401_v27  ;;  %6264 = vmatprep.mubr.msk.bf16.mxu1 %vm942_vm0, %v6402_v28  ;;  %v6464_v26 = vld [vmem:[%s8236_s0 + $0x358] sm:$0xff]   ;;  %v6465_v27 = vld [vmem:[%s8236_s0 + $0x160] sm:$0xff]  }
  0x38   :  { %v6466_v28 = vld [vmem:[%s8236_s0 + $0x360] sm:$0xff]  }
  0x3e   :  { %6137 = vmatmul.mubr.msk.bf16.gmra.mrb[24].mxu0 %vm942_vm0, %v6403_v29  ;;  %6265 = vmatmul.mubr.msk.bf16.gmra.mrb[24].mxu1 %vm942_vm0, %v6404_v30  ;;  %v6467_v29 = vld [vmem:[%s8236_s0 + $0x168] sm:$0xff]  }
  0x3f   :  { %6140 = vmatprep.mubr.msk.bf16.mxu0 %vm942_vm0, %v6405_v31  ;;  %6268 = vmatprep.mubr.msk.bf16.mxu1 %vm942_vm0, %v6406_v32  ;;  %v6468_v30 = vld [vmem:[%s8236_s0 + $0x368] sm:$0xff]   ;;  %v6469_v31 = vld [vmem:[%s8236_s0 + $0x170] sm:$0xff]  }
  0x40   :  { %v6470_v32 = vld [vmem:[%s8236_s0 + $0x370] sm:$0xff]  }
  0x46   :  { %6141 = vmatmul.mubr.msk.bf16.gmra.mrb[28].mxu0 %vm942_vm0, %v6407_v33  ;;  %6269 = vmatmul.mubr.msk.bf16.gmra.mrb[28].mxu1 %vm942_vm0, %v6408_v34  ;;  %v6471_v33 = vld [vmem:[%s8236_s0 + $0x178] sm:$0xff]  }
  0x47   :  { %6144 = vmatprep.mubr.msk.bf16.mxu0 %vm942_vm0, %v6409_v35  ;;  %6272 = vmatprep.mubr.msk.bf16.mxu1 %vm942_vm0, %v6410_v36  ;;  %v6472_v34 = vld [vmem:[%s8236_s0 + $0x378] sm:$0xff]   ;;  %v6473_v35 = vld [vmem:[%s8236_s0 + $0x180] sm:$0xff]  }
  0x48   :  { %v6474_v36 = vld [vmem:[%s8236_s0 + $0x380] sm:$0xff]  }
  0x4e   :  { %6145 = vmatmul.mubr.msk.bf16.gmra.mrb[32].mxu0 %vm942_vm0, %v6411_v37  ;;  %6273 = vmatmul.mubr.msk.bf16.gmra.mrb[32].mxu1 %vm942_vm0, %v6412_v38  ;;  %v6475_v37 = vld [vmem:[%s8236_s0 + $0x188] sm:$0xff]  }
  0x4f   :  { %6148 = vmatprep.mubr.msk.bf16.mxu0 %vm942_vm0, %v6413_v39  ;;  %6276 = vmatprep.mubr.msk.bf16.mxu1 %vm942_vm0, %v6414_v40  ;;  %v6476_v38 = vld [vmem:[%s8236_s0 + $0x388] sm:$0xff]   ;;  %v6477_v39 = vld [vmem:[%s8236_s0 + $0x190] sm:$0xff]  }
  0x50   :  { %v6478_v40 = vld [vmem:[%s8236_s0 + $0x390] sm:$0xff]  }
  0x56   :  { %6149 = vmatmul.mubr.msk.bf16.gmra.mrb[36].mxu0 %vm942_vm0, %v6415_v41  ;;  %6277 = vmatmul.mubr.msk.bf16.gmra.mrb[36].mxu1 %vm942_vm0, %v6416_v42  ;;  %v6479_v41 = vld [vmem:[%s8236_s0 + $0x198] sm:$0xff]  }
  0x57   :  { %6152 = vmatprep.mubr.msk.bf16.mxu0 %vm942_vm0, %v6417_v43  ;;  %6280 = vmatprep.mubr.msk.bf16.mxu1 %vm942_vm0, %v6418_v44  ;;  %v6480_v42 = vld [vmem:[%s8236_s0 + $0x398] sm:$0xff]   ;;  %v6481_v43 = vld [vmem:[%s8236_s0 + $0x1a0] sm:$0xff]  }
  0x58   :  { %v6482_v44 = vld [vmem:[%s8236_s0 + $0x3a0] sm:$0xff]  }
  0x5e   :  { %6153 = vmatmul.mubr.msk.bf16.gmra.mrb[40].mxu0 %vm942_vm0, %v6419_v45  ;;  %6281 = vmatmul.mubr.msk.bf16.gmra.mrb[40].mxu1 %vm942_vm0, %v6420_v46  ;;  %v6483_v45 = vld [vmem:[%s8236_s0 + $0x1a8] sm:$0xff]  }
  0x5f   :  { %6156 = vmatprep.mubr.msk.bf16.mxu0 %vm942_vm0, %v6421_v47  ;;  %6284 = vmatprep.mubr.msk.bf16.mxu1 %vm942_vm0, %v6422_v48  ;;  %v6484_v46 = vld [vmem:[%s8236_s0 + $0x3a8] sm:$0xff]   ;;  %v6485_v47 = vld [vmem:[%s8236_s0 + $0x1b0] sm:$0xff]  }
  0x60   :  { %v6486_v48 = vld [vmem:[%s8236_s0 + $0x3b0] sm:$0xff]  }
  0x66   :  { %6157 = vmatmul.mubr.msk.bf16.gmra.mrb[44].mxu0 %vm942_vm0, %v6423_v49  ;;  %6285 = vmatmul.mubr.msk.bf16.gmra.mrb[44].mxu1 %vm942_vm0, %v6424_v50  ;;  %v6977_v49 = vld [vmem:[%s8237_s2] ss:$0 sm:$0xff] }
  0x67   :  { %6160 = vmatprep.mubr.msk.bf16.mxu0 %vm942_vm0, %v6425_v51  ;;  %6288 = vmatprep.mubr.msk.bf16.mxu1 %vm942_vm0, %v6426_v52 }
  0x6e   :  { %6161 = vmatmul.mubr.msk.bf16.gmra.mrb[48].mxu0 %vm942_vm0, %v6427_v53  ;;  %6289 = vmatmul.mubr.msk.bf16.gmra.mrb[48].mxu1 %vm942_vm0, %v6428_v54 }
  0x6f   :  { %6164 = vmatprep.mubr.msk.bf16.mxu0 %vm942_vm0, %v6429_v55  ;;  %6292 = vmatprep.mubr.msk.bf16.mxu1 %vm942_vm0, %v6430_v56  ;;  %v6487_v56 = vld [vmem:[%s8236_s0 + $0x1b8] sm:$0xff]  }
  0x76   :  { %6165 = vmatmul.mubr.msk.bf16.gmra.mrb[52].mxu0 %vm942_vm0, %v6431_v57  ;;  %6293 = vmatmul.mubr.msk.bf16.gmra.mrb[52].mxu1 %vm942_vm0, %v6432_v58 }
  0x77   :  { %6168 = vmatprep.mubr.msk.bf16.mxu0 %vm942_vm0, %v6433_v59  ;;  %6296 = vmatprep.mubr.msk.bf16.mxu1 %vm942_vm0, %v6434_v60 }
  0x7e   :  { %6169 = vmatmul.mubr.msk.bf16.gmra.mrb[56].mxu0 %vm942_vm0, %v6435_v61  ;;  %6297 = vmatmul.mubr.msk.bf16.gmra.mrb[56].mxu1 %vm942_vm0, %v6436_v62  ;;  %v6488_v61 = vld [vmem:[%s8236_s0 + $0x3b8] sm:$0xff]   ;;  %v6489_v62 = vld [vmem:[%s8236_s0 + $0x1c0] sm:$0xff]  }
  0x7f   :  { %6172 = vmatprep.mubr.msk.bf16.mxu0 %vm942_vm0, %v6437_v63  ;;  %6300 = vmatprep.mubr.msk.bf16.mxu1 %vm942_vm0, %v6438_v0  ;;  %v6490_v63 = vld [vmem:[%s8236_s0 + $0x3c0] sm:$0xff]  }
  0x86   :  { %6173 = vmatmul.mubr.msk.bf16.gmra.mrb[60].mxu0 %vm942_vm0, %v6439_v1  ;;  %6301 = vmatmul.mubr.msk.bf16.gmra.mrb[60].mxu1 %vm942_vm0, %v6440_v2 }
  0x87   :  { %6176 = vmatprep.mubr.msk.bf16.mxu0 %vm942_vm0, %v6441_v3  ;;  %6304 = vmatprep.mubr.msk.bf16.mxu1 %vm942_vm0, %v6442_v4 }
  0x8e   :  { %6177 = vmatmul.mubr.msk.bf16.gmra.mrb[64].mxu0 %vm942_vm0, %v6443_v5  ;;  %6305 = vmatmul.mubr.msk.bf16.gmra.mrb[64].mxu1 %vm942_vm0, %v6444_v6 }
  0x8f   :  { %6180 = vmatprep.mubr.msk.bf16.mxu0 %vm942_vm0, %v6445_v7  ;;  %6308 = vmatprep.mubr.msk.bf16.mxu1 %vm942_vm0, %v6446_v8 }
  0x96   :  { %6181 = vmatmul.mubr.msk.bf16.gmra.mrb[68].mxu0 %vm942_vm0, %v6447_v9  ;;  %6309 = vmatmul.mubr.msk.bf16.gmra.mrb[68].mxu1 %vm942_vm0, %v6448_v10 }
  0x97   :  { %6184 = vmatprep.mubr.msk.bf16.mxu0 %vm942_vm0, %v6449_v11  ;;  %6312 = vmatprep.mubr.msk.bf16.mxu1 %vm942_vm0, %v6450_v12 }
  0x9e   :  { %6185 = vmatmul.mubr.msk.bf16.gmra.mrb[72].mxu0 %vm942_vm0, %v6451_v13  ;;  %6313 = vmatmul.mubr.msk.bf16.gmra.mrb[72].mxu1 %vm942_vm0, %v6452_v14 }
  0x9f   :  { %6188 = vmatprep.mubr.msk.bf16.mxu0 %vm942_vm0, %v6453_v15  ;;  %6316 = vmatprep.mubr.msk.bf16.mxu1 %vm942_vm0, %v6454_v16 }
  0xa6   :  { %6189 = vmatmul.mubr.msk.bf16.gmra.mrb[76].mxu0 %vm942_vm0, %v6455_v17  ;;  %6317 = vmatmul.mubr.msk.bf16.gmra.mrb[76].mxu1 %vm942_vm0, %v6456_v18 }
  0xa7   :  { %6192 = vmatprep.mubr.msk.bf16.mxu0 %vm942_vm0, %v6457_v19  ;;  %6320 = vmatprep.mubr.msk.bf16.mxu1 %vm942_vm0, %v6458_v20 }
  0xae   :  { %6193 = vmatmul.mubr.msk.bf16.gmra.mrb[80].mxu0 %vm942_vm0, %v6459_v21  ;;  %6321 = vmatmul.mubr.msk.bf16.gmra.mrb[80].mxu1 %vm942_vm0, %v6460_v22  ;;  %v6491_v22 = vld [vmem:[%s8236_s0 + $0x1c8] sm:$0xff]  }
  0xaf   :  { %6196 = vmatprep.mubr.msk.bf16.mxu0 %vm942_vm0, %v6461_v23  ;;  %6324 = vmatprep.mubr.msk.bf16.mxu1 %vm942_vm0, %v6462_v24 }
  0xb6   :  { %6197 = vmatmul.mubr.msk.bf16.gmra.mrb[84].mxu0 %vm942_vm0, %v6463_v25  ;;  %6325 = vmatmul.mubr.msk.bf16.gmra.mrb[84].mxu1 %vm942_vm0, %v6464_v26 }
  0xb7   :  { %6200 = vmatprep.mubr.msk.bf16.mxu0 %vm942_vm0, %v6465_v27  ;;  %6328 = vmatprep.mubr.msk.bf16.mxu1 %vm942_vm0, %v6466_v28 }
  0xbe   :  { %6201 = vmatmul.mubr.msk.bf16.gmra.mrb[88].mxu0 %vm942_vm0, %v6467_v29  ;;  %6329 = vmatmul.mubr.msk.bf16.gmra.mrb[88].mxu1 %vm942_vm0, %v6468_v30  ;;  %v6492_v29 = vld [vmem:[%s8236_s0 + $0x3c8] sm:$0xff]   ;;  %v6493_v30 = vld [vmem:[%s8236_s0 + $0x1d0] sm:$0xff]  }
  0xbf   :  { %6204 = vmatprep.mubr.msk.bf16.mxu0 %vm942_vm0, %v6469_v31  ;;  %6332 = vmatprep.mubr.msk.bf16.mxu1 %vm942_vm0, %v6470_v32 }
  0xc6   :  { %6205 = vmatmul.mubr.msk.bf16.gmra.mrb[92].mxu0 %vm942_vm0, %v6471_v33  ;;  %6333 = vmatmul.mubr.msk.bf16.gmra.mrb[92].mxu1 %vm942_vm0, %v6472_v34 }
  0xc7   :  { %6208 = vmatprep.mubr.msk.bf16.mxu0 %vm942_vm0, %v6473_v35  ;;  %6336 = vmatprep.mubr.msk.bf16.mxu1 %vm942_vm0, %v6474_v36 }
  0xce   :  { %6209 = vmatmul.mubr.msk.bf16.gmra.mrb[96].mxu0 %vm942_vm0, %v6475_v37  ;;  %6337 = vmatmul.mubr.msk.bf16.gmra.mrb[96].mxu1 %vm942_vm0, %v6476_v38  ;;  %v6494_v37 = vld [vmem:[%s8236_s0 + $0x3d0] sm:$0xff]  }
  0xcf   :  { %6212 = vmatprep.mubr.msk.bf16.mxu0 %vm942_vm0, %v6477_v39  ;;  %6340 = vmatprep.mubr.msk.bf16.mxu1 %vm942_vm0, %v6478_v40 }
  0xd6   :  { %6213 = vmatmul.mubr.msk.bf16.gmra.mrb[100].mxu0 %vm942_vm0, %v6479_v41  ;;  %6341 = vmatmul.mubr.msk.bf16.gmra.mrb[100].mxu1 %vm942_vm0, %v6480_v42 }
  0xd7   :  { %6216 = vmatprep.mubr.msk.bf16.mxu0 %vm942_vm0, %v6481_v43  ;;  %6344 = vmatprep.mubr.msk.bf16.mxu1 %vm942_vm0, %v6482_v44 }
  0xde   :  { %6217 = vmatmul.mubr.msk.bf16.gmra.mrb[104].mxu0 %vm942_vm0, %v6483_v45  ;;  %6345 = vmatmul.mubr.msk.bf16.gmra.mrb[104].mxu1 %vm942_vm0, %v6484_v46 }
  0xdf   :  { %6220 = vmatprep.mubr.msk.bf16.mxu0 %vm942_vm0, %v6485_v47  ;;  %6348 = vmatprep.mubr.msk.bf16.mxu1 %vm942_vm0, %v6486_v48 }
  0xe1   :  { %v6114_v50 = vpop.f32.mrb[0].mxu0  ;;  %v6242_v51 = vpop.f32.mrb[0].mxu1 }
  0xe2   :  { %v1370_v52 = vadd.f32 %v6114_v50, %v6977_v49  ;;  %v1882_v53 = vadd.f32 %v6242_v51, %v6977_v49  ;;  %v1361_v54 = vpop.f32.mrb[1].mxu0  ;;  %v1873_v55 = vpop.f32.mrb[1].mxu1 }
  0xe3   :  { %v1362_v57 = vadd.f32 %v6977_v49, %v1361_v54  ;;  %v1874_v58 = vadd.f32 %v6977_v49, %v1873_v55  ;;  %v6115_v59 = vpop.f32.mrb[2].mxu0  ;;  %v6243_v60 = vpop.f32.mrb[2].mxu1 }
  0xe4   :  { %vm2386_vm1 = vcmp.gt.f32.partialorder %v1370_v52, 0.0  ;;  %v2642_v0 = vmul.f32 0.2, %v1370_v52  ;;  %vm2514_vm2 = vcmp.gt.f32.partialorder %v1882_v53, 0.0  ;;  %v2770_v1 = vmul.f32 0.2, %v1882_v53 }
  0xe5   :  { %vm2384_vm3 = vcmp.gt.f32.partialorder %v1362_v57, 0.0  ;;  %v2640_v2 = vmul.f32 0.2, %v1362_v57  ;;  %vm2512_vm4 = vcmp.gt.f32.partialorder %v1874_v58, 0.0  ;;  %v2768_v3 = vmul.f32 0.2, %v1874_v58 }
  0xe6   :  { %v1373_v4 = vadd.f32 %v6115_v59, %v6977_v49  ;;  %v1885_v5 = vadd.f32 %v6243_v60, %v6977_v49  ;;  %v1364_v6 = vpop.f32.mrb[3].mxu0  ;;  %v1876_v7 = vpop.f32.mrb[3].mxu1  ;;  %6221 = vmatmul.mubr.msk.bf16.gmra.mrb[108].mxu0 %vm942_vm0, %v6487_v56  ;;  %v2898_v8 = vsel %vm2386_vm1, %v1370_v52, %v2642_v0  ;;  %v3026_v9 = vsel %vm2514_vm2, %v1882_v53, %v2770_v1 }
  0xe7   :  { %v1365_v10 = vadd.f32 %v6977_v49, %v1364_v6  ;;  %v1877_v11 = vadd.f32 %v6977_v49, %v1876_v7  ;;  %6349 = vmatmul.mubr.msk.bf16.gmra.mrb[108].mxu1 %vm942_vm0, %v6488_v61  ;;  %6224 = vmatprep.mubr.msk.bf16.mxu0 %vm942_vm0, %v6489_v62  ;;  %v2896_v16 = vsel %vm2384_vm3, %v1362_v57, %v2640_v2  ;;  %v6496_v6 = vld [vmem:[%s8236_s0 + $0x3d8] sm:$0xff]   ;;  %v6497_v7 = vld [vmem:[%s8236_s0 + $0x1e0] sm:$0xff]  }
  0xe8   :  { %vm2387_vm5 = vcmp.gt.f32.partialorder %v1373_v4, 0.0  ;;  %v2643_v12 = vmul.f32 0.2, %v1373_v4  ;;  %vm2515_vm6 = vcmp.gt.f32.partialorder %v1885_v5, 0.0  ;;  %v2771_v13 = vmul.f32 0.2, %v1885_v5  ;;  %6352 = vmatprep.mubr.msk.bf16.mxu1 %vm942_vm0, %v6490_v63 }
  0xe9   :  { %vm2385_vm7 = vcmp.gt.f32.partialorder %v1365_v10, 0.0  ;;  %v2641_v14 = vmul.f32 0.2, %v1365_v10  ;;  %vm2513_vm8 = vcmp.gt.f32.partialorder %v1877_v11, 0.0  ;;  %v2769_v15 = vmul.f32 0.2, %v1877_v11 }
  0xea   :  { %v3024_v17 = vsel %vm2512_vm4, %v1874_v58, %v2768_v3  ;;  %v2899_v18 = vsel %vm2387_vm5, %v1373_v4, %v2643_v12  ;;  %v3027_v19 = vsel %vm2515_vm6, %v1885_v5, %v2771_v13  ;;  %v6118_v20 = vpop.f32.mrb[4].mxu0  ;;  %v6246_v21 = vpop.f32.mrb[4].mxu1  ;;  %v6495_v63 = vld [vmem:[%s8236_s0 + $0x1d8] sm:$0xff]  }
  0xeb   :  { %v5216_v23 = vpack.c.bf16 %v2899_v18, %v2898_v8  ;;  %v5536_v24 = vpack.c.bf16 %v3027_v19, %v3026_v9  ;;  %v2897_v25 = vsel %vm2385_vm7, %v1365_v10, %v2641_v14  ;;  %v3025_v26 = vsel %vm2513_vm8, %v1877_v11, %v2769_v15  ;;  %v1377_v27 = vpop.f32.mrb[5].mxu0  ;;  %v1889_v28 = vpop.f32.mrb[5].mxu1  ;;  %v6498_v8 = vld [vmem:[%s8236_s0 + $0x3e0] sm:$0xff]  }
  0xec   :  { %v5211_v31 = vpack.c.bf16 %v2897_v25, %v2896_v16  ;;  %v5531_v32 = vpack.c.bf16 %v3025_v26, %v3024_v17  ;;  %v1386_v33 = vadd.f32 %v6118_v20, %v6977_v49  ;;  %v1898_v34 = vadd.f32 %v6246_v21, %v6977_v49  ;;  %v6119_v35 = vpop.f32.mrb[6].mxu0  ;;  %v6247_v36 = vpop.f32.mrb[6].mxu1  ;;  %v6499_v26 = vld [vmem:[%s8236_s0 + $0x1e8] sm:$0xff]  }
  0xed   :  { %5848 = vst [vmem:[%s8238_s3 + $0x8] sm:$0xff] %v5216_v23   ;;  %5912 = vst [vmem:[%s8238_s3 + $0x208] sm:$0xff] %v5536_v24   ;;  %v1378_v38 = vadd.f32 %v6977_v49, %v1377_v27  ;;  %v1890_v39 = vadd.f32 %v6977_v49, %v1889_v28  ;;  %v1389_v40 = vadd.f32 %v6119_v35, %v6977_v49  ;;  %v1380_v42 = vpop.f32.mrb[7].mxu0  ;;  %v1892_v43 = vpop.f32.mrb[7].mxu1 }
  0xee   :  { %v1901_v41 = vadd.f32 %v6247_v36, %v6977_v49  ;;  %5212 = vst [vmem:[%s8238_s3] sm:$0xff] %v5211_v31   ;;  %5911 = vst [vmem:[%s8238_s3 + $0x200] sm:$0xff] %v5531_v32   ;;  %vm2390_vm9 = vcmp.gt.f32.partialorder %v1386_v33, 0.0  ;;  %v2646_v44 = vmul.f32 0.2, %v1386_v33  ;;  %vm2518_vm10 = vcmp.gt.f32.partialorder %v1898_v34, 0.0  ;;  %6225 = vmatmul.mubr.msk.bf16.gmra.mrb[112].mxu0 %vm942_vm0, %v6491_v22  ;;  %v6500_v32 = vld [vmem:[%s8236_s0 + $0x3e8] sm:$0xff]  }
  0xef   :  { %v2774_v45 = vmul.f32 0.2, %v1898_v34  ;;  %vm2388_vm11 = vcmp.gt.f32.partialorder %v1378_v38, 0.0  ;;  %v2644_v46 = vmul.f32 0.2, %v1378_v38  ;;  %vm2516_vm12 = vcmp.gt.f32.partialorder %v1890_v39, 0.0  ;;  %6353 = vmatmul.mubr.msk.bf16.gmra.mrb[112].mxu1 %vm942_vm0, %v6492_v29  ;;  %6228 = vmatprep.mubr.msk.bf16.mxu0 %vm942_vm0, %v6493_v30 }
  0xf0   :  { %v2772_v47 = vmul.f32 0.2, %v1890_v39  ;;  %v2902_v48 = vsel %vm2390_vm9, %v1386_v33, %v2646_v44  ;;  %vm2391_vm13 = vcmp.gt.f32.partialorder %v1389_v40, 0.0  ;;  %v2647_v51 = vmul.f32 0.2, %v1389_v40  ;;  %6356 = vmatprep.mubr.msk.bf16.mxu1 %vm942_vm0, %v6494_v37 }
  0xf1   :  { %v3030_v50 = vsel %vm2518_vm10, %v1898_v34, %v2774_v45  ;;  %v2900_v52 = vsel %vm2388_vm11, %v1378_v38, %v2644_v46  ;;  %vm2519_vm14 = vcmp.gt.f32.partialorder %v1901_v41, 0.0  ;;  %v2775_v54 = vmul.f32 0.2, %v1901_v41  ;;  %v6122_v55 = vpop.f32.mrb[8].mxu0  ;;  %v6250_v56 = vpop.f32.mrb[8].mxu1  ;;  %v6501_v38 = vld [vmem:[%s8236_s0 + $0x1f0] sm:$0xff]  }
  0xf2   :  { %v3028_v53 = vsel %vm2516_vm12, %v1890_v39, %v2772_v47  ;;  %v2903_v57 = vsel %vm2391_vm13, %v1389_v40, %v2647_v51  ;;  %v1381_v58 = vadd.f32 %v6977_v49, %v1380_v42  ;;  %v1893_v59 = vadd.f32 %v6977_v49, %v1892_v43  ;;  %v1393_v61 = vpop.f32.mrb[9].mxu0  ;;  %v1905_v62 = vpop.f32.mrb[9].mxu1  ;;  %v6502_v39 = vld [vmem:[%s8236_s0 + $0x3f0] sm:$0xff]  }
  0xf3   :  { %v1402_v60 = vadd.f32 %v6122_v55, %v6977_v49  ;;  %v5226_v0 = vpack.c.bf16 %v2903_v57, %v2902_v48  ;;  %v3031_v1 = vsel %vm2519_vm14, %v1901_v41, %v2775_v54  ;;  %v1914_v2 = vadd.f32 %v6250_v56, %v6977_v49  ;;  %v6123_v4 = vpop.f32.mrb[10].mxu0  ;;  %v6251_v5 = vpop.f32.mrb[10].mxu1 }
  0xf4   :  { %v1394_v3 = vadd.f32 %v6977_v49, %v1393_v61  ;;  %v5546_v9 = vpack.c.bf16 %v3031_v1, %v3030_v50  ;;  %vm2389_vm15 = vcmp.gt.f32.partialorder %v1381_v58, 0.0  ;;  %v2645_v10 = vmul.f32 0.2, %v1381_v58  ;;  %v1396_v11 = vpop.f32.mrb[11].mxu0  ;;  %v1908_v12 = vpop.f32.mrb[11].mxu1 }
  0xf5   :  { %vm2517_vm1 = vcmp.gt.f32.partialorder %v1893_v59, 0.0  ;;  %5850 = vst [vmem:[%s8238_s3 + $0x18] sm:$0xff] %v5226_v0   ;;  %v2773_v13 = vmul.f32 0.2, %v1893_v59  ;;  %vm2394_vm2 = vcmp.gt.f32.partialorder %v1402_v60, 0.0  ;;  %vm2522_vm3 = vcmp.gt.f32.partialorder %v1914_v2, 0.0 }
  0xf6   :  { %v2650_v14 = vmul.f32 0.2, %v1402_v60  ;;  %5914 = vst [vmem:[%s8238_s3 + $0x218] sm:$0xff] %v5546_v9   ;;  %v2901_v15 = vsel %vm2389_vm15, %v1381_v58, %v2645_v10  ;;  %v2778_v16 = vmul.f32 0.2, %v1914_v2  ;;  %vm2392_vm4 = vcmp.gt.f32.partialorder %v1394_v3, 0.0  ;;  %6229 = vmatmul.mubr.msk.bf16.gmra.mrb[116].mxu0 %vm942_vm0, %v6495_v63 }
  0xf7   :  { %v2648_v17 = vmul.f32 0.2, %v1394_v3  ;;  %v5221_v18 = vpack.c.bf16 %v2901_v15, %v2900_v52  ;;  %v3029_v19 = vsel %vm2517_vm1, %v1893_v59, %v2773_v13  ;;  %v1906_v21 = vadd.f32 %v6977_v49, %v1905_v62  ;;  %6357 = vmatmul.mubr.msk.bf16.gmra.mrb[116].mxu1 %vm942_vm0, %v6496_v6  ;;  %6232 = vmatprep.mubr.msk.bf16.mxu0 %vm942_vm0, %v6497_v7  ;;  %v6503_v0 = vld [vmem:[%s8236_s0 + $0x1f8] sm:$0xff]  }
  0xf8   :  { %v2906_v20 = vsel %vm2394_vm2, %v1402_v60, %v2650_v14  ;;  %v5541_v22 = vpack.c.bf16 %v3029_v19, %v3028_v53  ;;  %v3034_v23 = vsel %vm2522_vm3, %v1914_v2, %v2778_v16  ;;  %v1405_v25 = vadd.f32 %v6123_v4, %v6977_v49  ;;  %6360 = vmatprep.mubr.msk.bf16.mxu1 %vm942_vm0, %v6498_v8  ;;  %v6504_v6 = vld [vmem:[%s8236_s0 + $0x3f8] sm:$0xff]  }
  0xf9   :  { %v2904_v24 = vsel %vm2392_vm4, %v1394_v3, %v2648_v17  ;;  %5849 = vst [vmem:[%s8238_s3 + $0x10] sm:$0xff] %v5221_v18   ;;  %vm2520_vm5 = vcmp.gt.f32.partialorder %v1906_v21, 0.0  ;;  %v2776_v27 = vmul.f32 0.2, %v1906_v21  ;;  %v1917_v28 = vadd.f32 %v6251_v5, %v6977_v49  ;;  %v6126_v30 = vpop.f32.mrb[12].mxu0  ;;  %v6254_v31 = vpop.f32.mrb[12].mxu1 }
  0xfa   :  { %v1397_v29 = vadd.f32 %v6977_v49, %v1396_v11  ;;  %5913 = vst [vmem:[%s8238_s3 + $0x210] sm:$0xff] %v5541_v22   ;;  %vm2395_vm6 = vcmp.gt.f32.partialorder %v1405_v25, 0.0  ;;  %v2651_v33 = vmul.f32 0.2, %v1405_v25  ;;  %v1909_v34 = vadd.f32 %v6977_v49, %v1908_v12  ;;  %v1409_v36 = vpop.f32.mrb[13].mxu0  ;;  %v1921_v37 = vpop.f32.mrb[13].mxu1 }
  0xfb   :  { %v1418_v35 = vadd.f32 %v6126_v30, %v6977_v49  ;;  %v3032_v40 = vsel %vm2520_vm5, %v1906_v21, %v2776_v27  ;;  %vm2523_vm7 = vcmp.gt.f32.partialorder %v1917_v28, 0.0  ;;  %v2779_v41 = vmul.f32 0.2, %v1917_v28  ;;  %v6127_v42 = vpop.f32.mrb[14].mxu0  ;;  %v6255_v43 = vpop.f32.mrb[14].mxu1 }
  0xfc   :  { %vm2393_vm8 = vcmp.gt.f32.partialorder %v1397_v29, 0.0  ;;  %v2907_v44 = vsel %vm2395_vm6, %v1405_v25, %v2651_v33  ;;  %v2649_v45 = vmul.f32 0.2, %v1397_v29  ;;  %vm2521_vm9 = vcmp.gt.f32.partialorder %v1909_v34, 0.0  ;;  %v1412_v47 = vpop.f32.mrb[15].mxu0  ;;  %v1924_v52 = vpop.f32.mrb[15].mxu1 }
  0xfd   :  { %v2777_v46 = vmul.f32 0.2, %v1909_v34  ;;  %v5236_v48 = vpack.c.bf16 %v2907_v44, %v2906_v20  ;;  %v3035_v50 = vsel %vm2523_vm7, %v1917_v28, %v2779_v41  ;;  %vm2398_vm10 = vcmp.gt.f32.partialorder %v1418_v35, 0.0 }
  0xfe   :  { %v2654_v51 = vmul.f32 0.2, %v1418_v35  ;;  %v5556_v53 = vpack.c.bf16 %v3035_v50, %v3034_v23  ;;  %v2905_v54 = vsel %vm2393_vm8, %v1397_v29, %v2649_v45  ;;  %v1930_v56 = vadd.f32 %v6254_v31, %v6977_v49  ;;  %6233 = vmatmul.mubr.msk.bf16.gmra.mrb[120].mxu0 %vm942_vm0, %v6499_v26 }
  0xff   :  { %v3033_v55 = vsel %vm2521_vm9, %v1909_v34, %v2777_v46  ;;  %5852 = vst [vmem:[%s8238_s3 + $0x28] sm:$0xff] %v5236_v48   ;;  %v5231_v57 = vpack.c.bf16 %v2905_v54, %v2904_v24  ;;  %v1410_v60 = vadd.f32 %v6977_v49, %v1409_v36  ;;  %6361 = vmatmul.mubr.msk.bf16.gmra.mrb[120].mxu1 %vm942_vm0, %v6500_v32 }
 0x100   :  { %v5551_v58 = vpack.c.bf16 %v3033_v55, %v3032_v40  ;;  %v2910_v59 = vsel %vm2398_vm10, %v1418_v35, %v2654_v51  ;;  %5916 = vst [vmem:[%s8238_s3 + $0x228] sm:$0xff] %v5556_v53   ;;  %vm2526_vm11 = vcmp.gt.f32.partialorder %v1930_v56, 0.0  ;;  %v2782_v61 = vmul.f32 0.2, %v1930_v56  ;;  %6236 = vmatprep.mubr.msk.bf16.mxu0 %vm942_vm0, %v6501_v38  ;;  %6364 = vmatprep.mubr.msk.bf16.mxu1 %vm942_vm0, %v6502_v39 }
 0x101   :  { %v1922_v62 = vadd.f32 %v6977_v49, %v1921_v37  ;;  %v1421_v63 = vadd.f32 %v6127_v42, %v6977_v49  ;;  %5851 = vst [vmem:[%s8238_s3 + $0x20] sm:$0xff] %v5231_v57   ;;  %vm2396_vm12 = vcmp.gt.f32.partialorder %v1410_v60, 0.0  ;;  %v2652_v1 = vmul.f32 0.2, %v1410_v60  ;;  %v6130_v4 = vpop.f32.mrb[16].mxu0  ;;  %v6258_v5 = vpop.f32.mrb[16].mxu1 }
 0x102   :  { %5915 = vst [vmem:[%s8238_s3 + $0x220] sm:$0xff] %v5551_v58   ;;  %v1933_v2 = vadd.f32 %v6255_v43, %v6977_v49  ;;  %v1413_v3 = vadd.f32 %v6977_v49, %v1412_v47  ;;  %v3038_v7 = vsel %vm2526_vm11, %v1930_v56, %v2782_v61  ;;  %v1425_v9 = vpop.f32.mrb[17].mxu0  ;;  %v1937_v10 = vpop.f32.mrb[17].mxu1  ;;  %v1925_v17 = vadd.f32 %v6977_v49, %v1924_v52 }
 0x103   :  { %vm2524_vm13 = vcmp.gt.f32.partialorder %v1922_v62, 0.0  ;;  %v2780_v8 = vmul.f32 0.2, %v1922_v62  ;;  %vm2399_vm14 = vcmp.gt.f32.partialorder %v1421_v63, 0.0  ;;  %v2908_v11 = vsel %vm2396_vm12, %v1410_v60, %v2652_v1  ;;  %v6131_v14 = vpop.f32.mrb[18].mxu0  ;;  %v6259_v18 = vpop.f32.mrb[18].mxu1 }
 0x104   :  { %v2655_v12 = vmul.f32 0.2, %v1421_v63  ;;  %vm2527_vm15 = vcmp.gt.f32.partialorder %v1933_v2, 0.0  ;;  %v2783_v13 = vmul.f32 0.2, %v1933_v2  ;;  %vm2397_vm1 = vcmp.gt.f32.partialorder %v1413_v3, 0.0 }
 0x105   :  { %v3036_v15 = vsel %vm2524_vm13, %v1922_v62, %v2780_v8  ;;  %v2653_v16 = vmul.f32 0.2, %v1413_v3  ;;  %v1428_v19 = vpop.f32.mrb[19].mxu0  ;;  %v1434_v22 = vadd.f32 %v6130_v4, %v6977_v49  ;;  %v1946_v23 = vadd.f32 %v6258_v5, %v6977_v49  ;;  %v1940_v24 = vpop.f32.mrb[19].mxu1 }
 0x106   :  { %v2911_v20 = vsel %vm2399_vm14, %v1421_v63, %v2655_v12  ;;  %v3039_v21 = vsel %vm2527_vm15, %v1933_v2, %v2783_v13  ;;  %vm2525_vm2 = vcmp.gt.f32.partialorder %v1925_v17, 0.0  ;;  %6237 = vmatmul.mubr.msk.bf16.gmra.mrb[124].mxu0 %vm942_vm0, %v6503_v0  ;;  %v2781_v29 = vmul.f32 0.2, %v1925_v17 }
 0x107   :  { %v5246_v25 = vpack.c.bf16 %v2911_v20, %v2910_v59  ;;  %v5566_v26 = vpack.c.bf16 %v3039_v21, %v3038_v7  ;;  %v2909_v27 = vsel %vm2397_vm1, %v1413_v3, %v2653_v16  ;;  %vm2402_vm3 = vcmp.gt.f32.partialorder %v1434_v22, 0.0  ;;  %6365 = vmatmul.mubr.msk.bf16.gmra.mrb[124].mxu1 %vm942_vm0, %v6504_v6 }
 0x108   :  { %v5241_v28 = vpack.c.bf16 %v2909_v27, %v2908_v11  ;;  %v2658_v30 = vmul.f32 0.2, %v1434_v22  ;;  %vm2530_vm4 = vcmp.gt.f32.partialorder %v1946_v23, 0.0  ;;  %v2786_v31 = vmul.f32 0.2, %v1946_v23 }
 0x109   :  { %5854 = vst [vmem:[%s8238_s3 + $0x38] sm:$0xff] %v5246_v25   ;;  %5918 = vst [vmem:[%s8238_s3 + $0x238] sm:$0xff] %v5566_v26   ;;  %v1426_v32 = vadd.f32 %v6977_v49, %v1425_v9  ;;  %v1938_v33 = vadd.f32 %v6977_v49, %v1937_v10  ;;  %v3037_v34 = vsel %vm2525_vm2, %v1925_v17, %v2781_v29  ;;  %v6134_v38 = vpop.f32.mrb[20].mxu0  ;;  %v6262_v39 = vpop.f32.mrb[20].mxu1 }
 0x10a   :  { %5853 = vst [vmem:[%s8238_s3 + $0x30] sm:$0xff] %v5241_v28   ;;  %v2914_v35 = vsel %vm2402_vm3, %v1434_v22, %v2658_v30  ;;  %v1437_v36 = vadd.f32 %v6131_v14, %v6977_v49  ;;  %v1949_v37 = vadd.f32 %v6259_v18, %v6977_v49  ;;  %v5561_v40 = vpack.c.bf16 %v3037_v34, %v3036_v15  ;;  %v1441_v43 = vpop.f32.mrb[21].mxu0  ;;  %v1953_v44 = vpop.f32.mrb[21].mxu1 }
 0x10b   :  { %v3042_v41 = vsel %vm2530_vm4, %v1946_v23, %v2786_v31  ;;  %vm2400_vm0 = vcmp.gt.f32.partialorder %v1426_v32, 0.0  ;;  %v2656_v42 = vmul.f32 0.2, %v1426_v32  ;;  %vm2528_vm5 = vcmp.gt.f32.partialorder %v1938_v33, 0.0  ;;  %v6135_v51 = vpop.f32.mrb[22].mxu0  ;;  %v6263_v52 = vpop.f32.mrb[22].mxu1 }
 0x10c   :  { %v2784_v45 = vmul.f32 0.2, %v1938_v33  ;;  %vm2403_vm6 = vcmp.gt.f32.partialorder %v1437_v36, 0.0  ;;  %v2659_v46 = vmul.f32 0.2, %v1437_v36  ;;  %5917 = vst [vmem:[%s8238_s3 + $0x230] sm:$0xff] %v5561_v40   ;;  %v1429_v50 = vadd.f32 %v6977_v49, %v1428_v19 }
 0x10d   :  { %v2912_v47 = vsel %vm2400_vm0, %v1426_v32, %v2656_v42  ;;  %vm2531_vm7 = vcmp.gt.f32.partialorder %v1949_v37, 0.0  ;;  %v2787_v48 = vmul.f32 0.2, %v1949_v37  ;;  %v1941_v55 = vadd.f32 %v6977_v49, %v1940_v24  ;;  %v1444_v57 = vpop.f32.mrb[23].mxu0  ;;  %v1956_v58 = vpop.f32.mrb[23].mxu1 }
 0x10e   :  { %v3040_v53 = vsel %vm2528_vm5, %v1938_v33, %v2784_v45  ;;  %v2915_v54 = vsel %vm2403_vm6, %v1437_v36, %v2659_v46  ;;  %v1450_v56 = vadd.f32 %v6134_v38, %v6977_v49  ;;  %vm2401_vm8 = vcmp.gt.f32.partialorder %v1429_v50, 0.0 }
 0x10f   :  { %v5256_v59 = vpack.c.bf16 %v2915_v54, %v2914_v35  ;;  %v3043_v60 = vsel %vm2531_vm7, %v1949_v37, %v2787_v48  ;;  %v2657_v61 = vmul.f32 0.2, %v1429_v50  ;;  %vm2529_vm9 = vcmp.gt.f32.partialorder %v1941_v55, 0.0 }
 0x110   :  { %v5576_v62 = vpack.c.bf16 %v3043_v60, %v3042_v41  ;;  %v2785_v63 = vmul.f32 0.2, %v1941_v55  ;;  %vm2406_vm10 = vcmp.gt.f32.partialorder %v1450_v56, 0.0  ;;  %v2662_v1 = vmul.f32 0.2, %v1450_v56 }
 0x111   :  { %5856 = vst [vmem:[%s8238_s3 + $0x48] sm:$0xff] %v5256_v59   ;;  %v2913_v0 = vsel %vm2401_vm8, %v1429_v50, %v2657_v61  ;;  %v1962_v2 = vadd.f32 %v6262_v39, %v6977_v49  ;;  %v1442_v3 = vadd.f32 %v6977_v49, %v1441_v43  ;;  %v1954_v6 = vadd.f32 %v6977_v49, %v1953_v44  ;;  %v6138_v8 = vpop.f32.mrb[24].mxu0  ;;  %v6266_v9 = vpop.f32.mrb[24].mxu1 }
 0x112   :  { %5920 = vst [vmem:[%s8238_s3 + $0x248] sm:$0xff] %v5576_v62   ;;  %v5251_v4 = vpack.c.bf16 %v2913_v0, %v2912_v47  ;;  %v3041_v5 = vsel %vm2529_vm9, %v1941_v55, %v2785_v63  ;;  %v1453_v7 = vadd.f32 %v6135_v51, %v6977_v49  ;;  %v2918_v11 = vsel %vm2406_vm10, %v1450_v56, %v2662_v1  ;;  %v1457_v13 = vpop.f32.mrb[25].mxu0  ;;  %v1969_v14 = vpop.f32.mrb[25].mxu1 }
 0x113   :  { %v5571_v10 = vpack.c.bf16 %v3041_v5, %v3040_v53  ;;  %vm2534_vm11 = vcmp.gt.f32.partialorder %v1962_v2, 0.0  ;;  %v2790_v12 = vmul.f32 0.2, %v1962_v2  ;;  %vm2404_vm12 = vcmp.gt.f32.partialorder %v1442_v3, 0.0  ;;  %v6139_v20 = vpop.f32.mrb[26].mxu0  ;;  %v6267_v21 = vpop.f32.mrb[26].mxu1 }
 0x114   :  { %5855 = vst [vmem:[%s8238_s3 + $0x40] sm:$0xff] %v5251_v4   ;;  %v2660_v15 = vmul.f32 0.2, %v1442_v3  ;;  %vm2532_vm13 = vcmp.gt.f32.partialorder %v1954_v6, 0.0  ;;  %v2788_v16 = vmul.f32 0.2, %v1954_v6  ;;  %v1965_v19 = vadd.f32 %v6263_v52, %v6977_v49 }
 0x115   :  { %5919 = vst [vmem:[%s8238_s3 + $0x240] sm:$0xff] %v5571_v10   ;;  %v3046_v17 = vsel %vm2534_vm11, %v1962_v2, %v2790_v12  ;;  %vm2407_vm14 = vcmp.gt.f32.partialorder %v1453_v7, 0.0  ;;  %v2663_v18 = vmul.f32 0.2, %v1453_v7  ;;  %v1445_v24 = vadd.f32 %v6977_v49, %v1444_v57  ;;  %v1460_v26 = vpop.f32.mrb[27].mxu0  ;;  %v1972_v27 = vpop.f32.mrb[27].mxu1 }
 0x116   :  { %v2916_v22 = vsel %vm2404_vm12, %v1442_v3, %v2660_v15  ;;  %v3044_v23 = vsel %vm2532_vm13, %v1954_v6, %v2788_v16  ;;  %v1957_v25 = vadd.f32 %v6977_v49, %v1956_v58  ;;  %vm2535_vm15 = vcmp.gt.f32.partialorder %v1965_v19, 0.0 }
 0x117   :  { %v2919_v28 = vsel %vm2407_vm14, %v1453_v7, %v2663_v18  ;;  %v2791_v29 = vmul.f32 0.2, %v1965_v19  ;;  %v1466_v30 = vadd.f32 %v6138_v8, %v6977_v49  ;;  %vm2405_vm1 = vcmp.gt.f32.partialorder %v1445_v24, 0.0 }
 0x118   :  { %v5266_v31 = vpack.c.bf16 %v2919_v28, %v2918_v11  ;;  %v2661_v32 = vmul.f32 0.2, %v1445_v24  ;;  %vm2533_vm2 = vcmp.gt.f32.partialorder %v1957_v25, 0.0  ;;  %v2789_v34 = vmul.f32 0.2, %v1957_v25 }
 0x119   :  { %v3047_v33 = vsel %vm2535_vm15, %v1965_v19, %v2791_v29  ;;  %vm2410_vm3 = vcmp.gt.f32.partialorder %v1466_v30, 0.0  ;;  %v2666_v35 = vmul.f32 0.2, %v1466_v30  ;;  %v1978_v38 = vadd.f32 %v6266_v9, %v6977_v49  ;;  %v6142_v40 = vpop.f32.mrb[28].mxu0  ;;  %v6270_v41 = vpop.f32.mrb[28].mxu1 }
 0x11a   :  { %5858 = vst [vmem:[%s8238_s3 + $0x58] sm:$0xff] %v5266_v31   ;;  %v5586_v36 = vpack.c.bf16 %v3047_v33, %v3046_v17  ;;  %v2917_v37 = vsel %vm2405_vm1, %v1445_v24, %v2661_v32  ;;  %v1458_v39 = vadd.f32 %v6977_v49, %v1457_v13  ;;  %v3045_v43 = vsel %vm2533_vm2, %v1957_v25, %v2789_v34  ;;  %v1473_v46 = vpop.f32.mrb[29].mxu0  ;;  %v1985_v47 = vpop.f32.mrb[29].mxu1 }
 0x11b   :  { %v5261_v42 = vpack.c.bf16 %v2917_v37, %v2916_v22  ;;  %v2922_v44 = vsel %vm2410_vm3, %v1466_v30, %v2666_v35  ;;  %v1970_v45 = vadd.f32 %v6977_v49, %v1969_v14  ;;  %v5581_v48 = vpack.c.bf16 %v3045_v43, %v3044_v23  ;;  %v6143_v51 = vpop.f32.mrb[30].mxu0  ;;  %v6271_v52 = vpop.f32.mrb[30].mxu1 }
 0x11c   :  { %5922 = vst [vmem:[%s8238_s3 + $0x258] sm:$0xff] %v5586_v36   ;;  %vm2538_vm4 = vcmp.gt.f32.partialorder %v1978_v38, 0.0  ;;  %v2794_v50 = vmul.f32 0.2, %v1978_v38  ;;  %vm2408_vm0 = vcmp.gt.f32.partialorder %v1458_v39, 0.0  ;;  %v1469_v55 = vadd.f32 %v6139_v20, %v6977_v49  ;;  %v1476_v56 = vpop.f32.mrb[31].mxu0 }
 0x11d   :  { %5857 = vst [vmem:[%s8238_s3 + $0x50] sm:$0xff] %v5261_v42   ;;  %v2664_v53 = vmul.f32 0.2, %v1458_v39  ;;  %vm2536_vm5 = vcmp.gt.f32.partialorder %v1970_v45, 0.0  ;;  %v2792_v54 = vmul.f32 0.2, %v1970_v45  ;;  %v1981_v58 = vadd.f32 %v6267_v21, %v6977_v49 }
 0x11e   :  { %5921 = vst [vmem:[%s8238_s3 + $0x250] sm:$0xff] %v5581_v48   ;;  %v3050_v57 = vsel %vm2538_vm4, %v1978_v38, %v2794_v50  ;;  %v1461_v59 = vadd.f32 %v6977_v49, %v1460_v26  ;;  %v1973_v60 = vadd.f32 %v6977_v49, %v1972_v27  ;;  %v1988_v61 = vpop.f32.mrb[31].mxu1  ;;  %vm2411_vm6 = vcmp.gt.f32.partialorder %v1469_v55, 0.0 }
 0x11f   :  { %v2920_v62 = vsel %vm2408_vm0, %v1458_v39, %v2664_v53  ;;  %v3048_v63 = vsel %vm2536_vm5, %v1970_v45, %v2792_v54  ;;  %v2667_v0 = vmul.f32 0.2, %v1469_v55  ;;  %vm2539_vm7 = vcmp.gt.f32.partialorder %v1981_v58, 0.0 }
 0x120   :  { %v2795_v1 = vmul.f32 0.2, %v1981_v58  ;;  %vm2409_vm8 = vcmp.gt.f32.partialorder %v1461_v59, 0.0  ;;  %v2665_v2 = vmul.f32 0.2, %v1461_v59  ;;  %vm2537_vm9 = vcmp.gt.f32.partialorder %v1973_v60, 0.0 }
 0x121   :  { %v2923_v3 = vsel %vm2411_vm6, %v1469_v55, %v2667_v0  ;;  %v2793_v4 = vmul.f32 0.2, %v1973_v60  ;;  %v1482_v5 = vadd.f32 %v6142_v40, %v6977_v49  ;;  %v1994_v9 = vadd.f32 %v6270_v41, %v6977_v49  ;;  %v6146_v10 = vpop.f32.mrb[32].mxu0  ;;  %v6274_v11 = vpop.f32.mrb[32].mxu1 }
 0x122   :  { %v5276_v6 = vpack.c.bf16 %v2923_v3, %v2922_v44  ;;  %v3051_v7 = vsel %vm2539_vm7, %v1981_v58, %v2795_v1  ;;  %v2921_v8 = vsel %vm2409_vm8, %v1461_v59, %v2665_v2  ;;  %v1489_v15 = vpop.f32.mrb[33].mxu0  ;;  %v2001_v16 = vpop.f32.mrb[33].mxu1  ;;  %v1474_v21 = vadd.f32 %v6977_v49, %v1473_v46 }
 0x123   :  { %v5596_v12 = vpack.c.bf16 %v3051_v7, %v3050_v57  ;;  %v5271_v13 = vpack.c.bf16 %v2921_v8, %v2920_v62  ;;  %v3049_v14 = vsel %vm2537_vm9, %v1973_v60, %v2793_v4  ;;  %vm2414_vm10 = vcmp.gt.f32.partialorder %v1482_v5, 0.0  ;;  %v6147_v20 = vpop.f32.mrb[34].mxu0  ;;  %v6275_v25 = vpop.f32.mrb[34].mxu1 }
 0x124   :  { %5860 = vst [vmem:[%s8238_s3 + $0x68] sm:$0xff] %v5276_v6   ;;  %v5591_v17 = vpack.c.bf16 %v3049_v14, %v3048_v63  ;;  %v2670_v18 = vmul.f32 0.2, %v1482_v5  ;;  %vm2542_vm11 = vcmp.gt.f32.partialorder %v1994_v9, 0.0  ;;  %v2798_v19 = vmul.f32 0.2, %v1994_v9 }
 0x125   :  { %5924 = vst [vmem:[%s8238_s3 + $0x268] sm:$0xff] %v5596_v12   ;;  %5859 = vst [vmem:[%s8238_s3 + $0x60] sm:$0xff] %v5271_v13   ;;  %v1986_v22 = vadd.f32 %v6977_v49, %v1985_v47  ;;  %v1485_v23 = vadd.f32 %v6143_v51, %v6977_v49  ;;  %v1997_v24 = vadd.f32 %v6271_v52, %v6977_v49  ;;  %v1492_v26 = vpop.f32.mrb[35].mxu0  ;;  %v2004_v31 = vpop.f32.mrb[35].mxu1  ;;  %vm2412_vm12 = vcmp.gt.f32.partialorder %v1474_v21, 0.0 }
 0x126   :  { %5923 = vst [vmem:[%s8238_s3 + $0x260] sm:$0xff] %v5591_v17   ;;  %v2926_v27 = vsel %vm2414_vm10, %v1482_v5, %v2670_v18  ;;  %v3054_v28 = vsel %vm2542_vm11, %v1994_v9, %v2798_v19  ;;  %v1477_v29 = vadd.f32 %v6977_v49, %v1476_v56  ;;  %v1989_v30 = vadd.f32 %v6977_v49, %v1988_v61 }
 0x127   :  { %v2668_v32 = vmul.f32 0.2, %v1474_v21  ;;  %vm2540_vm13 = vcmp.gt.f32.partialorder %v1986_v22, 0.0  ;;  %v2796_v33 = vmul.f32 0.2, %v1986_v22  ;;  %vm2415_vm14 = vcmp.gt.f32.partialorder %v1485_v23, 0.0 }
 0x128   :  { %v2671_v34 = vmul.f32 0.2, %v1485_v23  ;;  %vm2543_vm15 = vcmp.gt.f32.partialorder %v1997_v24, 0.0  ;;  %v2799_v35 = vmul.f32 0.2, %v1997_v24  ;;  %vm2413_vm1 = vcmp.gt.f32.partialorder %v1477_v29, 0.0 }
 0x129   :  { %v2924_v36 = vsel %vm2412_vm12, %v1474_v21, %v2668_v32  ;;  %v3052_v37 = vsel %vm2540_vm13, %v1986_v22, %v2796_v33  ;;  %v2669_v38 = vmul.f32 0.2, %v1477_v29  ;;  %vm2541_vm2 = vcmp.gt.f32.partialorder %v1989_v30, 0.0  ;;  %v6150_v42 = vpop.f32.mrb[36].mxu0  ;;  %v6278_v43 = vpop.f32.mrb[36].mxu1 }
 0x12a   :  { %v2927_v39 = vsel %vm2415_vm14, %v1485_v23, %v2671_v34  ;;  %v3055_v40 = vsel %vm2543_vm15, %v1997_v24, %v2799_v35  ;;  %v2797_v41 = vmul.f32 0.2, %v1989_v30  ;;  %v1498_v47 = vadd.f32 %v6146_v10, %v6977_v49  ;;  %v7207_v48 = vpop.f32.mrb[37].mxu0  ;;  %v7209_v50 = vpop.f32.mrb[37].mxu1 }
 0x12b   :  { %v5286_v44 = vpack.c.bf16 %v2927_v39, %v2926_v27  ;;  %v5606_v45 = vpack.c.bf16 %v3055_v40, %v3054_v28  ;;  %v2925_v46 = vsel %vm2413_vm1, %v1477_v29, %v2669_v38  ;;  %v2010_v53 = vadd.f32 %v6274_v11, %v6977_v49  ;;  %v6151_v55 = vpop.f32.mrb[38].mxu0  ;;  %v6279_v56 = vpop.f32.mrb[38].mxu1 }
 0x12c   :  { %v5281_v51 = vpack.c.bf16 %v2925_v46, %v2924_v36  ;;  %v3053_v52 = vsel %vm2541_vm2, %v1989_v30, %v2797_v41  ;;  %v1490_v54 = vadd.f32 %v6977_v49, %v1489_v15  ;;  %vm2418_vm3 = vcmp.gt.f32.partialorder %v1498_v47, 0.0  ;;  %v1508_v60 = vpop.f32.mrb[39].mxu0  ;;  %v2020_v61 = vpop.f32.mrb[39].mxu1 }
 0x12d   :  { %5862 = vst [vmem:[%s8238_s3 + $0x78] sm:$0xff] %v5286_v44   ;;  %5926 = vst [vmem:[%s8238_s3 + $0x278] sm:$0xff] %v5606_v45   ;;  %v5601_v57 = vpack.c.bf16 %v3053_v52, %v3052_v37  ;;  %v2674_v58 = vmul.f32 0.2, %v1498_v47  ;;  %v2002_v59 = vadd.f32 %v6977_v49, %v2001_v16  ;;  %vm2546_vm4 = vcmp.gt.f32.partialorder %v2010_v53, 0.0 }
 0x12e   :  { %5861 = vst [vmem:[%s8238_s3 + $0x70] sm:$0xff] %v5281_v51   ;;  %v2802_v62 = vmul.f32 0.2, %v2010_v53  ;;  %vm2416_vm0 = vcmp.gt.f32.partialorder %v1490_v54, 0.0  ;;  %v2672_v63 = vmul.f32 0.2, %v1490_v54  ;;  %v1501_v2 = vadd.f32 %v6147_v20, %v6977_v49 }
 0x12f   :  { %5925 = vst [vmem:[%s8238_s3 + $0x270] sm:$0xff] %v5601_v57   ;;  %v2930_v0 = vsel %vm2418_vm3, %v1498_v47, %v2674_v58  ;;  %vm2544_vm5 = vcmp.gt.f32.partialorder %v2002_v59, 0.0  ;;  %v2800_v1 = vmul.f32 0.2, %v2002_v59  ;;  %v2013_v5 = vadd.f32 %v6275_v25, %v6977_v49  ;;  %v7270_v58 = vld [vmem:[%s8237_s2] ss:$0 sm:$0xff] }
 0x130   :  { %v3058_v3 = vsel %vm2546_vm4, %v2010_v53, %v2802_v62  ;;  %v2928_v4 = vsel %vm2416_vm0, %v1490_v54, %v2672_v63  ;;  %v1493_v6 = vadd.f32 %v6977_v49, %v1492_v26  ;;  %vm2419_vm6 = vcmp.gt.f32.partialorder %v1501_v2, 0.0 }
 0x131   :  { %v3056_v7 = vsel %vm2544_vm5, %v2002_v59, %v2800_v1  ;;  %v2675_v8 = vmul.f32 0.2, %v1501_v2  ;;  %v2005_v9 = vadd.f32 %v6977_v49, %v2004_v31  ;;  %vm2547_vm7 = vcmp.gt.f32.partialorder %v2013_v5, 0.0  ;;  %v6154_v15 = vpop.f32.mrb[40].mxu0  ;;  %v6282_v16 = vpop.f32.mrb[40].mxu1 }
 0x132   :  { %v2803_v10 = vmul.f32 0.2, %v2013_v5  ;;  %vm2417_vm8 = vcmp.gt.f32.partialorder %v1493_v6, 0.0  ;;  %v2673_v11 = vmul.f32 0.2, %v1493_v6  ;;  %v1514_v14 = vadd.f32 %v6150_v42, %v6977_v49  ;;  %v1521_v21 = vpop.f32.mrb[41].mxu0 }
 0x133   :  { %v2931_v12 = vsel %vm2419_vm6, %v1501_v2, %v2675_v8  ;;  %vm2545_vm9 = vcmp.gt.f32.partialorder %v2005_v9, 0.0  ;;  %v2801_v13 = vmul.f32 0.2, %v2005_v9  ;;  %v2026_v20 = vadd.f32 %v6278_v43, %v6977_v49  ;;  %v7232_v22 = vpop.f32.mrb[41].mxu1  ;;  %v7234_v26 = vpop.f32.mrb[42].mxu0 }
 0x134   :  { %v5296_v17 = vpack.c.bf16 %v2931_v12, %v2930_v0  ;;  %v3059_v18 = vsel %vm2547_vm7, %v2013_v5, %v2803_v10  ;;  %v2929_v19 = vsel %vm2417_vm8, %v1493_v6, %v2673_v11  ;;  %vm2422_vm10 = vcmp.gt.f32.partialorder %v1514_v14, 0.0  ;;  %v7236_v27 = vpop.f32.mrb[42].mxu1  ;;  %v7241_v31 = vpop.f32.mrb[43].mxu0 }
 0x135   :  { %v5616_v23 = vpack.c.bf16 %v3059_v18, %v3058_v3  ;;  %v5291_v24 = vpack.c.bf16 %v2929_v19, %v2928_v4  ;;  %v3057_v25 = vsel %vm2545_vm9, %v2005_v9, %v2801_v13  ;;  %v2678_v29 = vmul.f32 0.2, %v1514_v14  ;;  %v7255_v36 = vpop.f32.mrb[43].mxu1 }
 0x136   :  { %5864 = vst [vmem:[%s8238_s3 + $0x88] sm:$0xff] %v5296_v17   ;;  %v5611_v28 = vpack.c.bf16 %v3057_v25, %v3056_v7  ;;  %vm2550_vm11 = vcmp.gt.f32.partialorder %v2026_v20, 0.0  ;;  %v2806_v30 = vmul.f32 0.2, %v2026_v20  ;;  %v1506_v32 = vadd.f32 %v6977_v49, %v7207_v48 }
 0x137   :  { %5928 = vst [vmem:[%s8238_s3 + $0x288] sm:$0xff] %v5616_v23   ;;  %5863 = vst [vmem:[%s8238_s3 + $0x80] sm:$0xff] %v5291_v24   ;;  %v2018_v33 = vadd.f32 %v6977_v49, %v7209_v50  ;;  %v1517_v34 = vadd.f32 %v6151_v55, %v6977_v49  ;;  %v2029_v35 = vadd.f32 %v6279_v56, %v6977_v49 }
 0x138   :  { %5927 = vst [vmem:[%s8238_s3 + $0x280] sm:$0xff] %v5611_v28   ;;  %v2934_v37 = vsel %vm2422_vm10, %v1514_v14, %v2678_v29  ;;  %v3062_v38 = vsel %vm2550_vm11, %v2026_v20, %v2806_v30  ;;  %v1509_v39 = vadd.f32 %v6977_v49, %v1508_v60  ;;  %v2021_v40 = vadd.f32 %v6977_v49, %v2020_v61 }
 0x139   :  { %vm2420_vm12 = vcmp.gt.f32.partialorder %v1506_v32, 0.0  ;;  %v2676_v41 = vmul.f32 0.2, %v1506_v32  ;;  %vm2548_vm13 = vcmp.gt.f32.partialorder %v2018_v33, 0.0  ;;  %v2804_v42 = vmul.f32 0.2, %v2018_v33 }
 0x13a   :  { %vm2423_vm14 = vcmp.gt.f32.partialorder %v1517_v34, 0.0  ;;  %v2679_v43 = vmul.f32 0.2, %v1517_v34  ;;  %vm2551_vm15 = vcmp.gt.f32.partialorder %v2029_v35, 0.0  ;;  %v2807_v44 = vmul.f32 0.2, %v2029_v35 }
 0x13b   :  { %v2932_v45 = vsel %vm2420_vm12, %v1506_v32, %v2676_v41  ;;  %v3060_v46 = vsel %vm2548_vm13, %v2018_v33, %v2804_v42  ;;  %vm2421_vm1 = vcmp.gt.f32.partialorder %v1509_v39, 0.0  ;;  %v2677_v47 = vmul.f32 0.2, %v1509_v39  ;;  %v6158_v48 = vpop.f32.mrb[44].mxu0  ;;  %v6286_v50 = vpop.f32.mrb[44].mxu1 }
 0x13c   :  { %v2935_v51 = vsel %vm2423_vm14, %v1517_v34, %v2679_v43  ;;  %v3063_v52 = vsel %vm2551_vm15, %v2029_v35, %v2807_v44  ;;  %vm2549_vm2 = vcmp.gt.f32.partialorder %v2021_v40, 0.0  ;;  %v2805_v53 = vmul.f32 0.2, %v2021_v40  ;;  %v7263_v54 = vpop.f32.mrb[45].mxu0  ;;  %v7265_v49 = vpop.f32.mrb[45].mxu1 }
 0x13d   :  { %v5306_v55 = vpack.c.bf16 %v2935_v51, %v2934_v37  ;;  %v5626_v56 = vpack.c.bf16 %v3063_v52, %v3062_v38  ;;  %v2933_v57 = vsel %vm2421_vm1, %v1509_v39, %v2677_v47  ;;  %v1530_v59 = vadd.f32 %v7270_v58, %v6154_v15  ;;  %v7273_v60 = vpop.f32.mrb[46].mxu0  ;;  %v7275_v61 = vpop.f32.mrb[46].mxu1 }
 0x13e   :  { %v5301_v62 = vpack.c.bf16 %v2933_v57, %v2932_v45  ;;  %v3061_v63 = vsel %vm2549_vm2, %v2021_v40, %v2805_v53  ;;  %v2042_v0 = vadd.f32 %v7270_v58, %v6282_v16  ;;  %v1522_v1 = vadd.f32 %v7270_v58, %v1521_v21  ;;  %v7279_v2 = vpop.f32.mrb[47].mxu0  ;;  %v7281_v3 = vpop.f32.mrb[47].mxu1 }
 0x13f   :  { %5866 = vst [vmem:[%s8238_s3 + $0x98] sm:$0xff] %v5306_v55   ;;  %5930 = vst [vmem:[%s8238_s3 + $0x298] sm:$0xff] %v5626_v56   ;;  %v5621_v4 = vpack.c.bf16 %v3061_v63, %v3060_v46  ;;  %vm2426_vm3 = vcmp.gt.f32.partialorder %v1530_v59, 0.0  ;;  %v2682_v5 = vmul.f32 0.2, %v1530_v59  ;;  %v2034_v6 = vadd.f32 %v7270_v58, %v7232_v22 }
 0x140   :  { %5865 = vst [vmem:[%s8238_s3 + $0x90] sm:$0xff] %v5301_v62   ;;  %vm2554_vm4 = vcmp.gt.f32.partialorder %v2042_v0, 0.0  ;;  %v2810_v7 = vmul.f32 0.2, %v2042_v0  ;;  %vm2424_vm0 = vcmp.gt.f32.partialorder %v1522_v1, 0.0  ;;  %v1533_v11 = vadd.f32 %v7270_v58, %v7234_v26 }
 0x141   :  { %v2680_v8 = vmul.f32 0.2, %v1522_v1  ;;  %5929 = vst [vmem:[%s8238_s3 + $0x290] sm:$0xff] %v5621_v4   ;;  %v2938_v9 = vsel %vm2426_vm3, %v1530_v59, %v2682_v5  ;;  %vm2552_vm5 = vcmp.gt.f32.partialorder %v2034_v6, 0.0  ;;  %v2808_v10 = vmul.f32 0.2, %v2034_v6 }
 0x142   :  { %v3066_v12 = vsel %vm2554_vm4, %v2042_v0, %v2810_v7  ;;  %v2045_v14 = vadd.f32 %v7270_v58, %v7236_v27  ;;  %v1525_v15 = vadd.f32 %v7270_v58, %v7241_v31  ;;  %v7303_v16 = vpop.f32.mrb[48].mxu0  ;;  %v7305_v17 = vpop.f32.mrb[48].mxu1  ;;  %vm2427_vm6 = vcmp.gt.f32.partialorder %v1533_v11, 0.0 }
 0x143   :  { %v2936_v13 = vsel %vm2424_vm0, %v1522_v1, %v2680_v8  ;;  %v3064_v18 = vsel %vm2552_vm5, %v2034_v6, %v2808_v10  ;;  %v2683_v19 = vmul.f32 0.2, %v1533_v11  ;;  %v2037_v20 = vadd.f32 %v7270_v58, %v7255_v36  ;;  %v7309_v21 = vpop.f32.mrb[49].mxu0  ;;  %v7311_v22 = vpop.f32.mrb[49].mxu1 }
 0x144   :  { %vm2555_vm7 = vcmp.gt.f32.partialorder %v2045_v14, 0.0  ;;  %v2811_v23 = vmul.f32 0.2, %v2045_v14  ;;  %vm2425_vm8 = vcmp.gt.f32.partialorder %v1525_v15, 0.0  ;;  %v2681_v24 = vmul.f32 0.2, %v1525_v15 }
 0x145   :  { %v2939_v25 = vsel %vm2427_vm6, %v1533_v11, %v2683_v19  ;;  %vm2553_vm9 = vcmp.gt.f32.partialorder %v2037_v20, 0.0  ;;  %v2809_v26 = vmul.f32 0.2, %v2037_v20  ;;  %v1546_v27 = vadd.f32 %v7270_v58, %v6158_v48  ;;  %v7314_v28 = vpop.f32.mrb[50].mxu0  ;;  %v7316_v29 = vpop.f32.mrb[50].mxu1 }
 0x146   :  { %v5316_v30 = vpack.c.bf16 %v2939_v25, %v2938_v9  ;;  %v3067_v31 = vsel %vm2555_vm7, %v2045_v14, %v2811_v23  ;;  %v2937_v32 = vsel %vm2425_vm8, %v1525_v15, %v2681_v24  ;;  %v2058_v33 = vadd.f32 %v7270_v58, %v6286_v50  ;;  %v7319_v34 = vpop.f32.mrb[51].mxu0  ;;  %v7321_v35 = vpop.f32.mrb[51].mxu1 }
 0x147   :  { %v5636_v36 = vpack.c.bf16 %v3067_v31, %v3066_v12  ;;  %v5311_v37 = vpack.c.bf16 %v2937_v32, %v2936_v13  ;;  %v3065_v38 = vsel %vm2553_vm9, %v2037_v20, %v2809_v26  ;;  %vm2430_vm10 = vcmp.gt.f32.partialorder %v1546_v27, 0.0 }
 0x148   :  { %5868 = vst [vmem:[%s8238_s3 + $0xa8] sm:$0xff] %v5316_v30   ;;  %v5631_v39 = vpack.c.bf16 %v3065_v38, %v3064_v18  ;;  %v2686_v40 = vmul.f32 0.2, %v1546_v27  ;;  %vm2558_vm11 = vcmp.gt.f32.partialorder %v2058_v33, 0.0  ;;  %v2814_v41 = vmul.f32 0.2, %v2058_v33 }
 0x149   :  { %5932 = vst [vmem:[%s8238_s3 + $0x2a8] sm:$0xff] %v5636_v36   ;;  %5867 = vst [vmem:[%s8238_s3 + $0xa0] sm:$0xff] %v5311_v37   ;;  %v1538_v42 = vadd.f32 %v7270_v58, %v7263_v54  ;;  %v2050_v43 = vadd.f32 %v7270_v58, %v7265_v49  ;;  %v1549_v44 = vadd.f32 %v7270_v58, %v7273_v60  ;;  %v7347_v51 = vpop.f32.mrb[52].mxu0  ;;  %v7349_v52 = vpop.f32.mrb[52].mxu1 }
 0x14a   :  { %v2061_v45 = vadd.f32 %v7270_v58, %v7275_v61  ;;  %5931 = vst [vmem:[%s8238_s3 + $0x2a0] sm:$0xff] %v5631_v39   ;;  %v2942_v46 = vsel %vm2430_vm10, %v1546_v27, %v2686_v40  ;;  %v3070_v47 = vsel %vm2558_vm11, %v2058_v33, %v2814_v41  ;;  %v1541_v48 = vadd.f32 %v7270_v58, %v7279_v2  ;;  %v7351_v60 = vpop.f32.mrb[53].mxu0  ;;  %v7353_v61 = vpop.f32.mrb[53].mxu1 }
 0x14b   :  { %v2053_v50 = vadd.f32 %v7270_v58, %v7281_v3  ;;  %vm2428_vm12 = vcmp.gt.f32.partialorder %v1538_v42, 0.0  ;;  %v2684_v53 = vmul.f32 0.2, %v1538_v42  ;;  %vm2556_vm13 = vcmp.gt.f32.partialorder %v2050_v43, 0.0  ;;  %v7355_v1 = vpop.f32.mrb[54].mxu0  ;;  %v7357_v2 = vpop.f32.mrb[54].mxu1 }
 0x14c   :  { %v2812_v54 = vmul.f32 0.2, %v2050_v43  ;;  %vm2431_vm14 = vcmp.gt.f32.partialorder %v1549_v44, 0.0  ;;  %v2687_v49 = vmul.f32 0.2, %v1549_v44  ;;  %vm2559_vm15 = vcmp.gt.f32.partialorder %v2061_v45, 0.0 }
 0x14d   :  { %v2815_v55 = vmul.f32 0.2, %v2061_v45  ;;  %v2940_v56 = vsel %vm2428_vm12, %v1538_v42, %v2684_v53  ;;  %vm2429_vm1 = vcmp.gt.f32.partialorder %v1541_v48, 0.0  ;;  %v2685_v59 = vmul.f32 0.2, %v1541_v48  ;;  %v7361_v7 = vpop.f32.mrb[55].mxu0 }
 0x14e   :  { %v3068_v57 = vsel %vm2556_vm13, %v2050_v43, %v2812_v54  ;;  %v2943_v62 = vsel %vm2431_vm14, %v1549_v44, %v2687_v49  ;;  %vm2557_vm2 = vcmp.gt.f32.partialorder %v2053_v50, 0.0  ;;  %v2813_v0 = vmul.f32 0.2, %v2053_v50  ;;  %v7363_v8 = vpop.f32.mrb[55].mxu1 }
 0x14f   :  { %v3071_v63 = vsel %vm2559_vm15, %v2061_v45, %v2815_v55  ;;  %v5326_v3 = vpack.c.bf16 %v2943_v62, %v2942_v46  ;;  %v2941_v5 = vsel %vm2429_vm1, %v1541_v48, %v2685_v59  ;;  %v1562_v6 = vadd.f32 %v7270_v58, %v7303_v16 }
 0x150   :  { %v5646_v4 = vpack.c.bf16 %v3071_v63, %v3070_v47  ;;  %v5321_v9 = vpack.c.bf16 %v2941_v5, %v2940_v56  ;;  %v3069_v10 = vsel %vm2557_vm2, %v2053_v50, %v2813_v0  ;;  %v2074_v11 = vadd.f32 %v7270_v58, %v7305_v17 }
 0x151   :  { %v1554_v12 = vadd.f32 %v7270_v58, %v7309_v21  ;;  %5870 = vst [vmem:[%s8238_s3 + $0xb8] sm:$0xff] %v5326_v3   ;;  %v5641_v13 = vpack.c.bf16 %v3069_v10, %v3068_v57  ;;  %vm2434_vm3 = vcmp.gt.f32.partialorder %v1562_v6, 0.0  ;;  %v2690_v14 = vmul.f32 0.2, %v1562_v6  ;;  %v7385_v21 = vpop.f32.mrb[56].mxu0 }
 0x152   :  { %5934 = vst [vmem:[%s8238_s3 + $0x2b8] sm:$0xff] %v5646_v4   ;;  %v2066_v15 = vadd.f32 %v7270_v58, %v7311_v22  ;;  %5869 = vst [vmem:[%s8238_s3 + $0xb0] sm:$0xff] %v5321_v9   ;;  %vm2562_vm4 = vcmp.gt.f32.partialorder %v2074_v11, 0.0  ;;  %v2818_v16 = vmul.f32 0.2, %v2074_v11  ;;  %v1565_v20 = vadd.f32 %v7270_v58, %v7314_v28  ;;  %v7387_v22 = vpop.f32.mrb[56].mxu1 }
 0x153   :  { %vm2432_vm0 = vcmp.gt.f32.partialorder %v1554_v12, 0.0  ;;  %v2688_v17 = vmul.f32 0.2, %v1554_v12  ;;  %5933 = vst [vmem:[%s8238_s3 + $0x2b0] sm:$0xff] %v5641_v13   ;;  %v2946_v18 = vsel %vm2434_vm3, %v1562_v6, %v2690_v14  ;;  %v2077_v25 = vadd.f32 %v7270_v58, %v7316_v29  ;;  %v7393_v27 = vpop.f32.mrb[57].mxu0  ;;  %v7395_v30 = vpop.f32.mrb[57].mxu1 }
 0x154   :  { %vm2560_vm5 = vcmp.gt.f32.partialorder %v2066_v15, 0.0  ;;  %v2816_v19 = vmul.f32 0.2, %v2066_v15  ;;  %v3074_v23 = vsel %vm2562_vm4, %v2074_v11, %v2818_v16  ;;  %v1557_v26 = vadd.f32 %v7270_v58, %v7319_v34  ;;  %v7399_v33 = vpop.f32.mrb[58].mxu0  ;;  %v7401_v36 = vpop.f32.mrb[58].mxu1 }
 0x155   :  { %v2944_v24 = vsel %vm2432_vm0, %v1554_v12, %v2688_v17  ;;  %vm2435_vm6 = vcmp.gt.f32.partialorder %v1565_v20, 0.0  ;;  %v2691_v32 = vmul.f32 0.2, %v1565_v20  ;;  %v2069_v28 = vadd.f32 %v7270_v58, %v7321_v35  ;;  %v7405_v40 = vpop.f32.mrb[59].mxu0  ;;  %v7407_v41 = vpop.f32.mrb[59].mxu1 }
 0x156   :  { %v3072_v31 = vsel %vm2560_vm5, %v2066_v15, %v2816_v19  ;;  %vm2563_vm7 = vcmp.gt.f32.partialorder %v2077_v25, 0.0  ;;  %v2819_v37 = vmul.f32 0.2, %v2077_v25  ;;  %vm2433_vm8 = vcmp.gt.f32.partialorder %v1557_v26, 0.0 }
 0x157   :  { %v2689_v29 = vmul.f32 0.2, %v1557_v26  ;;  %v2947_v38 = vsel %vm2435_vm6, %v1565_v20, %v2691_v32  ;;  %vm2561_vm9 = vcmp.gt.f32.partialorder %v2069_v28, 0.0  ;;  %v2817_v34 = vmul.f32 0.2, %v2069_v28 }
 0x158   :  { %v1578_v39 = vadd.f32 %v7270_v58, %v7347_v51  ;;  %v5336_v42 = vpack.c.bf16 %v2947_v38, %v2946_v18  ;;  %v3075_v35 = vsel %vm2563_vm7, %v2077_v25, %v2819_v37  ;;  %v2090_v44 = vadd.f32 %v7270_v58, %v7349_v52 }
 0x159   :  { %v2945_v43 = vsel %vm2433_vm8, %v1557_v26, %v2689_v29  ;;  %v5656_v45 = vpack.c.bf16 %v3075_v35, %v3074_v23  ;;  %v3073_v47 = vsel %vm2561_vm9, %v2069_v28, %v2817_v34  ;;  %v7414_v53 = vpop.f32.mrb[60].mxu0  ;;  %v1570_v52 = vadd.f32 %v7270_v58, %v7351_v60  ;;  %v7430_v56 = vpop.f32.mrb[60].mxu1 }
 0x15a   :  { %v5331_v46 = vpack.c.bf16 %v2945_v43, %v2944_v24  ;;  %vm2438_vm10 = vcmp.gt.f32.partialorder %v1578_v39, 0.0  ;;  %5872 = vst [vmem:[%s8238_s3 + $0xc8] sm:$0xff] %v5336_v42   ;;  %v5651_v48 = vpack.c.bf16 %v3073_v47, %v3072_v31  ;;  %v2694_v50 = vmul.f32 0.2, %v1578_v39  ;;  %v7432_v57 = vpop.f32.mrb[61].mxu0  ;;  %v7442_v63 = vpop.f32.mrb[61].mxu1 }
 0x15b   :  { %vm2566_vm11 = vcmp.gt.f32.partialorder %v2090_v44, 0.0  ;;  %v2822_v51 = vmul.f32 0.2, %v2090_v44  ;;  %5936 = vst [vmem:[%s8238_s3 + $0x2c8] sm:$0xff] %v5656_v45   ;;  %v2082_v54 = vadd.f32 %v7270_v58, %v7353_v61  ;;  %v1581_v49 = vadd.f32 %v7270_v58, %v7355_v1  ;;  %v7444_v0 = vpop.f32.mrb[62].mxu0 }
 0x15c   :  { %5871 = vst [vmem:[%s8238_s3 + $0xc0] sm:$0xff] %v5331_v46   ;;  %v2093_v55 = vadd.f32 %v7270_v58, %v7357_v2  ;;  %5935 = vst [vmem:[%s8238_s3 + $0x2c0] sm:$0xff] %v5651_v48   ;;  %v2950_v59 = vsel %vm2438_vm10, %v1578_v39, %v2694_v50  ;;  %v1573_v61 = vadd.f32 %v7270_v58, %v7361_v7  ;;  %vm2436_vm12 = vcmp.gt.f32.partialorder %v1570_v52, 0.0  ;;  %v7446_v7 = vpop.f32.mrb[62].mxu1  ;;  %v7448_v10 = vpop.f32.mrb[63].mxu0 }
 0x15d   :  { %v3078_v60 = vsel %vm2566_vm11, %v2090_v44, %v2822_v51  ;;  %v2085_v62 = vadd.f32 %v7270_v58, %v7363_v8  ;;  %v2692_v1 = vmul.f32 0.2, %v1570_v52  ;;  %vm2564_vm13 = vcmp.gt.f32.partialorder %v2082_v54, 0.0  ;;  %v7450_v13 = vpop.f32.mrb[63].mxu1 }
 0x15e   :  { %v2820_v2 = vmul.f32 0.2, %v2082_v54  ;;  %vm2439_vm14 = vcmp.gt.f32.partialorder %v1581_v49, 0.0  ;;  %v2695_v3 = vmul.f32 0.2, %v1581_v49  ;;  %vm2567_vm15 = vcmp.gt.f32.partialorder %v2093_v55, 0.0 }
 0x15f   :  { %v2823_v4 = vmul.f32 0.2, %v2093_v55  ;;  %v2948_v5 = vsel %vm2436_vm12, %v1570_v52, %v2692_v1  ;;  %vm2437_vm1 = vcmp.gt.f32.partialorder %v1573_v61, 0.0  ;;  %v2693_v9 = vmul.f32 0.2, %v1573_v61 }
 0x160   :  { %v3076_v6 = vsel %vm2564_vm13, %v2082_v54, %v2820_v2  ;;  %v2951_v8 = vsel %vm2439_vm14, %v1581_v49, %v2695_v3  ;;  %vm2565_vm2 = vcmp.gt.f32.partialorder %v2085_v62, 0.0  ;;  %v2821_v12 = vmul.f32 0.2, %v2085_v62 }
 0x161   :  { %v3079_v11 = vsel %vm2567_vm15, %v2093_v55, %v2823_v4  ;;  %v5346_v14 = vpack.c.bf16 %v2951_v8, %v2950_v59  ;;  %v2949_v16 = vsel %vm2437_vm1, %v1573_v61, %v2693_v9  ;;  %v1594_v17 = vadd.f32 %v7270_v58, %v7385_v21  ;;  %v7458_v24 = vpop.f32.mrb[64].mxu0  ;;  %v7460_v25 = vpop.f32.mrb[64].mxu1 }
 0x162   :  { %v5666_v15 = vpack.c.bf16 %v3079_v11, %v3078_v60  ;;  %v5341_v18 = vpack.c.bf16 %v2949_v16, %v2948_v5  ;;  %v3077_v19 = vsel %vm2565_vm2, %v2085_v62, %v2821_v12  ;;  %v2106_v20 = vadd.f32 %v7270_v58, %v7387_v22  ;;  %v7470_v31 = vpop.f32.mrb[65].mxu0 }
 0x163   :  { %v1586_v23 = vadd.f32 %v7270_v58, %v7393_v27  ;;  %5874 = vst [vmem:[%s8238_s3 + $0xd8] sm:$0xff] %v5346_v14   ;;  %v5661_v21 = vpack.c.bf16 %v3077_v19, %v3076_v6  ;;  %vm2442_vm3 = vcmp.gt.f32.partialorder %v1594_v17, 0.0  ;;  %v2698_v26 = vmul.f32 0.2, %v1594_v17  ;;  %v7472_v27 = vpop.f32.mrb[65].mxu1  ;;  %v7482_v38 = vpop.f32.mrb[66].mxu0 }
 0x164   :  { %5938 = vst [vmem:[%s8238_s3 + $0x2d8] sm:$0xff] %v5666_v15   ;;  %v2098_v22 = vadd.f32 %v7270_v58, %v7395_v30  ;;  %5873 = vst [vmem:[%s8238_s3 + $0xd0] sm:$0xff] %v5341_v18   ;;  %vm2570_vm4 = vcmp.gt.f32.partialorder %v2106_v20, 0.0  ;;  %v2826_v32 = vmul.f32 0.2, %v2106_v20  ;;  %v1597_v30 = vadd.f32 %v7270_v58, %v7399_v33  ;;  %v7484_v34 = vpop.f32.mrb[66].mxu1 }
 0x165   :  { %vm2440_vm0 = vcmp.gt.f32.partialorder %v1586_v23, 0.0  ;;  %v2696_v28 = vmul.f32 0.2, %v1586_v23  ;;  %5937 = vst [vmem:[%s8238_s3 + $0x2d0] sm:$0xff] %v5661_v21   ;;  %v2954_v37 = vsel %vm2442_vm3, %v1594_v17, %v2698_v26  ;;  %v2109_v35 = vadd.f32 %v7270_v58, %v7401_v36  ;;  %v7490_v44 = vpop.f32.mrb[67].mxu0  ;;  %v7492_v45 = vpop.f32.mrb[67].mxu1 }
 0x166   :  { %vm2568_vm5 = vcmp.gt.f32.partialorder %v2098_v22, 0.0  ;;  %v2824_v29 = vmul.f32 0.2, %v2098_v22  ;;  %v3082_v39 = vsel %vm2570_vm4, %v2106_v20, %v2826_v32  ;;  %v1589_v43 = vadd.f32 %v7270_v58, %v7405_v40 }
 0x167   :  { %v2952_v42 = vsel %vm2440_vm0, %v1586_v23, %v2696_v28  ;;  %vm2443_vm6 = vcmp.gt.f32.partialorder %v1597_v30, 0.0  ;;  %v2699_v47 = vmul.f32 0.2, %v1597_v30  ;;  %v2101_v33 = vadd.f32 %v7270_v58, %v7407_v41 }
 0x168   :  { %v3080_v46 = vsel %vm2568_vm5, %v2098_v22, %v2824_v29  ;;  %vm2571_vm7 = vcmp.gt.f32.partialorder %v2109_v35, 0.0  ;;  %v2827_v48 = vmul.f32 0.2, %v2109_v35  ;;  %vm2441_vm8 = vcmp.gt.f32.partialorder %v1589_v43, 0.0 }
 0x169   :  { %v2697_v50 = vmul.f32 0.2, %v1589_v43  ;;  %v2955_v51 = vsel %vm2443_vm6, %v1597_v30, %v2699_v47  ;;  %vm2569_vm9 = vcmp.gt.f32.partialorder %v2101_v33, 0.0  ;;  %v2825_v36 = vmul.f32 0.2, %v2101_v33  ;;  %v7500_v59 = vpop.f32.mrb[68].mxu0 }
 0x16a   :  { %v1610_v40 = vadd.f32 %v7270_v58, %v7414_v53  ;;  %v5356_v52 = vpack.c.bf16 %v2955_v51, %v2954_v37  ;;  %v3083_v54 = vsel %vm2571_vm7, %v2109_v35, %v2827_v48  ;;  %v2122_v55 = vadd.f32 %v7270_v58, %v7430_v56  ;;  %v7502_v60 = vpop.f32.mrb[68].mxu1  ;;  %v7504_v1 = vpop.f32.mrb[69].mxu0 }
 0x16b   :  { %v2953_v49 = vsel %vm2441_vm8, %v1589_v43, %v2697_v50  ;;  %v5676_v41 = vpack.c.bf16 %v3083_v54, %v3082_v39  ;;  %v3081_v62 = vsel %vm2569_vm9, %v2101_v33, %v2825_v36  ;;  %v7506_v2 = vpop.f32.mrb[69].mxu1  ;;  %v7511_v4 = vpop.f32.mrb[70].mxu0  ;;  %v1602_v5 = vadd.f32 %v7270_v58, %v7432_v57 }
 0x16c   :  { %v5351_v61 = vpack.c.bf16 %v2953_v49, %v2952_v42  ;;  %vm2446_vm10 = vcmp.gt.f32.partialorder %v1610_v40, 0.0  ;;  %5876 = vst [vmem:[%s8238_s3 + $0xe8] sm:$0xff] %v5356_v52   ;;  %v5671_v53 = vpack.c.bf16 %v3081_v62, %v3080_v46  ;;  %v2702_v3 = vmul.f32 0.2, %v1610_v40  ;;  %v7527_v11 = vpop.f32.mrb[70].mxu1  ;;  %v7529_v12 = vpop.f32.mrb[71].mxu0 }
 0x16d   :  { %vm2574_vm11 = vcmp.gt.f32.partialorder %v2122_v55, 0.0  ;;  %v2830_v56 = vmul.f32 0.2, %v2122_v55  ;;  %5940 = vst [vmem:[%s8238_s3 + $0x2e8] sm:$0xff] %v5676_v41   ;;  %v2114_v6 = vadd.f32 %v7270_v58, %v7442_v63  ;;  %v1613_v9 = vadd.f32 %v7270_v58, %v7444_v0  ;;  %v7539_v15 = vpop.f32.mrb[71].mxu1 }
 0x16e   :  { %5875 = vst [vmem:[%s8238_s3 + $0xe0] sm:$0xff] %v5351_v61   ;;  %v2125_v8 = vadd.f32 %v7270_v58, %v7446_v7  ;;  %5939 = vst [vmem:[%s8238_s3 + $0x2e0] sm:$0xff] %v5671_v53   ;;  %v2958_v14 = vsel %vm2446_vm10, %v1610_v40, %v2702_v3  ;;  %v1605_v63 = vadd.f32 %v7270_v58, %v7448_v10  ;;  %vm2444_vm12 = vcmp.gt.f32.partialorder %v1602_v5, 0.0 }
 0x16f   :  { %v3086_v57 = vsel %vm2574_vm11, %v2122_v55, %v2830_v56  ;;  %v2117_v0 = vadd.f32 %v7270_v58, %v7450_v13  ;;  %v2700_v7 = vmul.f32 0.2, %v1602_v5  ;;  %vm2572_vm13 = vcmp.gt.f32.partialorder %v2114_v6, 0.0 }
 0x170   :  { %v2828_v16 = vmul.f32 0.2, %v2114_v6  ;;  %vm2447_vm14 = vcmp.gt.f32.partialorder %v1613_v9, 0.0  ;;  %v2703_v17 = vmul.f32 0.2, %v1613_v9  ;;  %vm2575_vm15 = vcmp.gt.f32.partialorder %v2125_v8, 0.0 }
 0x171   :  { %v2831_v18 = vmul.f32 0.2, %v2125_v8  ;;  %v2956_v19 = vsel %vm2444_vm12, %v1602_v5, %v2700_v7  ;;  %vm2445_vm1 = vcmp.gt.f32.partialorder %v1605_v63, 0.0  ;;  %v2701_v23 = vmul.f32 0.2, %v1605_v63  ;;  %v7541_v22 = vpop.f32.mrb[72].mxu0 }
 0x172   :  { %v3084_v20 = vsel %vm2572_vm13, %v2114_v6, %v2828_v16  ;;  %v2959_v21 = vsel %vm2447_vm14, %v1613_v9, %v2703_v17  ;;  %vm2573_vm2 = vcmp.gt.f32.partialorder %v2117_v0, 0.0  ;;  %v2829_v10 = vmul.f32 0.2, %v2117_v0  ;;  %v7543_v13 = vpop.f32.mrb[72].mxu1  ;;  %v7547_v30 = vpop.f32.mrb[73].mxu0 }
 0x173   :  { %v3087_v26 = vsel %vm2575_vm15, %v2125_v8, %v2831_v18  ;;  %v5366_v32 = vpack.c.bf16 %v2959_v21, %v2958_v14  ;;  %v2957_v37 = vsel %vm2445_vm1, %v1605_v63, %v2701_v23  ;;  %v1626_v29 = vadd.f32 %v7270_v58, %v7458_v24  ;;  %v7549_v39 = vpop.f32.mrb[73].mxu1  ;;  %v7555_v47 = vpop.f32.mrb[74].mxu0 }
 0x174   :  { %v5686_v28 = vpack.c.bf16 %v3087_v26, %v3086_v57  ;;  %v5361_v42 = vpack.c.bf16 %v2957_v37, %v2956_v19  ;;  %v3085_v35 = vsel %vm2573_vm2, %v2117_v0, %v2829_v10  ;;  %v2138_v43 = vadd.f32 %v7270_v58, %v7460_v25  ;;  %v7557_v33 = vpop.f32.mrb[74].mxu1  ;;  %v7567_v50 = vpop.f32.mrb[75].mxu0 }
 0x175   :  { %v1618_v46 = vadd.f32 %v7270_v58, %v7470_v31  ;;  %5878 = vst [vmem:[%s8238_s3 + $0xf8] sm:$0xff] %v5366_v32   ;;  %v5681_v24 = vpack.c.bf16 %v3085_v35, %v3084_v20  ;;  %vm2450_vm3 = vcmp.gt.f32.partialorder %v1626_v29, 0.0  ;;  %v2706_v48 = vmul.f32 0.2, %v1626_v29  ;;  %v7569_v31 = vpop.f32.mrb[75].mxu1 }
 0x176   :  { %5942 = vst [vmem:[%s8238_s3 + $0x2f8] sm:$0xff] %v5686_v28   ;;  %v2130_v25 = vadd.f32 %v7270_v58, %v7472_v27  ;;  %5877 = vst [vmem:[%s8238_s3 + $0xf0] sm:$0xff] %v5361_v42   ;;  %vm2578_vm4 = vcmp.gt.f32.partialorder %v2138_v43, 0.0  ;;  %v2834_v51 = vmul.f32 0.2, %v2138_v43  ;;  %v1629_v27 = vadd.f32 %v7270_v58, %v7482_v38 }
 0x177   :  { %vm2448_vm0 = vcmp.gt.f32.partialorder %v1618_v46, 0.0  ;;  %v2704_v36 = vmul.f32 0.2, %v1618_v46  ;;  %5941 = vst [vmem:[%s8238_s3 + $0x2f0] sm:$0xff] %v5681_v24   ;;  %v2962_v40 = vsel %vm2450_vm3, %v1626_v29, %v2706_v48  ;;  %v2141_v55 = vadd.f32 %v7270_v58, %v7484_v34 }
 0x178   :  { %vm2576_vm5 = vcmp.gt.f32.partialorder %v2130_v25, 0.0  ;;  %v2832_v52 = vmul.f32 0.2, %v2130_v25  ;;  %v3090_v54 = vsel %vm2578_vm4, %v2138_v43, %v2834_v51  ;;  %v1621_v41 = vadd.f32 %v7270_v58, %v7490_v44 }
 0x179   :  { %v2960_v49 = vsel %vm2448_vm0, %v1618_v46, %v2704_v36  ;;  %vm2451_vm6 = vcmp.gt.f32.partialorder %v1629_v27, 0.0  ;;  %v2707_v62 = vmul.f32 0.2, %v1629_v27  ;;  %v2133_v53 = vadd.f32 %v7270_v58, %v7492_v45  ;;  %v7587_v34 = vpop.f32.mrb[76].mxu0  ;;  %v7589_v9 = vpop.f32.mrb[76].mxu1 }
 0x17a   :  { %v3088_v61 = vsel %vm2576_vm5, %v2130_v25, %v2832_v52  ;;  %vm2579_vm7 = vcmp.gt.f32.partialorder %v2141_v55, 0.0  ;;  %v2835_v3 = vmul.f32 0.2, %v2141_v55  ;;  %vm2449_vm8 = vcmp.gt.f32.partialorder %v1621_v41, 0.0  ;;  %v7593_v57 = vpop.f32.mrb[77].mxu0  ;;  %v7595_v63 = vpop.f32.mrb[77].mxu1 }
 0x17b   :  { %v2705_v56 = vmul.f32 0.2, %v1621_v41  ;;  %v2963_v5 = vsel %vm2451_vm6, %v1629_v27, %v2707_v62  ;;  %vm2577_vm9 = vcmp.gt.f32.partialorder %v2133_v53, 0.0  ;;  %v2833_v38 = vmul.f32 0.2, %v2133_v53  ;;  %v7597_v17 = vpop.f32.mrb[78].mxu0 }
 0x17c   :  { %v1642_v6 = vadd.f32 %v7270_v58, %v7500_v59  ;;  %v5376_v44 = vpack.c.bf16 %v2963_v5, %v2962_v40  ;;  %v3091_v8 = vsel %vm2579_vm7, %v2141_v55, %v2835_v3  ;;  %v2154_v45 = vadd.f32 %v7270_v58, %v7502_v60  ;;  %v7599_v59 = vpop.f32.mrb[78].mxu1  ;;  %v7604_v20 = vpop.f32.mrb[79].mxu0 }
 0x17d   :  { %v2961_v14 = vsel %vm2449_vm8, %v1621_v41, %v2705_v56  ;;  %v5696_v0 = vpack.c.bf16 %v3091_v8, %v3090_v54  ;;  %v3089_v16 = vsel %vm2577_vm9, %v2133_v53, %v2833_v38  ;;  %v1634_v23 = vadd.f32 %v7270_v58, %v7504_v1  ;;  %v7620_v32 = vpop.f32.mrb[79].mxu1 }
 0x17e   :  { %v5371_v7 = vpack.c.bf16 %v2961_v14, %v2960_v49  ;;  %vm2454_vm10 = vcmp.gt.f32.partialorder %v1642_v6, 0.0  ;;  %5880 = vst [vmem:[%s8238_s3 + $0x108] sm:$0xff] %v5376_v44   ;;  %v5691_v18 = vpack.c.bf16 %v3089_v16, %v3088_v61  ;;  %v2710_v19 = vmul.f32 0.2, %v1642_v6 }
 0x17f   :  { %vm2582_vm11 = vcmp.gt.f32.partialorder %v2154_v45, 0.0  ;;  %v2838_v60 = vmul.f32 0.2, %v2154_v45  ;;  %5944 = vst [vmem:[%s8238_s3 + $0x308] sm:$0xff] %v5696_v0   ;;  %v2146_v21 = vadd.f32 %v7270_v58, %v7506_v2  ;;  %v1645_v26 = vadd.f32 %v7270_v58, %v7511_v4 }
 0x180   :  { %5879 = vst [vmem:[%s8238_s3 + $0x100] sm:$0xff] %v5371_v7   ;;  %v2157_v10 = vadd.f32 %v7270_v58, %v7527_v11  ;;  %5943 = vst [vmem:[%s8238_s3 + $0x300] sm:$0xff] %v5691_v18   ;;  %v2966_v28 = vsel %vm2454_vm10, %v1642_v6, %v2710_v19  ;;  %v1637_v1 = vadd.f32 %v7270_v58, %v7529_v12  ;;  %vm2452_vm12 = vcmp.gt.f32.partialorder %v1634_v23, 0.0 }
 0x181   :  { %v3094_v37 = vsel %vm2582_vm11, %v2154_v45, %v2838_v60  ;;  %v2149_v2 = vadd.f32 %v7270_v58, %v7539_v15  ;;  %v2708_v4 = vmul.f32 0.2, %v1634_v23  ;;  %vm2580_vm13 = vcmp.gt.f32.partialorder %v2146_v21, 0.0  ;;  %v7630_v24 = vpop.f32.mrb[80].mxu0  ;;  %v7632_v48 = vpop.f32.mrb[80].mxu1 }
 0x182   :  { %v2836_v29 = vmul.f32 0.2, %v2146_v21  ;;  %vm2455_vm14 = vcmp.gt.f32.partialorder %v1645_v26, 0.0  ;;  %v2711_v11 = vmul.f32 0.2, %v1645_v26  ;;  %vm2583_vm15 = vcmp.gt.f32.partialorder %v2157_v10, 0.0 }
 0x183   :  { %v2839_v42 = vmul.f32 0.2, %v2157_v10  ;;  %v2964_v35 = vsel %vm2452_vm12, %v1634_v23, %v2708_v4  ;;  %vm2453_vm1 = vcmp.gt.f32.partialorder %v1637_v1, 0.0  ;;  %v2709_v46 = vmul.f32 0.2, %v1637_v1  ;;  %v7634_v51 = vpop.f32.mrb[81].mxu0 }
 0x184   :  { %v3092_v43 = vsel %vm2580_vm13, %v2146_v21, %v2836_v29  ;;  %v2967_v12 = vsel %vm2455_vm14, %v1645_v26, %v2711_v11  ;;  %vm2581_vm2 = vcmp.gt.f32.partialorder %v2149_v2, 0.0  ;;  %v2837_v15 = vmul.f32 0.2, %v2149_v2  ;;  %v7636_v36 = vpop.f32.mrb[81].mxu1  ;;  %v7640_v49 = vpop.f32.mrb[82].mxu0 }
 0x185   :  { %v3095_v25 = vsel %vm2583_vm15, %v2157_v10, %v2839_v42  ;;  %v5386_v40 = vpack.c.bf16 %v2967_v12, %v2966_v28  ;;  %v2965_v27 = vsel %vm2453_vm1, %v1637_v1, %v2709_v46  ;;  %v1658_v54 = vadd.f32 %v7270_v58, %v7541_v22  ;;  %v7642_v55 = vpop.f32.mrb[82].mxu1  ;;  %v7648_v3 = vpop.f32.mrb[83].mxu0 }
 0x186   :  { %v5706_v52 = vpack.c.bf16 %v3095_v25, %v3094_v37  ;;  %v5381_v41 = vpack.c.bf16 %v2965_v27, %v2964_v35  ;;  %v3093_v61 = vsel %vm2581_vm2, %v2149_v2, %v2837_v15  ;;  %v2170_v62 = vadd.f32 %v7270_v58, %v7543_v13  ;;  %v7650_v56 = vpop.f32.mrb[83].mxu1 }
 0x187   :  { %v1650_v53 = vadd.f32 %v7270_v58, %v7547_v30  ;;  %5882 = vst [vmem:[%s8238_s3 + $0x118] sm:$0xff] %v5386_v40   ;;  %v5701_v22 = vpack.c.bf16 %v3093_v61, %v3092_v43  ;;  %vm2458_vm3 = vcmp.gt.f32.partialorder %v1658_v54, 0.0  ;;  %v2714_v5 = vmul.f32 0.2, %v1658_v54 }
 0x188   :  { %5946 = vst [vmem:[%s8238_s3 + $0x318] sm:$0xff] %v5706_v52   ;;  %v2162_v13 = vadd.f32 %v7270_v58, %v7549_v39  ;;  %5881 = vst [vmem:[%s8238_s3 + $0x110] sm:$0xff] %v5381_v41   ;;  %vm2586_vm4 = vcmp.gt.f32.partialorder %v2170_v62, 0.0  ;;  %v2842_v30 = vmul.f32 0.2, %v2170_v62  ;;  %v1661_v8 = vadd.f32 %v7270_v58, %v7555_v47 }
 0x189   :  { %vm2456_vm0 = vcmp.gt.f32.partialorder %v1650_v53, 0.0  ;;  %v2712_v38 = vmul.f32 0.2, %v1650_v53  ;;  %5945 = vst [vmem:[%s8238_s3 + $0x310] sm:$0xff] %v5701_v22   ;;  %v2970_v6 = vsel %vm2458_vm3, %v1658_v54, %v2714_v5  ;;  %v2173_v45 = vadd.f32 %v7270_v58, %v7557_v33  ;;  %v7672_v7 = vpop.f32.mrb[84].mxu0  ;;  %v7674_v16 = vpop.f32.mrb[84].mxu1 }
 0x18a   :  { %vm2584_vm5 = vcmp.gt.f32.partialorder %v2162_v13, 0.0  ;;  %v2840_v44 = vmul.f32 0.2, %v2162_v13  ;;  %v3098_v14 = vsel %vm2586_vm4, %v2170_v62, %v2842_v30  ;;  %v1653_v0 = vadd.f32 %v7270_v58, %v7567_v50  ;;  %v7678_v23 = vpop.f32.mrb[85].mxu0  ;;  %v7680_v47 = vpop.f32.mrb[85].mxu1 }
 0x18b   :  { %v2968_v39 = vsel %vm2456_vm0, %v1650_v53, %v2712_v38  ;;  %vm2459_vm6 = vcmp.gt.f32.partialorder %v1661_v8, 0.0  ;;  %v2715_v19 = vmul.f32 0.2, %v1661_v8  ;;  %v2165_v60 = vadd.f32 %v7270_v58, %v7569_v31  ;;  %v7684_v28 = vpop.f32.mrb[86].mxu0  ;;  %v7686_v37 = vpop.f32.mrb[86].mxu1 }
 0x18c   :  { %v3096_v18 = vsel %vm2584_vm5, %v2162_v13, %v2840_v44  ;;  %vm2587_vm7 = vcmp.gt.f32.partialorder %v2173_v45, 0.0  ;;  %v2843_v21 = vmul.f32 0.2, %v2173_v45  ;;  %vm2457_vm8 = vcmp.gt.f32.partialorder %v1653_v0, 0.0  ;;  %v7690_v29 = vpop.f32.mrb[87].mxu0  ;;  %v7692_v11 = vpop.f32.mrb[87].mxu1 }
 0x18d   :  { %v2713_v33 = vmul.f32 0.2, %v1653_v0  ;;  %v2971_v26 = vsel %vm2459_vm6, %v1661_v8, %v2715_v19  ;;  %vm2585_vm9 = vcmp.gt.f32.partialorder %v2165_v60, 0.0  ;;  %v2841_v50 = vmul.f32 0.2, %v2165_v60 }
 0x18e   :  { %v1674_v10 = vadd.f32 %v7270_v58, %v7587_v34  ;;  %v5396_v1 = vpack.c.bf16 %v2971_v26, %v2970_v6  ;;  %v3099_v31 = vsel %vm2587_vm7, %v2173_v45, %v2843_v21  ;;  %v2186_v4 = vadd.f32 %v7270_v58, %v7589_v9 }
 0x18f   :  { %v2969_v2 = vsel %vm2457_vm8, %v1653_v0, %v2713_v33  ;;  %v5716_v42 = vpack.c.bf16 %v3099_v31, %v3098_v14  ;;  %v3097_v43 = vsel %vm2585_vm9, %v2165_v60, %v2841_v50  ;;  %v1666_v9 = vadd.f32 %v7270_v58, %v7593_v57  ;;  %v7757_v31 = vld [vmem:[%s8237_s2] ss:$0 sm:$0xff] }
 0x190   :  { %v5391_v35 = vpack.c.bf16 %v2969_v2, %v2968_v39  ;;  %vm2462_vm10 = vcmp.gt.f32.partialorder %v1674_v10, 0.0  ;;  %5884 = vst [vmem:[%s8238_s3 + $0x128] sm:$0xff] %v5396_v1   ;;  %v5711_v34 = vpack.c.bf16 %v3097_v43, %v3096_v18  ;;  %v2718_v46 = vmul.f32 0.2, %v1674_v10 }
 0x191   :  { %vm2590_vm11 = vcmp.gt.f32.partialorder %v2186_v4, 0.0  ;;  %v2846_v12 = vmul.f32 0.2, %v2186_v4  ;;  %5948 = vst [vmem:[%s8238_s3 + $0x328] sm:$0xff] %v5716_v42   ;;  %v2178_v25 = vadd.f32 %v7270_v58, %v7595_v63  ;;  %v1677_v15 = vadd.f32 %v7270_v58, %v7597_v17  ;;  %v7718_v41 = vpop.f32.mrb[88].mxu0  ;;  %v7720_v63 = vpop.f32.mrb[88].mxu1 }
 0x192   :  { %5883 = vst [vmem:[%s8238_s3 + $0x120] sm:$0xff] %v5391_v35   ;;  %v2189_v40 = vadd.f32 %v7270_v58, %v7599_v59  ;;  %5947 = vst [vmem:[%s8238_s3 + $0x320] sm:$0xff] %v5711_v34   ;;  %v2974_v52 = vsel %vm2462_vm10, %v1674_v10, %v2718_v46  ;;  %v1669_v54 = vadd.f32 %v7270_v58, %v7604_v20  ;;  %vm2460_vm12 = vcmp.gt.f32.partialorder %v1666_v9, 0.0  ;;  %v7722_v20 = vpop.f32.mrb[89].mxu0  ;;  %v7724_v13 = vpop.f32.mrb[89].mxu1 }
 0x193   :  { %v3102_v27 = vsel %vm2590_vm11, %v2186_v4, %v2846_v12  ;;  %v2181_v57 = vadd.f32 %v7270_v58, %v7620_v32  ;;  %v2716_v17 = vmul.f32 0.2, %v1666_v9  ;;  %vm2588_vm13 = vcmp.gt.f32.partialorder %v2178_v25, 0.0  ;;  %v7726_v6 = vpop.f32.mrb[90].mxu0  ;;  %v7728_v44 = vpop.f32.mrb[90].mxu1 }
 0x194   :  { %v2844_v59 = vmul.f32 0.2, %v2178_v25  ;;  %vm2463_vm14 = vcmp.gt.f32.partialorder %v1677_v15, 0.0  ;;  %v2719_v61 = vmul.f32 0.2, %v1677_v15  ;;  %vm2591_vm15 = vcmp.gt.f32.partialorder %v2189_v40, 0.0 }
 0x195   :  { %v2847_v62 = vmul.f32 0.2, %v2189_v40  ;;  %v2972_v53 = vsel %vm2460_vm12, %v1666_v9, %v2716_v17  ;;  %vm2461_vm1 = vcmp.gt.f32.partialorder %v1669_v54, 0.0  ;;  %v2717_v5 = vmul.f32 0.2, %v1669_v54  ;;  %v7732_v0 = vpop.f32.mrb[91].mxu0 }
 0x196   :  { %v3100_v22 = vsel %vm2588_vm13, %v2178_v25, %v2844_v59  ;;  %v2975_v32 = vsel %vm2463_vm14, %v1677_v15, %v2719_v61  ;;  %vm2589_vm2 = vcmp.gt.f32.partialorder %v2181_v57, 0.0  ;;  %v2845_v38 = vmul.f32 0.2, %v2181_v57  ;;  %v7734_v18 = vpop.f32.mrb[91].mxu1 }
 0x197   :  { %v3103_v30 = vsel %vm2591_vm15, %v2189_v40, %v2847_v62  ;;  %v5406_v8 = vpack.c.bf16 %v2975_v32, %v2974_v52  ;;  %v2973_v39 = vsel %vm2461_vm1, %v1669_v54, %v2717_v5  ;;  %v1690_v45 = vadd.f32 %v7270_v58, %v7630_v24 }
 0x198   :  { %v5726_v14 = vpack.c.bf16 %v3103_v30, %v3102_v27  ;;  %v5401_v19 = vpack.c.bf16 %v2973_v39, %v2972_v53  ;;  %v3101_v60 = vsel %vm2589_vm2, %v2181_v57, %v2845_v38  ;;  %v2202_v21 = vadd.f32 %v7270_v58, %v7632_v48 }
 0x199   :  { %v1682_v33 = vadd.f32 %v7270_v58, %v7634_v51  ;;  %5886 = vst [vmem:[%s8238_s3 + $0x138] sm:$0xff] %v5406_v8   ;;  %v5721_v24 = vpack.c.bf16 %v3101_v60, %v3100_v22  ;;  %vm2466_vm3 = vcmp.gt.f32.partialorder %v1690_v45, 0.0  ;;  %v2722_v26 = vmul.f32 0.2, %v1690_v45  ;;  %v7763_v2 = vpop.f32.mrb[92].mxu1 }
 0x19a   :  { %5950 = vst [vmem:[%s8238_s3 + $0x338] sm:$0xff] %v5726_v14   ;;  %v2194_v50 = vadd.f32 %v7270_v58, %v7636_v36  ;;  %5885 = vst [vmem:[%s8238_s3 + $0x130] sm:$0xff] %v5401_v19   ;;  %vm2594_vm4 = vcmp.gt.f32.partialorder %v2202_v21, 0.0  ;;  %v2850_v48 = vmul.f32 0.2, %v2202_v21  ;;  %v1693_v58 = vadd.f32 %v7757_v31, %v7640_v49  ;;  %v7761_v36 = vpop.f32.mrb[92].mxu0 }
 0x19b   :  { %vm2464_vm0 = vcmp.gt.f32.partialorder %v1682_v33, 0.0  ;;  %v2720_v51 = vmul.f32 0.2, %v1682_v33  ;;  %5949 = vst [vmem:[%s8238_s3 + $0x330] sm:$0xff] %v5721_v24   ;;  %v2978_v10 = vsel %vm2466_vm3, %v1690_v45, %v2722_v26  ;;  %v2205_v35 = vadd.f32 %v7757_v31, %v7642_v55  ;;  %v7769_v34 = vpop.f32.mrb[93].mxu0  ;;  %v7771_v46 = vpop.f32.mrb[93].mxu1 }
 0x19c   :  { %vm2592_vm5 = vcmp.gt.f32.partialorder %v2194_v50, 0.0  ;;  %v2848_v1 = vmul.f32 0.2, %v2194_v50  ;;  %v3106_v4 = vsel %vm2594_vm4, %v2202_v21, %v2850_v48  ;;  %v1685_v43 = vadd.f32 %v7757_v31, %v7648_v3  ;;  %v7775_v25 = vpop.f32.mrb[94].mxu0  ;;  %v7777_v15 = vpop.f32.mrb[94].mxu1 }
 0x19d   :  { %v2976_v42 = vsel %vm2464_vm0, %v1682_v33, %v2720_v51  ;;  %vm2467_vm6 = vcmp.gt.f32.partialorder %v1693_v58, 0.0  ;;  %v2723_v9 = vmul.f32 0.2, %v1693_v58  ;;  %v2197_v49 = vadd.f32 %v7757_v31, %v7650_v56  ;;  %v7781_v54 = vpop.f32.mrb[95].mxu0  ;;  %v7783_v57 = vpop.f32.mrb[95].mxu1 }
 0x19e   :  { %v3104_v12 = vsel %vm2592_vm5, %v2194_v50, %v2848_v1  ;;  %vm2595_vm7 = vcmp.gt.f32.partialorder %v2205_v35, 0.0  ;;  %v2851_v40 = vmul.f32 0.2, %v2205_v35  ;;  %vm2465_vm8 = vcmp.gt.f32.partialorder %v1685_v43, 0.0 }
 0x19f   :  { %v2721_v55 = vmul.f32 0.2, %v1685_v43  ;;  %v2979_v52 = vsel %vm2467_vm6, %v1693_v58, %v2723_v9  ;;  %vm2593_vm9 = vcmp.gt.f32.partialorder %v2197_v49, 0.0  ;;  %v2849_v3 = vmul.f32 0.2, %v2197_v49 }
 0x1a0   :  { %v1706_v27 = vadd.f32 %v7757_v31, %v7672_v7  ;;  %v5416_v17 = vpack.c.bf16 %v2979_v52, %v2978_v10  ;;  %v3107_v56 = vsel %vm2595_vm7, %v2205_v35, %v2851_v40  ;;  %v2218_v61 = vadd.f32 %v7757_v31, %v7674_v16 }
 0x1a1   :  { %v2977_v59 = vsel %vm2465_vm8, %v1685_v43, %v2721_v55  ;;  %v5736_v62 = vpack.c.bf16 %v3107_v56, %v3106_v4  ;;  %v3105_v22 = vsel %vm2593_vm9, %v2197_v49, %v2849_v3  ;;  %v7790_v30 = vpop.f32.mrb[96].mxu0  ;;  %v1698_v16 = vadd.f32 %v7757_v31, %v7678_v23  ;;  %v7806_v39 = vpop.f32.mrb[96].mxu1 }
 0x1a2   :  { %v5411_v53 = vpack.c.bf16 %v2977_v59, %v2976_v42  ;;  %vm2470_vm10 = vcmp.gt.f32.partialorder %v1706_v27, 0.0  ;;  %5888 = vst [vmem:[%s8238_s3 + $0x148] sm:$0xff] %v5416_v17   ;;  %v5731_v5 = vpack.c.bf16 %v3105_v22, %v3104_v12  ;;  %v2726_v7 = vmul.f32 0.2, %v1706_v27  ;;  %v7808_v45 = vpop.f32.mrb[97].mxu0  ;;  %v7818_v60 = vpop.f32.mrb[97].mxu1 }
 0x1a3   :  { %vm2598_vm11 = vcmp.gt.f32.partialorder %v2218_v61, 0.0  ;;  %v2854_v32 = vmul.f32 0.2, %v2218_v61  ;;  %5952 = vst [vmem:[%s8238_s3 + $0x348] sm:$0xff] %v5736_v62   ;;  %v2210_v38 = vadd.f32 %v7757_v31, %v7680_v47  ;;  %v1709_v8 = vadd.f32 %v7757_v31, %v7684_v28 }
 0x1a4   :  { %5887 = vst [vmem:[%s8238_s3 + $0x140] sm:$0xff] %v5411_v53   ;;  %v2221_v14 = vadd.f32 %v7757_v31, %v7686_v37  ;;  %5951 = vst [vmem:[%s8238_s3 + $0x340] sm:$0xff] %v5731_v5   ;;  %v2982_v19 = vsel %vm2470_vm10, %v1706_v27, %v2726_v7  ;;  %v1701_v47 = vadd.f32 %v7757_v31, %v7690_v29  ;;  %v7820_v37 = vpop.f32.mrb[98].mxu0  ;;  %vm2468_vm12 = vcmp.gt.f32.partialorder %v1698_v16, 0.0  ;;  %v7822_v29 = vpop.f32.mrb[98].mxu1 }
 0x1a5   :  { %v3110_v23 = vsel %vm2598_vm11, %v2218_v61, %v2854_v32  ;;  %v2213_v28 = vadd.f32 %v7757_v31, %v7692_v11  ;;  %v2724_v21 = vmul.f32 0.2, %v1698_v16  ;;  %vm2596_vm13 = vcmp.gt.f32.partialorder %v2210_v38, 0.0  ;;  %v7824_v10 = vpop.f32.mrb[99].mxu0  ;;  %v7826_v4 = vpop.f32.mrb[99].mxu1 }
 0x1a6   :  { %v2852_v33 = vmul.f32 0.2, %v2210_v38  ;;  %vm2471_vm14 = vcmp.gt.f32.partialorder %v1709_v8, 0.0  ;;  %v2727_v24 = vmul.f32 0.2, %v1709_v8  ;;  %vm2599_vm15 = vcmp.gt.f32.partialorder %v2221_v14, 0.0 }
 0x1a7   :  { %v2855_v26 = vmul.f32 0.2, %v2221_v14  ;;  %v2980_v50 = vsel %vm2468_vm12, %v1698_v16, %v2724_v21  ;;  %vm2469_vm1 = vcmp.gt.f32.partialorder %v1701_v47, 0.0  ;;  %v2725_v51 = vmul.f32 0.2, %v1701_v47 }
 0x1a8   :  { %v3108_v48 = vsel %vm2596_vm13, %v2210_v38, %v2852_v33  ;;  %v2983_v11 = vsel %vm2471_vm14, %v1709_v8, %v2727_v24  ;;  %vm2597_vm2 = vcmp.gt.f32.partialorder %v2213_v28, 0.0  ;;  %v2853_v58 = vmul.f32 0.2, %v2213_v28 }
 0x1a9   :  { %v3111_v1 = vsel %vm2599_vm15, %v2221_v14, %v2855_v26  ;;  %v5426_v42 = vpack.c.bf16 %v2983_v11, %v2982_v19  ;;  %v2981_v43 = vsel %vm2469_vm1, %v1701_v47, %v2725_v51  ;;  %v1722_v12 = vadd.f32 %v7757_v31, %v7718_v41  ;;  %v7834_v52 = vpop.f32.mrb[100].mxu0  ;;  %v7836_v3 = vpop.f32.mrb[100].mxu1 }
 0x1aa   :  { %v5746_v35 = vpack.c.bf16 %v3111_v1, %v3110_v23  ;;  %v5421_v9 = vpack.c.bf16 %v2981_v43, %v2980_v50  ;;  %v3109_v49 = vsel %vm2597_vm2, %v2213_v28, %v2853_v58  ;;  %v2234_v40 = vadd.f32 %v7757_v31, %v7720_v63  ;;  %v7846_v17 = vpop.f32.mrb[101].mxu0 }
 0x1ab   :  { %v1714_v55 = vadd.f32 %v7757_v31, %v7722_v20  ;;  %5890 = vst [vmem:[%s8238_s3 + $0x158] sm:$0xff] %v5426_v42   ;;  %v5741_v41 = vpack.c.bf16 %v3109_v49, %v3108_v48  ;;  %vm2474_vm3 = vcmp.gt.f32.partialorder %v1722_v12, 0.0  ;;  %v2730_v27 = vmul.f32 0.2, %v1722_v12  ;;  %v7848_v20 = vpop.f32.mrb[101].mxu1  ;;  %v7858_v53 = vpop.f32.mrb[102].mxu0 }
 0x1ac   :  { %5954 = vst [vmem:[%s8238_s3 + $0x358] sm:$0xff] %v5746_v35   ;;  %v2226_v63 = vadd.f32 %v7757_v31, %v7724_v13  ;;  %5889 = vst [vmem:[%s8238_s3 + $0x150] sm:$0xff] %v5421_v9   ;;  %vm2602_vm4 = vcmp.gt.f32.partialorder %v2234_v40, 0.0  ;;  %v2858_v56 = vmul.f32 0.2, %v2234_v40  ;;  %v1725_v13 = vadd.f32 %v7757_v31, %v7726_v6  ;;  %v7860_v22 = vpop.f32.mrb[102].mxu1 }
 0x1ad   :  { %vm2472_vm0 = vcmp.gt.f32.partialorder %v1714_v55, 0.0  ;;  %v2728_v59 = vmul.f32 0.2, %v1714_v55  ;;  %5953 = vst [vmem:[%s8238_s3 + $0x350] sm:$0xff] %v5741_v41   ;;  %v2986_v61 = vsel %vm2474_vm3, %v1722_v12, %v2730_v27  ;;  %v2237_v32 = vadd.f32 %v7757_v31, %v7728_v44  ;;  %v7866_v38 = vpop.f32.mrb[103].mxu0  ;;  %v7868_v8 = vpop.f32.mrb[103].mxu1 }
 0x1ae   :  { %vm2600_vm5 = vcmp.gt.f32.partialorder %v2226_v63, 0.0  ;;  %v2856_v62 = vmul.f32 0.2, %v2226_v63  ;;  %v3114_v5 = vsel %vm2602_vm4, %v2234_v40, %v2858_v56  ;;  %v1717_v16 = vadd.f32 %v7757_v31, %v7732_v0 }
 0x1af   :  { %v2984_v7 = vsel %vm2472_vm0, %v1714_v55, %v2728_v59  ;;  %vm2475_vm6 = vcmp.gt.f32.partialorder %v1725_v13, 0.0  ;;  %v2731_v19 = vmul.f32 0.2, %v1725_v13  ;;  %v2229_v6 = vadd.f32 %v7757_v31, %v7734_v18 }
 0x1b0   :  { %v3112_v14 = vsel %vm2600_vm5, %v2226_v63, %v2856_v62  ;;  %vm2603_vm7 = vcmp.gt.f32.partialorder %v2237_v32, 0.0  ;;  %v2859_v23 = vmul.f32 0.2, %v2237_v32  ;;  %vm2473_vm8 = vcmp.gt.f32.partialorder %v1717_v16, 0.0 }
 0x1b1   :  { %v2729_v47 = vmul.f32 0.2, %v1717_v16  ;;  %v2987_v28 = vsel %vm2475_vm6, %v1725_v13, %v2731_v19  ;;  %vm2601_vm9 = vcmp.gt.f32.partialorder %v2229_v6, 0.0  ;;  %v2857_v44 = vmul.f32 0.2, %v2229_v6  ;;  %v7876_v50 = vpop.f32.mrb[104].mxu0 }
 0x1b2   :  { %v1738_v0 = vadd.f32 %v7757_v31, %v7761_v36  ;;  %v5436_v21 = vpack.c.bf16 %v2987_v28, %v2986_v61  ;;  %v3115_v33 = vsel %vm2603_vm7, %v2237_v32, %v2859_v23  ;;  %v2250_v26 = vadd.f32 %v7757_v31, %v7763_v2  ;;  %v7878_v48 = vpop.f32.mrb[104].mxu1  ;;  %v7880_v1 = vpop.f32.mrb[105].mxu0 }
 0x1b3   :  { %v2985_v24 = vsel %vm2473_vm8, %v1717_v16, %v2729_v47  ;;  %v5756_v18 = vpack.c.bf16 %v3115_v33, %v3114_v5  ;;  %v3113_v11 = vsel %vm2601_vm9, %v2229_v6, %v2857_v44  ;;  %v7882_v58 = vpop.f32.mrb[105].mxu1  ;;  %v7887_v35 = vpop.f32.mrb[106].mxu0  ;;  %v1730_v43 = vadd.f32 %v7757_v31, %v7769_v34 }
 0x1b4   :  { %v5431_v51 = vpack.c.bf16 %v2985_v24, %v2984_v7  ;;  %vm2478_vm10 = vcmp.gt.f32.partialorder %v1738_v0, 0.0  ;;  %5892 = vst [vmem:[%s8238_s3 + $0x168] sm:$0xff] %v5436_v21   ;;  %v5751_v36 = vpack.c.bf16 %v3113_v11, %v3112_v14  ;;  %v2734_v42 = vmul.f32 0.2, %v1738_v0  ;;  %v7903_v40 = vpop.f32.mrb[106].mxu1  ;;  %v7905_v55 = vpop.f32.mrb[107].mxu0 }
 0x1b5   :  { %vm2606_vm11 = vcmp.gt.f32.partialorder %v2250_v26, 0.0  ;;  %v2862_v2 = vmul.f32 0.2, %v2250_v26  ;;  %5956 = vst [vmem:[%s8238_s3 + $0x368] sm:$0xff] %v5756_v18   ;;  %v2242_v12 = vadd.f32 %v7757_v31, %v7771_v46  ;;  %v1741_v9 = vadd.f32 %v7757_v31, %v7775_v25  ;;  %v7915_v27 = vpop.f32.mrb[107].mxu1 }
 0x1b6   :  { %5891 = vst [vmem:[%s8238_s3 + $0x160] sm:$0xff] %v5431_v51   ;;  %v2253_v49 = vadd.f32 %v7757_v31, %v7777_v15  ;;  %5955 = vst [vmem:[%s8238_s3 + $0x360] sm:$0xff] %v5751_v36   ;;  %v2990_v41 = vsel %vm2478_vm10, %v1738_v0, %v2734_v42  ;;  %v1733_v46 = vadd.f32 %v7757_v31, %v7781_v54  ;;  %vm2476_vm12 = vcmp.gt.f32.partialorder %v1730_v43, 0.0 }
 0x1b7   :  { %v3118_v34 = vsel %vm2606_vm11, %v2250_v26, %v2862_v2  ;;  %v2245_v25 = vadd.f32 %v7757_v31, %v7783_v57  ;;  %v2732_v15 = vmul.f32 0.2, %v1730_v43  ;;  %vm2604_vm13 = vcmp.gt.f32.partialorder %v2242_v12, 0.0 }
 0x1b8   :  { %v2860_v63 = vmul.f32 0.2, %v2242_v12  ;;  %vm2479_vm14 = vcmp.gt.f32.partialorder %v1741_v9, 0.0  ;;  %v2735_v56 = vmul.f32 0.2, %v1741_v9  ;;  %vm2607_vm15 = vcmp.gt.f32.partialorder %v2253_v49, 0.0 }
 0x1b9   :  { %v2863_v59 = vmul.f32 0.2, %v2253_v49  ;;  %v2988_v61 = vsel %vm2476_vm12, %v1730_v43, %v2732_v15  ;;  %vm2477_vm1 = vcmp.gt.f32.partialorder %v1733_v46, 0.0  ;;  %v2733_v13 = vmul.f32 0.2, %v1733_v46  ;;  %v7917_v32 = vpop.f32.mrb[108].mxu0 }
 0x1ba   :  { %v3116_v62 = vsel %vm2604_vm13, %v2242_v12, %v2860_v63  ;;  %v2991_v5 = vsel %vm2479_vm14, %v1741_v9, %v2735_v56  ;;  %vm2605_vm2 = vcmp.gt.f32.partialorder %v2245_v25, 0.0  ;;  %v2861_v54 = vmul.f32 0.2, %v2245_v25  ;;  %v7921_v6 = vpop.f32.mrb[108].mxu1  ;;  %v7923_v23 = vpop.f32.mrb[109].mxu0 }
 0x1bb   :  { %v3119_v7 = vsel %vm2607_vm15, %v2253_v49, %v2863_v59  ;;  %v5446_v57 = vpack.c.bf16 %v2991_v5, %v2990_v41  ;;  %v2989_v14 = vsel %vm2477_vm1, %v1733_v46, %v2733_v13  ;;  %v1754_v19 = vadd.f32 %v7757_v31, %v7790_v30  ;;  %v7929_v21 = vpop.f32.mrb[109].mxu1  ;;  %v7931_v33 = vpop.f32.mrb[110].mxu0 }
 0x1bc   :  { %v5766_v16 = vpack.c.bf16 %v3119_v7, %v3118_v34  ;;  %v5441_v47 = vpack.c.bf16 %v2989_v14, %v2988_v61  ;;  %v3117_v28 = vsel %vm2605_vm2, %v2245_v25, %v2861_v54  ;;  %v2266_v44 = vadd.f32 %v7757_v31, %v7806_v39  ;;  %v7941_v26 = vpop.f32.mrb[110].mxu1 }
 0x1bd   :  { %v1746_v0 = vadd.f32 %v7757_v31, %v7808_v45  ;;  %5894 = vst [vmem:[%s8238_s3 + $0x178] sm:$0xff] %v5446_v57   ;;  %v5761_v30 = vpack.c.bf16 %v3117_v28, %v3116_v62  ;;  %vm2482_vm3 = vcmp.gt.f32.partialorder %v1754_v19, 0.0  ;;  %v2738_v24 = vmul.f32 0.2, %v1754_v19  ;;  %v7943_v45 = vpop.f32.mrb[111].mxu0  ;;  %v7953_v42 = vpop.f32.mrb[111].mxu1 }
 0x1be   :  { %5958 = vst [vmem:[%s8238_s3 + $0x378] sm:$0xff] %v5766_v16   ;;  %v2258_v39 = vadd.f32 %v7757_v31, %v7818_v60  ;;  %5893 = vst [vmem:[%s8238_s3 + $0x170] sm:$0xff] %v5441_v47   ;;  %vm2610_vm4 = vcmp.gt.f32.partialorder %v2266_v44, 0.0  ;;  %v2866_v18 = vmul.f32 0.2, %v2266_v44  ;;  %v1757_v60 = vadd.f32 %v7757_v31, %v7820_v37 }
 0x1bf   :  { %vm2480_vm0 = vcmp.gt.f32.partialorder %v1746_v0, 0.0  ;;  %v2736_v51 = vmul.f32 0.2, %v1746_v0  ;;  %5957 = vst [vmem:[%s8238_s3 + $0x370] sm:$0xff] %v5761_v30   ;;  %v2994_v11 = vsel %vm2482_vm3, %v1754_v19, %v2738_v24  ;;  %v2269_v12 = vadd.f32 %v7757_v31, %v7822_v29 }
 0x1c0   :  { %vm2608_vm5 = vcmp.gt.f32.partialorder %v2258_v39, 0.0  ;;  %v2864_v36 = vmul.f32 0.2, %v2258_v39  ;;  %v3122_v2 = vsel %vm2610_vm4, %v2266_v44, %v2866_v18  ;;  %v1749_v9 = vadd.f32 %v7757_v31, %v7824_v10 }
 0x1c1   :  { %v2992_v43 = vsel %vm2480_vm0, %v1746_v0, %v2736_v51  ;;  %vm2483_vm6 = vcmp.gt.f32.partialorder %v1757_v60, 0.0  ;;  %v2739_v41 = vmul.f32 0.2, %v1757_v60  ;;  %v2261_v34 = vadd.f32 %v7757_v31, %v7826_v4  ;;  %v7963_v29 = vpop.f32.mrb[112].mxu0 }
 0x1c2   :  { %v3120_v49 = vsel %vm2608_vm5, %v2258_v39, %v2864_v36  ;;  %vm2611_vm7 = vcmp.gt.f32.partialorder %v2269_v12, 0.0  ;;  %v2867_v46 = vmul.f32 0.2, %v2269_v12  ;;  %vm2481_vm8 = vcmp.gt.f32.partialorder %v1749_v9, 0.0  ;;  %v7965_v56 = vpop.f32.mrb[112].mxu1  ;;  %v7969_v62 = vpop.f32.mrb[113].mxu0 }
 0x1c3   :  { %v2737_v37 = vmul.f32 0.2, %v1749_v9  ;;  %v2995_v25 = vsel %vm2483_vm6, %v1757_v60, %v2739_v41  ;;  %vm2609_vm9 = vcmp.gt.f32.partialorder %v2261_v34, 0.0  ;;  %v2865_v15 = vmul.f32 0.2, %v2261_v34  ;;  %v7971_v13 = vpop.f32.mrb[113].mxu1 }
 0x1c4   :  { %v1770_v63 = vadd.f32 %v7757_v31, %v7834_v52  ;;  %v5456_v10 = vpack.c.bf16 %v2995_v25, %v2994_v11  ;;  %v3123_v59 = vsel %vm2611_vm7, %v2269_v12, %v2867_v46  ;;  %v2282_v4 = vadd.f32 %v7757_v31, %v7836_v3  ;;  %v7973_v57 = vpop.f32.mrb[114].mxu0  ;;  %v7975_v52 = vpop.f32.mrb[114].mxu1 }
 0x1c5   :  { %v2993_v61 = vsel %vm2481_vm8, %v1749_v9, %v2737_v37  ;;  %v5776_v5 = vpack.c.bf16 %v3123_v59, %v3122_v2  ;;  %v3121_v54 = vsel %vm2609_vm9, %v2261_v34, %v2865_v15  ;;  %v7980_v19 = vpop.f32.mrb[115].mxu0  ;;  %v1762_v47 = vadd.f32 %v7757_v31, %v7846_v17  ;;  %v7996_v30 = vpop.f32.mrb[115].mxu1 }
 0x1c6   :  { %v5451_v7 = vpack.c.bf16 %v2993_v61, %v2992_v43  ;;  %vm2486_vm10 = vcmp.gt.f32.partialorder %v1770_v63, 0.0  ;;  %5896 = vst [vmem:[%s8238_s3 + $0x188] sm:$0xff] %v5456_v10   ;;  %v5771_v16 = vpack.c.bf16 %v3121_v54, %v3120_v49  ;;  %v2742_v14 = vmul.f32 0.2, %v1770_v63 }
 0x1c7   :  { %vm2614_vm11 = vcmp.gt.f32.partialorder %v2282_v4, 0.0  ;;  %v2870_v3 = vmul.f32 0.2, %v2282_v4  ;;  %5960 = vst [vmem:[%s8238_s3 + $0x388] sm:$0xff] %v5776_v5   ;;  %v2274_v28 = vadd.f32 %v7757_v31, %v7848_v20  ;;  %v1773_v44 = vadd.f32 %v7757_v31, %v7858_v53 }
 0x1c8   :  { %5895 = vst [vmem:[%s8238_s3 + $0x180] sm:$0xff] %v5451_v7   ;;  %v2285_v0 = vadd.f32 %v7757_v31, %v7860_v22  ;;  %5959 = vst [vmem:[%s8238_s3 + $0x380] sm:$0xff] %v5771_v16   ;;  %v2998_v24 = vsel %vm2486_vm10, %v1770_v63, %v2742_v14  ;;  %v1765_v17 = vadd.f32 %v7757_v31, %v7866_v38  ;;  %vm2484_vm12 = vcmp.gt.f32.partialorder %v1762_v47, 0.0 }
 0x1c9   :  { %v3126_v39 = vsel %vm2614_vm11, %v2282_v4, %v2870_v3  ;;  %v2277_v20 = vadd.f32 %v7757_v31, %v7868_v8  ;;  %v2740_v53 = vmul.f32 0.2, %v1762_v47  ;;  %vm2612_vm13 = vcmp.gt.f32.partialorder %v2274_v28, 0.0  ;;  %v8006_v2 = vpop.f32.mrb[116].mxu0 }
 0x1ca   :  { %v2868_v18 = vmul.f32 0.2, %v2274_v28  ;;  %vm2487_vm14 = vcmp.gt.f32.partialorder %v1773_v44, 0.0  ;;  %v2743_v22 = vmul.f32 0.2, %v1773_v44  ;;  %vm2615_vm15 = vcmp.gt.f32.partialorder %v2285_v0, 0.0 }
 0x1cb   :  { %v2871_v51 = vmul.f32 0.2, %v2285_v0  ;;  %v2996_v11 = vsel %vm2484_vm12, %v1762_v47, %v2740_v53  ;;  %vm2485_vm1 = vcmp.gt.f32.partialorder %v1765_v17, 0.0  ;;  %v2741_v60 = vmul.f32 0.2, %v1765_v17  ;;  %v8008_v43 = vpop.f32.mrb[116].mxu1 }
 0x1cc   :  { %v3124_v36 = vsel %vm2612_vm13, %v2274_v28, %v2868_v18  ;;  %v2999_v38 = vsel %vm2487_vm14, %v1773_v44, %v2743_v22  ;;  %vm2613_vm2 = vcmp.gt.f32.partialorder %v2277_v20, 0.0  ;;  %v2869_v8 = vmul.f32 0.2, %v2277_v20  ;;  %v8010_v9 = vpop.f32.mrb[117].mxu0  ;;  %v8012_v49 = vpop.f32.mrb[117].mxu1 }
 0x1cd   :  { %v3127_v12 = vsel %vm2615_vm15, %v2285_v0, %v2871_v51  ;;  %v5466_v41 = vpack.c.bf16 %v2999_v38, %v2998_v24  ;;  %v2997_v46 = vsel %vm2485_vm1, %v1765_v17, %v2741_v60  ;;  %v1786_v37 = vadd.f32 %v7757_v31, %v7876_v50  ;;  %v8016_v25 = vpop.f32.mrb[118].mxu0  ;;  %v8018_v15 = vpop.f32.mrb[118].mxu1 }
 0x1ce   :  { %v5786_v34 = vpack.c.bf16 %v3127_v12, %v3126_v39  ;;  %v5461_v63 = vpack.c.bf16 %v2997_v46, %v2996_v11  ;;  %v3125_v10 = vsel %vm2613_vm2, %v2277_v20, %v2869_v8  ;;  %v2298_v59 = vadd.f32 %v7757_v31, %v7878_v48  ;;  %v8024_v4 = vpop.f32.mrb[119].mxu0  ;;  %v8026_v5 = vpop.f32.mrb[119].mxu1 }
 0x1cf   :  { %v1778_v61 = vadd.f32 %v7757_v31, %v7880_v1  ;;  %5898 = vst [vmem:[%s8238_s3 + $0x198] sm:$0xff] %v5466_v41   ;;  %v5781_v50 = vpack.c.bf16 %v3125_v10, %v3124_v36  ;;  %vm2490_vm3 = vcmp.gt.f32.partialorder %v1786_v37, 0.0  ;;  %v2746_v7 = vmul.f32 0.2, %v1786_v37 }
 0x1d0   :  { %5962 = vst [vmem:[%s8238_s3 + $0x398] sm:$0xff] %v5786_v34   ;;  %v2290_v48 = vadd.f32 %v7757_v31, %v7882_v58  ;;  %5897 = vst [vmem:[%s8238_s3 + $0x190] sm:$0xff] %v5461_v63   ;;  %vm2618_vm4 = vcmp.gt.f32.partialorder %v2298_v59, 0.0  ;;  %v2874_v1 = vmul.f32 0.2, %v2298_v59  ;;  %v1789_v3 = vadd.f32 %v7757_v31, %v7887_v35 }
 0x1d1   :  { %vm2488_vm0 = vcmp.gt.f32.partialorder %v1778_v61, 0.0  ;;  %v2744_v54 = vmul.f32 0.2, %v1778_v61  ;;  %5961 = vst [vmem:[%s8238_s3 + $0x390] sm:$0xff] %v5781_v50   ;;  %v3002_v16 = vsel %vm2490_vm3, %v1786_v37, %v2746_v7  ;;  %v2301_v28 = vadd.f32 %v7757_v31, %v7903_v40  ;;  %v8048_v0 = vpop.f32.mrb[120].mxu0 }
 0x1d2   :  { %vm2616_vm5 = vcmp.gt.f32.partialorder %v2290_v48, 0.0  ;;  %v2872_v14 = vmul.f32 0.2, %v2290_v48  ;;  %v3130_v47 = vsel %vm2618_vm4, %v2298_v59, %v2874_v1  ;;  %v1781_v44 = vadd.f32 %v7757_v31, %v7905_v55  ;;  %v8052_v20 = vpop.f32.mrb[120].mxu1  ;;  %v8054_v53 = vpop.f32.mrb[121].mxu0 }
 0x1d3   :  { %v3000_v58 = vsel %vm2488_vm0, %v1778_v61, %v2744_v54  ;;  %vm2491_vm6 = vcmp.gt.f32.partialorder %v1789_v3, 0.0  ;;  %v2747_v39 = vmul.f32 0.2, %v1789_v3  ;;  %v2293_v17 = vadd.f32 %v7757_v31, %v7915_v27  ;;  %v8058_v51 = vpop.f32.mrb[121].mxu1  ;;  %v8060_v11 = vpop.f32.mrb[122].mxu0 }
 0x1d4   :  { %v3128_v24 = vsel %vm2616_vm5, %v2290_v48, %v2872_v14  ;;  %vm2619_vm7 = vcmp.gt.f32.partialorder %v2301_v28, 0.0  ;;  %v2875_v35 = vmul.f32 0.2, %v2301_v28  ;;  %vm2489_vm8 = vcmp.gt.f32.partialorder %v1781_v44, 0.0  ;;  %v8064_v12 = vpop.f32.mrb[122].mxu1  ;;  %v8066_v8 = vpop.f32.mrb[123].mxu0 }
 0x1d5   :  { %v2745_v18 = vmul.f32 0.2, %v1781_v44  ;;  %v3003_v40 = vsel %vm2491_vm6, %v1789_v3, %v2747_v39  ;;  %vm2617_vm9 = vcmp.gt.f32.partialorder %v2293_v17, 0.0  ;;  %v2873_v22 = vmul.f32 0.2, %v2293_v17  ;;  %v8068_v37 = vpop.f32.mrb[123].mxu1 }
 0x1d6   :  { %v1802_v55 = vadd.f32 %v7757_v31, %v7917_v32  ;;  %v5476_v36 = vpack.c.bf16 %v3003_v40, %v3002_v16  ;;  %v3131_v27 = vsel %vm2619_vm7, %v2301_v28, %v2875_v35  ;;  %v2314_v38 = vadd.f32 %v7757_v31, %v7921_v6 }
 0x1d7   :  { %v3001_v60 = vsel %vm2489_vm8, %v1781_v44, %v2745_v18  ;;  %v5796_v41 = vpack.c.bf16 %v3131_v27, %v3130_v47  ;;  %v3129_v46 = vsel %vm2617_vm9, %v2293_v17, %v2873_v22  ;;  %v1794_v6 = vadd.f32 %v7757_v31, %v7923_v23 }
 0x1d8   :  { %v5471_v34 = vpack.c.bf16 %v3001_v60, %v3000_v58  ;;  %vm2494_vm10 = vcmp.gt.f32.partialorder %v1802_v55, 0.0  ;;  %5900 = vst [vmem:[%s8238_s3 + $0x1a8] sm:$0xff] %v5476_v36   ;;  %v5791_v32 = vpack.c.bf16 %v3129_v46, %v3128_v24  ;;  %v2750_v63 = vmul.f32 0.2, %v1802_v55 }
 0x1d9   :  { %vm2622_vm11 = vcmp.gt.f32.partialorder %v2314_v38, 0.0  ;;  %v2878_v10 = vmul.f32 0.2, %v2314_v38  ;;  %5964 = vst [vmem:[%s8238_s3 + $0x3a8] sm:$0xff] %v5796_v41   ;;  %v2306_v59 = vadd.f32 %v7757_v31, %v7929_v21  ;;  %v1805_v61 = vadd.f32 %v7757_v31, %v7931_v33  ;;  %v8094_v54 = vpop.f32.mrb[124].mxu0 }
 0x1da   :  { %5899 = vst [vmem:[%s8238_s3 + $0x1a0] sm:$0xff] %v5471_v34   ;;  %v2317_v50 = vadd.f32 %v7757_v31, %v7941_v26  ;;  %5963 = vst [vmem:[%s8238_s3 + $0x3a0] sm:$0xff] %v5791_v32   ;;  %v3006_v7 = vsel %vm2494_vm10, %v1802_v55, %v2750_v63  ;;  %v1797_v1 = vadd.f32 %v7757_v31, %v7943_v45  ;;  %vm2492_vm12 = vcmp.gt.f32.partialorder %v1794_v6, 0.0  ;;  %v8096_v58 = vpop.f32.mrb[124].mxu1  ;;  %v8098_v45 = vpop.f32.mrb[125].mxu0 }
 0x1db   :  { %v3134_v48 = vsel %vm2622_vm11, %v2314_v38, %v2878_v10  ;;  %v2309_v23 = vadd.f32 %v7757_v31, %v7953_v42  ;;  %v2748_v21 = vmul.f32 0.2, %v1794_v6  ;;  %vm2620_vm13 = vcmp.gt.f32.partialorder %v2306_v59, 0.0  ;;  %v8100_v24 = vpop.f32.mrb[125].mxu1  ;;  %v8102_v39 = vpop.f32.mrb[126].mxu0 }
 0x1dc   :  { %v2876_v33 = vmul.f32 0.2, %v2306_v59  ;;  %vm2495_vm14 = vcmp.gt.f32.partialorder %v1805_v61, 0.0  ;;  %v2751_v26 = vmul.f32 0.2, %v1805_v61  ;;  %vm2623_vm15 = vcmp.gt.f32.partialorder %v2317_v50, 0.0 }
 0x1dd   :  { %v2879_v16 = vmul.f32 0.2, %v2317_v50  ;;  %v3004_v14 = vsel %vm2492_vm12, %v1794_v6, %v2748_v21  ;;  %vm2493_vm1 = vcmp.gt.f32.partialorder %v1797_v1, 0.0  ;;  %v2749_v47 = vmul.f32 0.2, %v1797_v1  ;;  %v8106_v22 = vpop.f32.mrb[126].mxu1 }
 0x1de   :  { %v3132_v3 = vsel %vm2620_vm13, %v2306_v59, %v2876_v33  ;;  %v3007_v28 = vsel %vm2495_vm14, %v1805_v61, %v2751_v26  ;;  %vm2621_vm2 = vcmp.gt.f32.partialorder %v2309_v23, 0.0  ;;  %v2877_v44 = vmul.f32 0.2, %v2309_v23  ;;  %v8108_v55 = vpop.f32.mrb[127].mxu0  ;;  %v8114_v41 = vpop.f32.mrb[127].mxu1 }
 0x1df   :  { %v3135_v42 = vsel %vm2623_vm15, %v2317_v50, %v2879_v16  ;;  %v5486_v17 = vpack.c.bf16 %v3007_v28, %v3006_v7  ;;  %v3005_v18 = vsel %vm2493_vm1, %v1797_v1, %v2749_v47  ;;  %v1818_v40 = vadd.f32 %v7757_v31, %v7963_v29 }
 0x1e0   :  { %v5806_v35 = vpack.c.bf16 %v3135_v42, %v3134_v48  ;;  %v5481_v36 = vpack.c.bf16 %v3005_v18, %v3004_v14  ;;  %v3133_v27 = vsel %vm2621_vm2, %v2309_v23, %v2877_v44  ;;  %v2330_v60 = vadd.f32 %v7757_v31, %v7965_v56 }
 0x1e1   :  { %v1810_v38 = vadd.f32 %v7757_v31, %v7969_v62  ;;  %5902 = vst [vmem:[%s8238_s3 + $0x1b8] sm:$0xff] %v5486_v17   ;;  %v5801_v29 = vpack.c.bf16 %v3133_v27, %v3132_v3  ;;  %vm2498_vm3 = vcmp.gt.f32.partialorder %v1818_v40, 0.0  ;;  %v2754_v34 = vmul.f32 0.2, %v1818_v40 }
 0x1e2   :  { %5966 = vst [vmem:[%s8238_s3 + $0x3b8] sm:$0xff] %v5806_v35   ;;  %v2322_v46 = vadd.f32 %v7757_v31, %v7971_v13  ;;  %5901 = vst [vmem:[%s8238_s3 + $0x1b0] sm:$0xff] %v5481_v36   ;;  %vm2626_vm4 = vcmp.gt.f32.partialorder %v2330_v60, 0.0  ;;  %v2882_v56 = vmul.f32 0.2, %v2330_v60  ;;  %v1821_v10 = vadd.f32 %v7757_v31, %v7973_v57 }
 0x1e3   :  { %vm2496_vm0 = vcmp.gt.f32.partialorder %v1810_v38, 0.0  ;;  %v2752_v62 = vmul.f32 0.2, %v1810_v38  ;;  %5965 = vst [vmem:[%s8238_s3 + $0x3b0] sm:$0xff] %v5801_v29   ;;  %v3010_v32 = vsel %vm2498_vm3, %v1818_v40, %v2754_v34  ;;  %v2333_v59 = vadd.f32 %v7757_v31, %v7975_v52 }
 0x1e4   :  { %vm2624_vm5 = vcmp.gt.f32.partialorder %v2322_v46, 0.0  ;;  %v2880_v63 = vmul.f32 0.2, %v2322_v46  ;;  %v3138_v6 = vsel %vm2626_vm4, %v2330_v60, %v2882_v56  ;;  %v1813_v61 = vadd.f32 %v7757_v31, %v7980_v19 }
 0x1e5   :  { %v3008_v13 = vsel %vm2496_vm0, %v1810_v38, %v2752_v62  ;;  %vm2499_vm6 = vcmp.gt.f32.partialorder %v1821_v10, 0.0  ;;  %v2755_v7 = vmul.f32 0.2, %v1821_v10  ;;  %v2325_v48 = vadd.f32 %v7757_v31, %v7996_v30 }
 0x1e6   :  { %v3136_v50 = vsel %vm2624_vm5, %v2322_v46, %v2880_v63  ;;  %vm2627_vm7 = vcmp.gt.f32.partialorder %v2333_v59, 0.0  ;;  %v2883_v1 = vmul.f32 0.2, %v2333_v59  ;;  %vm2497_vm8 = vcmp.gt.f32.partialorder %v1813_v61, 0.0 }
 0x1e7   :  { %v2753_v23 = vmul.f32 0.2, %v1813_v61  ;;  %v3011_v21 = vsel %vm2499_vm6, %v1821_v10, %v2755_v7  ;;  %vm2625_vm9 = vcmp.gt.f32.partialorder %v2325_v48, 0.0  ;;  %v2881_v57 = vmul.f32 0.2, %v2325_v48 }
 0x1e8   :  { %v1834_v33 = vadd.f32 %v7757_v31, %v8006_v2  ;;  %v5496_v52 = vpack.c.bf16 %v3011_v21, %v3010_v32  ;;  %v3139_v26 = vsel %vm2627_vm7, %v2333_v59, %v2883_v1  ;;  %v2346_v19 = vadd.f32 %v7757_v31, %v8008_v43 }
 0x1e9   :  { %v3009_v16 = vsel %vm2497_vm8, %v1813_v61, %v2753_v23  ;;  %v5816_v14 = vpack.c.bf16 %v3139_v26, %v3138_v6  ;;  %v3137_v47 = vsel %vm2625_vm9, %v2325_v48, %v2881_v57  ;;  %v1826_v2 = vadd.f32 %v7757_v31, %v8010_v9 }
 0x1ea   :  { %v5491_v3 = vpack.c.bf16 %v3009_v16, %v3008_v13  ;;  %vm2502_vm10 = vcmp.gt.f32.partialorder %v1834_v33, 0.0  ;;  %5904 = vst [vmem:[%s8238_s3 + $0x1c8] sm:$0xff] %v5496_v52   ;;  %v5811_v30 = vpack.c.bf16 %v3137_v47, %v3136_v50  ;;  %v2758_v28 = vmul.f32 0.2, %v1834_v33 }
 0x1eb   :  { %vm2630_vm11 = vcmp.gt.f32.partialorder %v2346_v19, 0.0  ;;  %v2886_v42 = vmul.f32 0.2, %v2346_v19  ;;  %5968 = vst [vmem:[%s8238_s3 + $0x3c8] sm:$0xff] %v5816_v14   ;;  %v2338_v43 = vadd.f32 %v7757_v31, %v8012_v49  ;;  %v1837_v44 = vadd.f32 %v7757_v31, %v8016_v25 }
 0x1ec   :  { %5903 = vst [vmem:[%s8238_s3 + $0x1c0] sm:$0xff] %v5491_v3   ;;  %v2349_v17 = vadd.f32 %v7757_v31, %v8018_v15  ;;  %5967 = vst [vmem:[%s8238_s3 + $0x3c0] sm:$0xff] %v5811_v30   ;;  %v3014_v35 = vsel %vm2502_vm10, %v1834_v33, %v2758_v28  ;;  %v1829_v40 = vadd.f32 %v7757_v31, %v8024_v4  ;;  %vm2500_vm12 = vcmp.gt.f32.partialorder %v1826_v2, 0.0 }
 0x1ed   :  { %v3142_v18 = vsel %vm2630_vm11, %v2346_v19, %v2886_v42  ;;  %v2341_v9 = vadd.f32 %v7757_v31, %v8026_v5  ;;  %v2756_v49 = vmul.f32 0.2, %v1826_v2  ;;  %vm2628_vm13 = vcmp.gt.f32.partialorder %v2338_v43, 0.0 }
 0x1ee   :  { %v2884_v36 = vmul.f32 0.2, %v2338_v43  ;;  %vm2503_vm14 = vcmp.gt.f32.partialorder %v1837_v44, 0.0  ;;  %v2759_v25 = vmul.f32 0.2, %v1837_v44  ;;  %vm2631_vm15 = vcmp.gt.f32.partialorder %v2349_v17, 0.0 }
 0x1ef   :  { %v2887_v15 = vmul.f32 0.2, %v2349_v17  ;;  %v3012_v27 = vsel %vm2500_vm12, %v1826_v2, %v2756_v49  ;;  %vm2501_vm1 = vcmp.gt.f32.partialorder %v1829_v40, 0.0  ;;  %v2757_v38 = vmul.f32 0.2, %v1829_v40 }
 0x1f0   :  { %v3140_v60 = vsel %vm2628_vm13, %v2338_v43, %v2884_v36  ;;  %v3015_v29 = vsel %vm2503_vm14, %v1837_v44, %v2759_v25  ;;  %vm2629_vm2 = vcmp.gt.f32.partialorder %v2341_v9, 0.0  ;;  %v2885_v46 = vmul.f32 0.2, %v2341_v9 }
 0x1f1   :  { %v3143_v34 = vsel %vm2631_vm15, %v2349_v17, %v2887_v15  ;;  %v5506_v4 = vpack.c.bf16 %v3015_v29, %v3014_v35  ;;  %v3013_v62 = vsel %vm2501_vm1, %v1829_v40, %v2757_v38  ;;  %v1850_v5 = vadd.f32 %v7757_v31, %v8048_v0 }
 0x1f2   :  { %v5826_v56 = vpack.c.bf16 %v3143_v34, %v3142_v18  ;;  %v5501_v32 = vpack.c.bf16 %v3013_v62, %v3012_v27  ;;  %v3141_v63 = vsel %vm2629_vm2, %v2341_v9, %v2885_v46  ;;  %v2362_v10 = vadd.f32 %v7757_v31, %v8052_v20 }
 0x1f3   :  { %v1842_v6 = vadd.f32 %v7757_v31, %v8054_v53  ;;  %5906 = vst [vmem:[%s8238_s3 + $0x1d8] sm:$0xff] %v5506_v4   ;;  %v5821_v13 = vpack.c.bf16 %v3141_v63, %v3140_v60  ;;  %vm2506_vm3 = vcmp.gt.f32.partialorder %v1850_v5, 0.0  ;;  %v2762_v59 = vmul.f32 0.2, %v1850_v5 }
 0x1f4   :  { %5970 = vst [vmem:[%s8238_s3 + $0x3d8] sm:$0xff] %v5826_v56   ;;  %v2354_v0 = vadd.f32 %v7757_v31, %v8058_v51  ;;  %5905 = vst [vmem:[%s8238_s3 + $0x1d0] sm:$0xff] %v5501_v32   ;;  %vm2634_vm4 = vcmp.gt.f32.partialorder %v2362_v10, 0.0  ;;  %v2890_v20 = vmul.f32 0.2, %v2362_v10  ;;  %v1853_v50 = vadd.f32 %v7757_v31, %v8060_v11 }
 0x1f5   :  { %vm2504_vm0 = vcmp.gt.f32.partialorder %v1842_v6, 0.0  ;;  %v2760_v53 = vmul.f32 0.2, %v1842_v6  ;;  %5969 = vst [vmem:[%s8238_s3 + $0x3d0] sm:$0xff] %v5821_v13   ;;  %v3018_v61 = vsel %vm2506_vm3, %v1850_v5, %v2762_v59  ;;  %v2365_v51 = vadd.f32 %v7757_v31, %v8064_v12 }
 0x1f6   :  { %vm2632_vm5 = vcmp.gt.f32.partialorder %v2354_v0, 0.0  ;;  %v3146_v7 = vsel %vm2634_vm4, %v2362_v10, %v2890_v20  ;;  %v2888_v48 = vmul.f32 0.2, %v2354_v0  ;;  %v1845_v1 = vadd.f32 %v7757_v31, %v8066_v8 }
 0x1f7   :  { %v3016_v23 = vsel %vm2504_vm0, %v1842_v6, %v2760_v53  ;;  %vm2507_vm6 = vcmp.gt.f32.partialorder %v1853_v50, 0.0  ;;  %v2763_v21 = vmul.f32 0.2, %v1853_v50  ;;  %v2357_v57 = vadd.f32 %v7757_v31, %v8068_v37 }
 0x1f8   :  { %vm2635_vm7 = vcmp.gt.f32.partialorder %v2365_v51, 0.0  ;;  %v2891_v33 = vmul.f32 0.2, %v2365_v51  ;;  %vm2505_vm8 = vcmp.gt.f32.partialorder %v1845_v1, 0.0  ;;  %v2761_v52 = vmul.f32 0.2, %v1845_v1 }
 0x1f9   :  { %v3019_v26 = vsel %vm2507_vm6, %v1853_v50, %v2763_v21  ;;  %vm2633_vm9 = vcmp.gt.f32.partialorder %v2357_v57, 0.0  ;;  %v2889_v11 = vmul.f32 0.2, %v2357_v57  ;;  %v1866_v16 = vadd.f32 %v7757_v31, %v8094_v54 }
 0x1fa   :  { %v5516_v12 = vpack.c.bf16 %v3019_v26, %v3018_v61  ;;  %v3147_v19 = vsel %vm2635_vm7, %v2365_v51, %v2891_v33  ;;  %v3017_v14 = vsel %vm2505_vm8, %v1845_v1, %v2761_v52  ;;  %v2378_v8 = vadd.f32 %v7757_v31, %v8096_v58 }
 0x1fb   :  { %v3144_v3 = vsel %vm2632_vm5, %v2354_v0, %v2888_v48  ;;  %v5836_v47 = vpack.c.bf16 %v3147_v19, %v3146_v7  ;;  %v5511_v37 = vpack.c.bf16 %v3017_v14, %v3016_v23  ;;  %v3145_v30 = vsel %vm2633_vm9, %v2357_v57, %v2889_v11 }
 0x1fc   :  { %5908 = vst [vmem:[%s8238_s3 + $0x1e8] sm:$0xff] %v5516_v12   ;;  %v5831_v28 = vpack.c.bf16 %v3145_v30, %v3144_v3  ;;  %vm2510_vm10 = vcmp.gt.f32.partialorder %v1866_v16, 0.0  ;;  %v2766_v42 = vmul.f32 0.2, %v1866_v16  ;;  %v2894_v2 = vmul.f32 0.2, %v2378_v8 }
 0x1fd   :  { %5972 = vst [vmem:[%s8238_s3 + $0x3e8] sm:$0xff] %v5836_v47   ;;  %5907 = vst [vmem:[%s8238_s3 + $0x1e0] sm:$0xff] %v5511_v37   ;;  %v1858_v54 = vadd.f32 %v7757_v31, %v8098_v45  ;;  %v2370_v58 = vadd.f32 %v7757_v31, %v8100_v24  ;;  %v1869_v43 = vadd.f32 %v7757_v31, %v8102_v39  ;;  %vm2638_vm11 = vcmp.gt.f32.partialorder %v2378_v8, 0.0 }
 0x1fe   :  { %v2381_v44 = vadd.f32 %v7757_v31, %v8106_v22  ;;  %5971 = vst [vmem:[%s8238_s3 + $0x3e0] sm:$0xff] %v5831_v28   ;;  %v1861_v17 = vadd.f32 %v7757_v31, %v8108_v55  ;;  %v2373_v45 = vadd.f32 %v7757_v31, %v8114_v41  ;;  %v3022_v35 = vsel %vm2510_vm10, %v1866_v16, %v2766_v42 }
 0x1ff   :  { %vm2508_vm12 = vcmp.gt.f32.partialorder %v1858_v54, 0.0  ;;  %v2764_v24 = vmul.f32 0.2, %v1858_v54  ;;  %v2892_v18 = vmul.f32 0.2, %v2370_v58  ;;  %vm2511_vm13 = vcmp.gt.f32.partialorder %v1869_v43, 0.0 }
 0x200   :  { %v2767_v39 = vmul.f32 0.2, %v1869_v43  ;;  %vm2639_vm14 = vcmp.gt.f32.partialorder %v2381_v44, 0.0  ;;  %v2895_v40 = vmul.f32 0.2, %v2381_v44  ;;  %v3150_v22 = vsel %vm2638_vm11, %v2378_v8, %v2894_v2 }
 0x201   :  { %vm2636_vm15 = vcmp.gt.f32.partialorder %v2370_v58, 0.0  ;;  %vm2509_vm1 = vcmp.gt.f32.partialorder %v1861_v17, 0.0  ;;  %v2765_v9 = vmul.f32 0.2, %v1861_v17  ;;  %vm2637_vm2 = vcmp.gt.f32.partialorder %v2373_v45, 0.0 }
 0x202   :  { %v3023_v49 = vsel %vm2511_vm13, %v1869_v43, %v2767_v39  ;;  %v3151_v36 = vsel %vm2639_vm14, %v2381_v44, %v2895_v40  ;;  %v2893_v25 = vmul.f32 0.2, %v2373_v45  ;;  %v3020_v55 = vsel %vm2508_vm12, %v1858_v54, %v2764_v24 }
 0x203   :  { %v5526_v15 = vpack.c.bf16 %v3023_v49, %v3022_v35  ;;  %v5846_v27 = vpack.c.bf16 %v3151_v36, %v3150_v22  ;;  %v3021_v31 = vsel %vm2509_vm1, %v1861_v17, %v2765_v9  ;;  %v3148_v41 = vsel %vm2636_vm15, %v2370_v58, %v2892_v18 }
 0x204   :  { %v5521_v60 = vpack.c.bf16 %v3021_v31, %v3020_v55  ;;  %v3149_v38 = vsel %vm2637_vm2, %v2373_v45, %v2893_v25 }
 0x205   :  { %5910 = vst [vmem:[%s8238_s3 + $0x1f8] sm:$0xff] %v5526_v15   ;;  %5974 = vst [vmem:[%s8238_s3 + $0x3f8] sm:$0xff] %v5846_v27   ;;  %v5841_v29 = vpack.c.bf16 %v3149_v38, %v3148_v41 }
 0x206   :  { %5909 = vst [vmem:[%s8238_s3 + $0x1f0] sm:$0xff] %v5521_v60  }
 0x207   :  { %5973 = vst [vmem:[%s8238_s3 + $0x3f0] sm:$0xff] %v5841_v29  }

// kernel: vae_forward.6
= control target key start
LH: loop header
LB: loop body
LE: loop exit
PB: predicated region body
PF: predicated region fallthrough
CT: control target
= control target key end

     0   :  { %s1997_s1 = inlined_call_operand.vmem [shape: bf16[128,128], index: 1, kind: input, shape index: {}]   ;;  %s1998_s0 = inlined_call_operand.vmem [shape: bf16[512,128], index: 0, kind: input, shape index: {}]   ;;  %s1999_s2 = inlined_call_operand.vmem [shape: f32[1,128], index: 2, kind: input, shape index: {}]   ;;  %s2000_s3 = inlined_call_operand.vmem [shape: bf16[512,128], index: 3, kind: output, shape index: {}]  }
   0x1   :  { %v1643_v0 = vld [vmem:[%s1997_s1] sm:$0xff]   ;;  %v1644_v1 = vld [vmem:[%s1997_s1 + $0x8] sm:$0xff]   ;;  %v1645_v2 = vld [vmem:[%s1997_s1 + $0x10] sm:$0xff]  }
   0x2   :  { %1547 = vmatprep.subr.bf16.mxu0 %v1643_v0  ;;  %1627 = vmatprep.subr.bf16.mxu1 %v1643_v0  ;;  %v1646_v3 = vld [vmem:[%s1997_s1 + $0x18] sm:$0xff]   ;;  %v1651_v4 = vld [vmem:[%s1998_s0] sm:$0xff]   ;;  %v1648_v7 = vld [vmem:[%s1997_s1 + $0x28] sm:$0xff]  }
   0x3   :  { %1548 = vmatpush3.bf16.msra.mxu0 %v1643_v0  ;;  %1635 = vmatpush3.bf16.msra.mxu1 %v1643_v0  ;;  %v1652_v5 = vld [vmem:[%s1998_s0 + $0x80] sm:$0xff]   ;;  %v1649_v8 = vld [vmem:[%s1997_s1 + $0x30] sm:$0xff]   ;;  %v1650_v9 = vld [vmem:[%s1997_s1 + $0x38] sm:$0xff]  }
   0x4   :  { %1549 = vmatprep.subr.bf16.mxu0 %v1644_v1  ;;  %1628 = vmatprep.subr.bf16.mxu1 %v1644_v1  ;;  %v1647_v6 = vld [vmem:[%s1997_s1 + $0x20] sm:$0xff]   ;;  %v1653_v10 = vld [vmem:[%s1998_s0 + $0x8] sm:$0xff]   ;;  %v1655_v12 = vld [vmem:[%s1998_s0 + $0x10] sm:$0xff]  }
   0x5   :  { %1563 = vmatprep.mubr.bf16.mxu0 %v1651_v4  ;;  %1595 = vmatprep.mubr.bf16.mxu1 %v1652_v5  ;;  %v1654_v11 = vld [vmem:[%s1998_s0 + $0x88] sm:$0xff]   ;;  %v1656_v13 = vld [vmem:[%s1998_s0 + $0x90] sm:$0xff]   ;;  %v1657_v14 = vld [vmem:[%s1998_s0 + $0x18] sm:$0xff]  }
   0x6   :  { %v1658_v15 = vld [vmem:[%s1998_s0 + $0x98] sm:$0xff]   ;;  %v1659_v16 = vld [vmem:[%s1998_s0 + $0x20] sm:$0xff]   ;;  %v1661_v18 = vld [vmem:[%s1998_s0 + $0x28] sm:$0xff]  }
   0x7   :  { %1550 = vmatpush3.bf16.msra.mxu0 %v1644_v1  ;;  %1636 = vmatpush3.bf16.msra.mxu1 %v1644_v1  ;;  %v1660_v17 = vld [vmem:[%s1998_s0 + $0xa0] sm:$0xff]   ;;  %v1662_v19 = vld [vmem:[%s1998_s0 + $0xa8] sm:$0xff]   ;;  %v1663_v20 = vld [vmem:[%s1998_s0 + $0x30] sm:$0xff]  }
   0x8   :  { %1551 = vmatprep.subr.bf16.mxu0 %v1645_v2  ;;  %1629 = vmatprep.subr.bf16.mxu1 %v1645_v2  ;;  %v1664_v21 = vld [vmem:[%s1998_s0 + $0xb0] sm:$0xff]   ;;  %v1665_v22 = vld [vmem:[%s1998_s0 + $0x38] sm:$0xff]   ;;  %v1667_v24 = vld [vmem:[%s1998_s0 + $0x40] sm:$0xff]  }
   0x9   :  { %v1666_v23 = vld [vmem:[%s1998_s0 + $0xb8] sm:$0xff]   ;;  %v1668_v25 = vld [vmem:[%s1998_s0 + $0xc0] sm:$0xff]   ;;  %v1669_v26 = vld [vmem:[%s1998_s0 + $0x48] sm:$0xff]  }
   0xa   :  { %v1670_v27 = vld [vmem:[%s1998_s0 + $0xc8] sm:$0xff]   ;;  %v1671_v28 = vld [vmem:[%s1998_s0 + $0x50] sm:$0xff]   ;;  %v1673_v30 = vld [vmem:[%s1998_s0 + $0x58] sm:$0xff]  }
   0xb   :  { %1552 = vmatpush3.bf16.msra.mxu0 %v1645_v2  ;;  %1637 = vmatpush3.bf16.msra.mxu1 %v1645_v2  ;;  %v1672_v29 = vld [vmem:[%s1998_s0 + $0xd0] sm:$0xff]   ;;  %v1674_v31 = vld [vmem:[%s1998_s0 + $0xd8] sm:$0xff]   ;;  %v1675_v32 = vld [vmem:[%s1998_s0 + $0x60] sm:$0xff]  }
   0xc   :  { %1553 = vmatprep.subr.bf16.mxu0 %v1646_v3  ;;  %1630 = vmatprep.subr.bf16.mxu1 %v1646_v3  ;;  %v1676_v33 = vld [vmem:[%s1998_s0 + $0xe0] sm:$0xff]   ;;  %v1677_v34 = vld [vmem:[%s1998_s0 + $0x68] sm:$0xff]   ;;  %v1679_v36 = vld [vmem:[%s1998_s0 + $0x70] sm:$0xff]  }
   0xd   :  { %v1678_v35 = vld [vmem:[%s1998_s0 + $0xe8] sm:$0xff]   ;;  %v1680_v37 = vld [vmem:[%s1998_s0 + $0xf0] sm:$0xff]   ;;  %v1681_v38 = vld [vmem:[%s1998_s0 + $0x78] sm:$0xff]  }
   0xe   :  { %v1682_v39 = vld [vmem:[%s1998_s0 + $0xf8] sm:$0xff]   ;;  %v1826_v40 = vld [vmem:[%s1999_s2] ss:$0 sm:$0xff] }
   0xf   :  { %1554 = vmatpush3.bf16.msra.mxu0 %v1646_v3  ;;  %1638 = vmatpush3.bf16.msra.mxu1 %v1646_v3 }
  0x10   :  { %1555 = vmatprep.subr.bf16.mxu0 %v1647_v6  ;;  %1631 = vmatprep.subr.bf16.mxu1 %v1647_v6 }
  0x13   :  { %1556 = vmatpush3.bf16.msra.mxu0 %v1647_v6  ;;  %1639 = vmatpush3.bf16.msra.mxu1 %v1647_v6 }
  0x14   :  { %1557 = vmatprep.subr.bf16.mxu0 %v1648_v7  ;;  %1632 = vmatprep.subr.bf16.mxu1 %v1648_v7 }
  0x17   :  { %1558 = vmatpush3.bf16.msra.mxu0 %v1648_v7  ;;  %1640 = vmatpush3.bf16.msra.mxu1 %v1648_v7 }
  0x18   :  { %1559 = vmatprep.subr.bf16.mxu0 %v1649_v8  ;;  %1633 = vmatprep.subr.bf16.mxu1 %v1649_v8 }
  0x1b   :  { %1560 = vmatpush3.bf16.msra.mxu0 %v1649_v8  ;;  %1641 = vmatpush3.bf16.msra.mxu1 %v1649_v8 }
  0x1c   :  { %1561 = vmatprep.subr.bf16.mxu0 %v1650_v9  ;;  %1634 = vmatprep.subr.bf16.mxu1 %v1650_v9 }
  0x1f   :  { %1562 = vmatpush3.bf16.msra.mxu0 %v1650_v9  ;;  %1642 = vmatpush3.bf16.msra.mxu1 %v1650_v9 }
  0x22   :  { %1564 = vmatmul.mubr.bf16.vlgmr.msra.gmra.mrb[0].mxu0 %v1653_v10  ;;  %1596 = vmatmul.mubr.bf16.vlgmr.msra.gmra.mrb[0].mxu1 %v1654_v11 }
  0x23   :  { %1567 = vmatprep.mubr.bf16.mxu0 %v1655_v12  ;;  %1599 = vmatprep.mubr.bf16.mxu1 %v1656_v13 }
  0x2a   :  { %1568 = vmatmul.mubr.bf16.gmra.mrb[4].mxu0 %v1657_v14  ;;  %1600 = vmatmul.mubr.bf16.gmra.mrb[4].mxu1 %v1658_v15 }
  0x2b   :  { %1571 = vmatprep.mubr.bf16.mxu0 %v1659_v16  ;;  %1603 = vmatprep.mubr.bf16.mxu1 %v1660_v17 }
  0x32   :  { %1572 = vmatmul.mubr.bf16.gmra.mrb[8].mxu0 %v1661_v18  ;;  %1604 = vmatmul.mubr.bf16.gmra.mrb[8].mxu1 %v1662_v19 }
  0x33   :  { %1575 = vmatprep.mubr.bf16.mxu0 %v1663_v20  ;;  %1607 = vmatprep.mubr.bf16.mxu1 %v1664_v21 }
  0x3a   :  { %1576 = vmatmul.mubr.bf16.gmra.mrb[12].mxu0 %v1665_v22  ;;  %1608 = vmatmul.mubr.bf16.gmra.mrb[12].mxu1 %v1666_v23 }
  0x3b   :  { %1579 = vmatprep.mubr.bf16.mxu0 %v1667_v24  ;;  %1611 = vmatprep.mubr.bf16.mxu1 %v1668_v25 }
  0x42   :  { %1580 = vmatmul.mubr.bf16.gmra.mrb[16].mxu0 %v1669_v26  ;;  %1612 = vmatmul.mubr.bf16.gmra.mrb[16].mxu1 %v1670_v27 }
  0x43   :  { %1583 = vmatprep.mubr.bf16.mxu0 %v1671_v28  ;;  %1615 = vmatprep.mubr.bf16.mxu1 %v1672_v29 }
  0x4a   :  { %1584 = vmatmul.mubr.bf16.gmra.mrb[20].mxu0 %v1673_v30  ;;  %1616 = vmatmul.mubr.bf16.gmra.mrb[20].mxu1 %v1674_v31 }
  0x4b   :  { %1587 = vmatprep.mubr.bf16.mxu0 %v1675_v32  ;;  %1619 = vmatprep.mubr.bf16.mxu1 %v1676_v33 }
  0x52   :  { %1588 = vmatmul.mubr.bf16.gmra.mrb[24].mxu0 %v1677_v34  ;;  %1620 = vmatmul.mubr.bf16.gmra.mrb[24].mxu1 %v1678_v35 }
  0x53   :  { %1591 = vmatprep.mubr.bf16.mxu0 %v1679_v36  ;;  %1623 = vmatprep.mubr.bf16.mxu1 %v1680_v37 }
  0x5a   :  { %1592 = vmatmul.mubr.bf16.gmra.mrb[28].mxu0 %v1681_v38  ;;  %1624 = vmatmul.mubr.bf16.gmra.mrb[28].mxu1 %v1682_v39 }
  0xf5   :  { %v1565_v41 = vpop.f32.mrb[0].mxu0  ;;  %v1597_v42 = vpop.f32.mrb[0].mxu1 }
  0xf6   :  { %v385_v43 = vadd.f32 %v1565_v41, %v1826_v40  ;;  %v513_v44 = vadd.f32 %v1597_v42, %v1826_v40  ;;  %v376_v45 = vpop.f32.mrb[1].mxu0  ;;  %v504_v46 = vpop.f32.mrb[1].mxu1 }
  0xf7   :  { %v377_v47 = vadd.f32 %v1826_v40, %v376_v45  ;;  %v505_v48 = vadd.f32 %v1826_v40, %v504_v46  ;;  %v1566_v49 = vpop.f32.mrb[2].mxu0  ;;  %v1598_v50 = vpop.f32.mrb[2].mxu1 }
  0xf8   :  { %vm633_vm0 = vcmp.gt.f32.partialorder %v385_v43, 0.0  ;;  %v697_v51 = vmul.f32 0.2, %v385_v43  ;;  %vm665_vm1 = vcmp.gt.f32.partialorder %v513_v44, 0.0  ;;  %v729_v52 = vmul.f32 0.2, %v513_v44 }
  0xf9   :  { %vm631_vm2 = vcmp.gt.f32.partialorder %v377_v47, 0.0  ;;  %v695_v53 = vmul.f32 0.2, %v377_v47  ;;  %vm663_vm3 = vcmp.gt.f32.partialorder %v505_v48, 0.0  ;;  %v727_v54 = vmul.f32 0.2, %v505_v48 }
  0xfa   :  { %v388_v55 = vadd.f32 %v1566_v49, %v1826_v40  ;;  %v516_v56 = vadd.f32 %v1598_v50, %v1826_v40  ;;  %v379_v57 = vpop.f32.mrb[3].mxu0  ;;  %v507_v58 = vpop.f32.mrb[3].mxu1  ;;  %v761_v59 = vsel %vm633_vm0, %v385_v43, %v697_v51  ;;  %v793_v60 = vsel %vm665_vm1, %v513_v44, %v729_v52 }
  0xfb   :  { %v380_v61 = vadd.f32 %v1826_v40, %v379_v57  ;;  %v508_v62 = vadd.f32 %v1826_v40, %v507_v58  ;;  %v759_v3 = vsel %vm631_vm2, %v377_v47, %v695_v53  ;;  %v791_v4 = vsel %vm663_vm3, %v505_v48, %v727_v54 }
  0xfc   :  { %vm634_vm4 = vcmp.gt.f32.partialorder %v388_v55, 0.0  ;;  %v698_v63 = vmul.f32 0.2, %v388_v55  ;;  %vm666_vm5 = vcmp.gt.f32.partialorder %v516_v56, 0.0  ;;  %v730_v0 = vmul.f32 0.2, %v516_v56 }
  0xfd   :  { %vm632_vm6 = vcmp.gt.f32.partialorder %v380_v61, 0.0  ;;  %v696_v1 = vmul.f32 0.2, %v380_v61  ;;  %vm664_vm7 = vcmp.gt.f32.partialorder %v508_v62, 0.0  ;;  %v728_v2 = vmul.f32 0.2, %v508_v62 }
  0xfe   :  { %v762_v5 = vsel %vm634_vm4, %v388_v55, %v698_v63  ;;  %v794_v6 = vsel %vm666_vm5, %v516_v56, %v730_v0  ;;  %v1569_v7 = vpop.f32.mrb[4].mxu0  ;;  %v1601_v8 = vpop.f32.mrb[4].mxu1 }
  0xff   :  { %v1324_v9 = vpack.c.bf16 %v762_v5, %v761_v59  ;;  %v1404_v10 = vpack.c.bf16 %v794_v6, %v793_v60  ;;  %v760_v11 = vsel %vm632_vm6, %v380_v61, %v696_v1  ;;  %v792_v12 = vsel %vm664_vm7, %v508_v62, %v728_v2  ;;  %v392_v13 = vpop.f32.mrb[5].mxu0  ;;  %v520_v14 = vpop.f32.mrb[5].mxu1 }
 0x100   :  { %v1319_v15 = vpack.c.bf16 %v760_v11, %v759_v3  ;;  %v1399_v16 = vpack.c.bf16 %v792_v12, %v791_v4  ;;  %v401_v17 = vadd.f32 %v1569_v7, %v1826_v40  ;;  %v529_v18 = vadd.f32 %v1601_v8, %v1826_v40  ;;  %v1570_v19 = vpop.f32.mrb[6].mxu0  ;;  %v1602_v20 = vpop.f32.mrb[6].mxu1 }
 0x101   :  { %1476 = vst [vmem:[%s2000_s3 + $0x8] sm:$0xff] %v1324_v9   ;;  %1492 = vst [vmem:[%s2000_s3 + $0x88] sm:$0xff] %v1404_v10   ;;  %v393_v21 = vadd.f32 %v1826_v40, %v392_v13  ;;  %v521_v22 = vadd.f32 %v1826_v40, %v520_v14  ;;  %v404_v23 = vadd.f32 %v1570_v19, %v1826_v40  ;;  %v395_v25 = vpop.f32.mrb[7].mxu0  ;;  %v523_v26 = vpop.f32.mrb[7].mxu1 }
 0x102   :  { %v532_v24 = vadd.f32 %v1602_v20, %v1826_v40  ;;  %1320 = vst [vmem:[%s2000_s3] sm:$0xff] %v1319_v15   ;;  %1491 = vst [vmem:[%s2000_s3 + $0x80] sm:$0xff] %v1399_v16   ;;  %vm637_vm8 = vcmp.gt.f32.partialorder %v401_v17, 0.0  ;;  %v701_v27 = vmul.f32 0.2, %v401_v17  ;;  %vm669_vm9 = vcmp.gt.f32.partialorder %v529_v18, 0.0 }
 0x103   :  { %v733_v28 = vmul.f32 0.2, %v529_v18  ;;  %vm635_vm10 = vcmp.gt.f32.partialorder %v393_v21, 0.0  ;;  %v699_v29 = vmul.f32 0.2, %v393_v21  ;;  %vm667_vm11 = vcmp.gt.f32.partialorder %v521_v22, 0.0 }
 0x104   :  { %v731_v30 = vmul.f32 0.2, %v521_v22  ;;  %v765_v31 = vsel %vm637_vm8, %v401_v17, %v701_v27  ;;  %vm638_vm12 = vcmp.gt.f32.partialorder %v404_v23, 0.0  ;;  %v702_v33 = vmul.f32 0.2, %v404_v23 }
 0x105   :  { %v797_v32 = vsel %vm669_vm9, %v529_v18, %v733_v28  ;;  %v763_v34 = vsel %vm635_vm10, %v393_v21, %v699_v29  ;;  %vm670_vm13 = vcmp.gt.f32.partialorder %v532_v24, 0.0  ;;  %v734_v36 = vmul.f32 0.2, %v532_v24  ;;  %v1573_v37 = vpop.f32.mrb[8].mxu0  ;;  %v1605_v38 = vpop.f32.mrb[8].mxu1 }
 0x106   :  { %v795_v35 = vsel %vm667_vm11, %v521_v22, %v731_v30  ;;  %v766_v39 = vsel %vm638_vm12, %v404_v23, %v702_v33  ;;  %v396_v41 = vadd.f32 %v1826_v40, %v395_v25  ;;  %v524_v42 = vadd.f32 %v1826_v40, %v523_v26  ;;  %v408_v44 = vpop.f32.mrb[9].mxu0  ;;  %v536_v45 = vpop.f32.mrb[9].mxu1 }
 0x107   :  { %v417_v43 = vadd.f32 %v1573_v37, %v1826_v40  ;;  %v1334_v46 = vpack.c.bf16 %v766_v39, %v765_v31  ;;  %v798_v47 = vsel %vm670_vm13, %v532_v24, %v734_v36  ;;  %v545_v48 = vadd.f32 %v1605_v38, %v1826_v40  ;;  %v1574_v50 = vpop.f32.mrb[10].mxu0  ;;  %v1606_v51 = vpop.f32.mrb[10].mxu1 }
 0x108   :  { %v409_v49 = vadd.f32 %v1826_v40, %v408_v44  ;;  %v1414_v52 = vpack.c.bf16 %v798_v47, %v797_v32  ;;  %vm636_vm14 = vcmp.gt.f32.partialorder %v396_v41, 0.0  ;;  %v700_v53 = vmul.f32 0.2, %v396_v41  ;;  %v411_v54 = vpop.f32.mrb[11].mxu0  ;;  %v539_v55 = vpop.f32.mrb[11].mxu1 }
 0x109   :  { %vm668_vm15 = vcmp.gt.f32.partialorder %v524_v42, 0.0  ;;  %1478 = vst [vmem:[%s2000_s3 + $0x18] sm:$0xff] %v1334_v46   ;;  %v732_v56 = vmul.f32 0.2, %v524_v42  ;;  %vm641_vm0 = vcmp.gt.f32.partialorder %v417_v43, 0.0  ;;  %vm673_vm1 = vcmp.gt.f32.partialorder %v545_v48, 0.0 }
 0x10a   :  { %v705_v57 = vmul.f32 0.2, %v417_v43  ;;  %1494 = vst [vmem:[%s2000_s3 + $0x98] sm:$0xff] %v1414_v52   ;;  %v764_v58 = vsel %vm636_vm14, %v396_v41, %v700_v53  ;;  %v737_v59 = vmul.f32 0.2, %v545_v48  ;;  %vm639_vm2 = vcmp.gt.f32.partialorder %v409_v49, 0.0 }
 0x10b   :  { %v703_v60 = vmul.f32 0.2, %v409_v49  ;;  %v1329_v61 = vpack.c.bf16 %v764_v58, %v763_v34  ;;  %v796_v62 = vsel %vm668_vm15, %v524_v42, %v732_v56  ;;  %v537_v0 = vadd.f32 %v1826_v40, %v536_v45 }
 0x10c   :  { %v769_v63 = vsel %vm641_vm0, %v417_v43, %v705_v57  ;;  %v1409_v1 = vpack.c.bf16 %v796_v62, %v795_v35  ;;  %v801_v2 = vsel %vm673_vm1, %v545_v48, %v737_v59  ;;  %v420_v4 = vadd.f32 %v1574_v50, %v1826_v40 }
 0x10d   :  { %v767_v3 = vsel %vm639_vm2, %v409_v49, %v703_v60  ;;  %1477 = vst [vmem:[%s2000_s3 + $0x10] sm:$0xff] %v1329_v61   ;;  %vm671_vm3 = vcmp.gt.f32.partialorder %v537_v0, 0.0  ;;  %v735_v5 = vmul.f32 0.2, %v537_v0  ;;  %v548_v6 = vadd.f32 %v1606_v51, %v1826_v40  ;;  %v1577_v8 = vpop.f32.mrb[12].mxu0  ;;  %v1609_v9 = vpop.f32.mrb[12].mxu1 }
 0x10e   :  { %v412_v7 = vadd.f32 %v1826_v40, %v411_v54  ;;  %1493 = vst [vmem:[%s2000_s3 + $0x90] sm:$0xff] %v1409_v1   ;;  %vm642_vm4 = vcmp.gt.f32.partialorder %v420_v4, 0.0  ;;  %v706_v10 = vmul.f32 0.2, %v420_v4  ;;  %v540_v11 = vadd.f32 %v1826_v40, %v539_v55  ;;  %v424_v13 = vpop.f32.mrb[13].mxu0  ;;  %v552_v14 = vpop.f32.mrb[13].mxu1 }
 0x10f   :  { %v433_v12 = vadd.f32 %v1577_v8, %v1826_v40  ;;  %v799_v15 = vsel %vm671_vm3, %v537_v0, %v735_v5  ;;  %vm674_vm5 = vcmp.gt.f32.partialorder %v548_v6, 0.0  ;;  %v738_v16 = vmul.f32 0.2, %v548_v6  ;;  %v1578_v17 = vpop.f32.mrb[14].mxu0  ;;  %v1610_v18 = vpop.f32.mrb[14].mxu1 }
 0x110   :  { %vm640_vm6 = vcmp.gt.f32.partialorder %v412_v7, 0.0  ;;  %v770_v19 = vsel %vm642_vm4, %v420_v4, %v706_v10  ;;  %v704_v20 = vmul.f32 0.2, %v412_v7  ;;  %vm672_vm7 = vcmp.gt.f32.partialorder %v540_v11, 0.0  ;;  %v427_v22 = vpop.f32.mrb[15].mxu0  ;;  %v555_v26 = vpop.f32.mrb[15].mxu1 }
 0x111   :  { %v736_v21 = vmul.f32 0.2, %v540_v11  ;;  %v1344_v23 = vpack.c.bf16 %v770_v19, %v769_v63  ;;  %v802_v24 = vsel %vm674_vm5, %v548_v6, %v738_v16  ;;  %vm645_vm8 = vcmp.gt.f32.partialorder %v433_v12, 0.0 }
 0x112   :  { %v709_v25 = vmul.f32 0.2, %v433_v12  ;;  %v1424_v27 = vpack.c.bf16 %v802_v24, %v801_v2  ;;  %v768_v28 = vsel %vm640_vm6, %v412_v7, %v704_v20  ;;  %v561_v30 = vadd.f32 %v1609_v9, %v1826_v40 }
 0x113   :  { %v800_v29 = vsel %vm672_vm7, %v540_v11, %v736_v21  ;;  %1480 = vst [vmem:[%s2000_s3 + $0x28] sm:$0xff] %v1344_v23   ;;  %v1339_v31 = vpack.c.bf16 %v768_v28, %v767_v3  ;;  %v425_v34 = vadd.f32 %v1826_v40, %v424_v13  ;;  %v553_v36 = vadd.f32 %v1826_v40, %v552_v14 }
 0x114   :  { %v1419_v32 = vpack.c.bf16 %v800_v29, %v799_v15  ;;  %v773_v33 = vsel %vm645_vm8, %v433_v12, %v709_v25  ;;  %1496 = vst [vmem:[%s2000_s3 + $0xa8] sm:$0xff] %v1424_v27   ;;  %vm677_vm9 = vcmp.gt.f32.partialorder %v561_v30, 0.0  ;;  %v741_v35 = vmul.f32 0.2, %v561_v30 }
 0x115   :  { %v436_v37 = vadd.f32 %v1578_v17, %v1826_v40  ;;  %1479 = vst [vmem:[%s2000_s3 + $0x20] sm:$0xff] %v1339_v31   ;;  %vm643_vm10 = vcmp.gt.f32.partialorder %v425_v34, 0.0  ;;  %v707_v38 = vmul.f32 0.2, %v425_v34  ;;  %v564_v39 = vadd.f32 %v1610_v18, %v1826_v40  ;;  %v1581_v42 = vpop.f32.mrb[16].mxu0  ;;  %v1613_v43 = vpop.f32.mrb[16].mxu1 }
 0x116   :  { %1495 = vst [vmem:[%s2000_s3 + $0xa0] sm:$0xff] %v1419_v32   ;;  %v428_v41 = vadd.f32 %v1826_v40, %v427_v22  ;;  %v805_v44 = vsel %vm677_vm9, %v561_v30, %v741_v35  ;;  %vm675_vm11 = vcmp.gt.f32.partialorder %v553_v36, 0.0  ;;  %v739_v45 = vmul.f32 0.2, %v553_v36  ;;  %v440_v46 = vpop.f32.mrb[17].mxu0  ;;  %v568_v47 = vpop.f32.mrb[17].mxu1 }
 0x117   :  { %vm646_vm12 = vcmp.gt.f32.partialorder %v436_v37, 0.0  ;;  %v771_v48 = vsel %vm643_vm10, %v425_v34, %v707_v38  ;;  %v710_v49 = vmul.f32 0.2, %v436_v37  ;;  %vm678_vm13 = vcmp.gt.f32.partialorder %v564_v39, 0.0  ;;  %v1582_v51 = vpop.f32.mrb[18].mxu0  ;;  %v1614_v55 = vpop.f32.mrb[18].mxu1 }
 0x118   :  { %v742_v50 = vmul.f32 0.2, %v564_v39  ;;  %v803_v52 = vsel %vm675_vm11, %v553_v36, %v739_v45  ;;  %vm644_vm14 = vcmp.gt.f32.partialorder %v428_v41, 0.0  ;;  %v708_v53 = vmul.f32 0.2, %v428_v41  ;;  %v443_v56 = vpop.f32.mrb[19].mxu0 }
 0x119   :  { %v556_v54 = vadd.f32 %v1826_v40, %v555_v26  ;;  %v774_v57 = vsel %vm646_vm12, %v436_v37, %v710_v49  ;;  %v449_v59 = vadd.f32 %v1581_v42, %v1826_v40  ;;  %v577_v60 = vadd.f32 %v1613_v43, %v1826_v40  ;;  %v571_v61 = vpop.f32.mrb[19].mxu1 }
 0x11a   :  { %v806_v58 = vsel %vm678_vm13, %v564_v39, %v742_v50  ;;  %v1354_v62 = vpack.c.bf16 %v774_v57, %v773_v33  ;;  %v772_v0 = vsel %vm644_vm14, %v428_v41, %v708_v53  ;;  %v441_v5 = vadd.f32 %v1826_v40, %v440_v46 }
 0x11b   :  { %v1434_v63 = vpack.c.bf16 %v806_v58, %v805_v44  ;;  %vm676_vm15 = vcmp.gt.f32.partialorder %v556_v54, 0.0  ;;  %v1349_v1 = vpack.c.bf16 %v772_v0, %v771_v48  ;;  %v740_v2 = vmul.f32 0.2, %v556_v54 }
 0x11c   :  { %vm649_vm0 = vcmp.gt.f32.partialorder %v449_v59, 0.0  ;;  %v713_v3 = vmul.f32 0.2, %v449_v59  ;;  %1482 = vst [vmem:[%s2000_s3 + $0x38] sm:$0xff] %v1354_v62   ;;  %vm681_vm1 = vcmp.gt.f32.partialorder %v577_v60, 0.0  ;;  %v569_v6 = vadd.f32 %v1826_v40, %v568_v47 }
 0x11d   :  { %1498 = vst [vmem:[%s2000_s3 + $0xb8] sm:$0xff] %v1434_v63   ;;  %v745_v4 = vmul.f32 0.2, %v577_v60  ;;  %1481 = vst [vmem:[%s2000_s3 + $0x30] sm:$0xff] %v1349_v1   ;;  %v804_v7 = vsel %vm676_vm15, %v556_v54, %v740_v2  ;;  %v452_v9 = vadd.f32 %v1582_v51, %v1826_v40  ;;  %v580_v10 = vadd.f32 %v1614_v55, %v1826_v40  ;;  %v1585_v11 = vpop.f32.mrb[20].mxu0  ;;  %v1617_v12 = vpop.f32.mrb[20].mxu1 }
 0x11e   :  { %v777_v8 = vsel %vm649_vm0, %v449_v59, %v713_v3  ;;  %v1429_v13 = vpack.c.bf16 %v804_v7, %v803_v52  ;;  %vm647_vm2 = vcmp.gt.f32.partialorder %v441_v5, 0.0  ;;  %v711_v15 = vmul.f32 0.2, %v441_v5  ;;  %v456_v16 = vpop.f32.mrb[21].mxu0  ;;  %v584_v17 = vpop.f32.mrb[21].mxu1 }
 0x11f   :  { %v809_v14 = vsel %vm681_vm1, %v577_v60, %v745_v4  ;;  %vm679_vm3 = vcmp.gt.f32.partialorder %v569_v6, 0.0  ;;  %v743_v18 = vmul.f32 0.2, %v569_v6  ;;  %vm650_vm4 = vcmp.gt.f32.partialorder %v452_v9, 0.0  ;;  %v1586_v23 = vpop.f32.mrb[22].mxu0  ;;  %v1618_v24 = vpop.f32.mrb[22].mxu1 }
 0x120   :  { %v714_v19 = vmul.f32 0.2, %v452_v9  ;;  %1497 = vst [vmem:[%s2000_s3 + $0xb0] sm:$0xff] %v1429_v13   ;;  %v775_v20 = vsel %vm647_vm2, %v441_v5, %v711_v15  ;;  %vm682_vm5 = vcmp.gt.f32.partialorder %v580_v10, 0.0  ;;  %v746_v21 = vmul.f32 0.2, %v580_v10 }
 0x121   :  { %v444_v22 = vadd.f32 %v1826_v40, %v443_v56  ;;  %v807_v25 = vsel %vm679_vm3, %v569_v6, %v743_v18  ;;  %v572_v27 = vadd.f32 %v1826_v40, %v571_v61  ;;  %v465_v28 = vadd.f32 %v1585_v11, %v1826_v40  ;;  %v459_v29 = vpop.f32.mrb[23].mxu0  ;;  %v587_v30 = vpop.f32.mrb[23].mxu1 }
 0x122   :  { %v778_v26 = vsel %vm650_vm4, %v452_v9, %v714_v19  ;;  %v810_v32 = vsel %vm682_vm5, %v580_v10, %v746_v21  ;;  %v593_v38 = vadd.f32 %v1617_v12, %v1826_v40  ;;  %v457_v39 = vadd.f32 %v1826_v40, %v456_v16 }
 0x123   :  { %v1364_v31 = vpack.c.bf16 %v778_v26, %v777_v8  ;;  %vm648_vm6 = vcmp.gt.f32.partialorder %v444_v22, 0.0  ;;  %v712_v33 = vmul.f32 0.2, %v444_v22  ;;  %v1444_v34 = vpack.c.bf16 %v810_v32, %v809_v14 }
 0x124   :  { %vm680_vm7 = vcmp.gt.f32.partialorder %v572_v27, 0.0  ;;  %v744_v35 = vmul.f32 0.2, %v572_v27  ;;  %vm653_vm8 = vcmp.gt.f32.partialorder %v465_v28, 0.0  ;;  %v717_v37 = vmul.f32 0.2, %v465_v28 }
 0x125   :  { %1484 = vst [vmem:[%s2000_s3 + $0x48] sm:$0xff] %v1364_v31   ;;  %v776_v36 = vsel %vm648_vm6, %v444_v22, %v712_v33  ;;  %1500 = vst [vmem:[%s2000_s3 + $0xc8] sm:$0xff] %v1444_v34   ;;  %v585_v43 = vadd.f32 %v1826_v40, %v584_v17  ;;  %v468_v44 = vadd.f32 %v1586_v23, %v1826_v40  ;;  %v1589_v45 = vpop.f32.mrb[24].mxu0  ;;  %v1621_v46 = vpop.f32.mrb[24].mxu1  ;;  %vm685_vm9 = vcmp.gt.f32.partialorder %v593_v38, 0.0 }
 0x126   :  { %v1359_v41 = vpack.c.bf16 %v776_v36, %v775_v20  ;;  %v808_v42 = vsel %vm680_vm7, %v572_v27, %v744_v35  ;;  %v749_v48 = vmul.f32 0.2, %v593_v38  ;;  %v472_v49 = vpop.f32.mrb[25].mxu0  ;;  %v600_v50 = vpop.f32.mrb[25].mxu1  ;;  %v781_v51 = vsel %vm653_vm8, %v465_v28, %v717_v37 }
 0x127   :  { %v1439_v47 = vpack.c.bf16 %v808_v42, %v807_v25  ;;  %vm651_vm10 = vcmp.gt.f32.partialorder %v457_v39, 0.0  ;;  %v715_v52 = vmul.f32 0.2, %v457_v39  ;;  %v747_v53 = vmul.f32 0.2, %v585_v43  ;;  %v1590_v56 = vpop.f32.mrb[26].mxu0 }
 0x128   :  { %1483 = vst [vmem:[%s2000_s3 + $0x40] sm:$0xff] %v1359_v41   ;;  %vm683_vm11 = vcmp.gt.f32.partialorder %v585_v43, 0.0  ;;  %vm654_vm12 = vcmp.gt.f32.partialorder %v468_v44, 0.0  ;;  %v718_v54 = vmul.f32 0.2, %v468_v44  ;;  %v596_v55 = vadd.f32 %v1618_v24, %v1826_v40  ;;  %v1622_v57 = vpop.f32.mrb[26].mxu1 }
 0x129   :  { %1499 = vst [vmem:[%s2000_s3 + $0xc0] sm:$0xff] %v1439_v47   ;;  %v813_v58 = vsel %vm685_vm9, %v593_v38, %v749_v48  ;;  %v779_v59 = vsel %vm651_vm10, %v457_v39, %v715_v52  ;;  %v460_v60 = vadd.f32 %v1826_v40, %v459_v29  ;;  %v588_v61 = vadd.f32 %v1826_v40, %v587_v30  ;;  %v475_v62 = vpop.f32.mrb[27].mxu0  ;;  %v603_v63 = vpop.f32.mrb[27].mxu1 }
 0x12a   :  { %v782_v0 = vsel %vm654_vm12, %v468_v44, %v718_v54  ;;  %vm686_vm13 = vcmp.gt.f32.partialorder %v596_v55, 0.0  ;;  %v750_v1 = vmul.f32 0.2, %v596_v55  ;;  %v481_v2 = vadd.f32 %v1589_v45, %v1826_v40 }
 0x12b   :  { %v1374_v3 = vpack.c.bf16 %v782_v0, %v781_v51  ;;  %vm652_vm14 = vcmp.gt.f32.partialorder %v460_v60, 0.0  ;;  %v716_v4 = vmul.f32 0.2, %v460_v60  ;;  %vm684_vm15 = vcmp.gt.f32.partialorder %v588_v61, 0.0 }
 0x12c   :  { %v814_v5 = vsel %vm686_vm13, %v596_v55, %v750_v1  ;;  %v748_v6 = vmul.f32 0.2, %v588_v61  ;;  %vm657_vm0 = vcmp.gt.f32.partialorder %v481_v2, 0.0  ;;  %v721_v7 = vmul.f32 0.2, %v481_v2 }
 0x12d   :  { %1486 = vst [vmem:[%s2000_s3 + $0x58] sm:$0xff] %v1374_v3   ;;  %v1454_v8 = vpack.c.bf16 %v814_v5, %v813_v58  ;;  %v780_v9 = vsel %vm652_vm14, %v460_v60, %v716_v4  ;;  %v609_v10 = vadd.f32 %v1621_v46, %v1826_v40  ;;  %v473_v11 = vadd.f32 %v1826_v40, %v472_v49  ;;  %v1593_v12 = vpop.f32.mrb[28].mxu0  ;;  %v1625_v13 = vpop.f32.mrb[28].mxu1 }
 0x12e   :  { %v811_v14 = vsel %vm683_vm11, %v585_v43, %v747_v53  ;;  %v1369_v15 = vpack.c.bf16 %v780_v9, %v779_v59  ;;  %v812_v16 = vsel %vm684_vm15, %v588_v61, %v748_v6  ;;  %v601_v17 = vadd.f32 %v1826_v40, %v600_v50  ;;  %v488_v18 = vpop.f32.mrb[29].mxu0  ;;  %v616_v19 = vpop.f32.mrb[29].mxu1 }
 0x12f   :  { %1502 = vst [vmem:[%s2000_s3 + $0xd8] sm:$0xff] %v1454_v8   ;;  %v1449_v20 = vpack.c.bf16 %v812_v16, %v811_v14  ;;  %vm689_vm1 = vcmp.gt.f32.partialorder %v609_v10, 0.0  ;;  %v753_v21 = vmul.f32 0.2, %v609_v10  ;;  %vm655_vm2 = vcmp.gt.f32.partialorder %v473_v11, 0.0  ;;  %v1594_v22 = vpop.f32.mrb[30].mxu0 }
 0x130   :  { %v1626_v23 = vpop.f32.mrb[30].mxu1  ;;  %1485 = vst [vmem:[%s2000_s3 + $0x50] sm:$0xff] %v1369_v15   ;;  %v785_v24 = vsel %vm657_vm0, %v481_v2, %v721_v7  ;;  %v719_v25 = vmul.f32 0.2, %v473_v11  ;;  %vm687_vm3 = vcmp.gt.f32.partialorder %v601_v17, 0.0  ;;  %v484_v26 = vadd.f32 %v1590_v56, %v1826_v40  ;;  %v491_v27 = vpop.f32.mrb[31].mxu0 }
 0x131   :  { %1501 = vst [vmem:[%s2000_s3 + $0xd0] sm:$0xff] %v1449_v20   ;;  %v751_v28 = vmul.f32 0.2, %v601_v17  ;;  %v612_v29 = vadd.f32 %v1622_v57, %v1826_v40  ;;  %v476_v30 = vadd.f32 %v1826_v40, %v475_v62  ;;  %v604_v31 = vadd.f32 %v1826_v40, %v603_v63  ;;  %v619_v32 = vpop.f32.mrb[31].mxu1 }
 0x132   :  { %v817_v33 = vsel %vm689_vm1, %v609_v10, %v753_v21  ;;  %v783_v34 = vsel %vm655_vm2, %v473_v11, %v719_v25  ;;  %vm658_vm4 = vcmp.gt.f32.partialorder %v484_v26, 0.0  ;;  %v722_v35 = vmul.f32 0.2, %v484_v26 }
 0x133   :  { %vm690_vm5 = vcmp.gt.f32.partialorder %v612_v29, 0.0  ;;  %v754_v36 = vmul.f32 0.2, %v612_v29  ;;  %vm656_vm6 = vcmp.gt.f32.partialorder %v476_v30, 0.0  ;;  %v720_v37 = vmul.f32 0.2, %v476_v30 }
 0x134   :  { %v786_v38 = vsel %vm658_vm4, %v484_v26, %v722_v35  ;;  %vm688_vm7 = vcmp.gt.f32.partialorder %v604_v31, 0.0  ;;  %v752_v39 = vmul.f32 0.2, %v604_v31  ;;  %v497_v41 = vadd.f32 %v1593_v12, %v1826_v40 }
 0x135   :  { %v1384_v42 = vpack.c.bf16 %v786_v38, %v785_v24  ;;  %v818_v43 = vsel %vm690_vm5, %v612_v29, %v754_v36  ;;  %v784_v44 = vsel %vm656_vm6, %v476_v30, %v720_v37  ;;  %v625_v45 = vadd.f32 %v1625_v13, %v1826_v40 }
 0x136   :  { %v815_v46 = vsel %vm687_vm3, %v601_v17, %v751_v28  ;;  %v1464_v47 = vpack.c.bf16 %v818_v43, %v817_v33  ;;  %v1379_v48 = vpack.c.bf16 %v784_v44, %v783_v34  ;;  %v816_v49 = vsel %vm688_vm7, %v604_v31, %v752_v39 }
 0x137   :  { %1488 = vst [vmem:[%s2000_s3 + $0x68] sm:$0xff] %v1384_v42   ;;  %v1459_v50 = vpack.c.bf16 %v816_v49, %v815_v46  ;;  %vm661_vm8 = vcmp.gt.f32.partialorder %v497_v41, 0.0  ;;  %v725_v51 = vmul.f32 0.2, %v497_v41  ;;  %v757_v52 = vmul.f32 0.2, %v625_v45 }
 0x138   :  { %1504 = vst [vmem:[%s2000_s3 + $0xe8] sm:$0xff] %v1464_v47   ;;  %1487 = vst [vmem:[%s2000_s3 + $0x60] sm:$0xff] %v1379_v48   ;;  %v489_v53 = vadd.f32 %v1826_v40, %v488_v18  ;;  %v617_v54 = vadd.f32 %v1826_v40, %v616_v19  ;;  %v500_v55 = vadd.f32 %v1594_v22, %v1826_v40  ;;  %vm693_vm9 = vcmp.gt.f32.partialorder %v625_v45, 0.0 }
 0x139   :  { %v628_v56 = vadd.f32 %v1626_v23, %v1826_v40  ;;  %1503 = vst [vmem:[%s2000_s3 + $0xe0] sm:$0xff] %v1459_v50   ;;  %v492_v57 = vadd.f32 %v1826_v40, %v491_v27  ;;  %v620_v58 = vadd.f32 %v1826_v40, %v619_v32  ;;  %v789_v59 = vsel %vm661_vm8, %v497_v41, %v725_v51 }
 0x13a   :  { %vm659_vm10 = vcmp.gt.f32.partialorder %v489_v53, 0.0  ;;  %v723_v60 = vmul.f32 0.2, %v489_v53  ;;  %v755_v61 = vmul.f32 0.2, %v617_v54  ;;  %vm662_vm11 = vcmp.gt.f32.partialorder %v500_v55, 0.0 }
 0x13b   :  { %v726_v62 = vmul.f32 0.2, %v500_v55  ;;  %vm694_vm12 = vcmp.gt.f32.partialorder %v628_v56, 0.0  ;;  %v758_v63 = vmul.f32 0.2, %v628_v56  ;;  %v821_v0 = vsel %vm693_vm9, %v625_v45, %v757_v52 }
 0x13c   :  { %vm691_vm13 = vcmp.gt.f32.partialorder %v617_v54, 0.0  ;;  %vm660_vm14 = vcmp.gt.f32.partialorder %v492_v57, 0.0  ;;  %v724_v1 = vmul.f32 0.2, %v492_v57  ;;  %vm692_vm15 = vcmp.gt.f32.partialorder %v620_v58, 0.0 }
 0x13d   :  { %v790_v2 = vsel %vm662_vm11, %v500_v55, %v726_v62  ;;  %v822_v3 = vsel %vm694_vm12, %v628_v56, %v758_v63  ;;  %v756_v4 = vmul.f32 0.2, %v620_v58  ;;  %v787_v5 = vsel %vm659_vm10, %v489_v53, %v723_v60 }
 0x13e   :  { %v1394_v6 = vpack.c.bf16 %v790_v2, %v789_v59  ;;  %v1474_v7 = vpack.c.bf16 %v822_v3, %v821_v0  ;;  %v788_v40 = vsel %vm660_vm14, %v492_v57, %v724_v1  ;;  %v819_v8 = vsel %vm691_vm13, %v617_v54, %v755_v61 }
 0x13f   :  { %v1389_v9 = vpack.c.bf16 %v788_v40, %v787_v5  ;;  %v820_v10 = vsel %vm692_vm15, %v620_v58, %v756_v4 }
 0x140   :  { %1490 = vst [vmem:[%s2000_s3 + $0x78] sm:$0xff] %v1394_v6   ;;  %1506 = vst [vmem:[%s2000_s3 + $0xf8] sm:$0xff] %v1474_v7   ;;  %v1469_v11 = vpack.c.bf16 %v820_v10, %v819_v8 }
 0x141   :  { %1489 = vst [vmem:[%s2000_s3 + $0x70] sm:$0xff] %v1389_v9  }
 0x142   :  { %1505 = vst [vmem:[%s2000_s3 + $0xf0] sm:$0xff] %v1469_v11  }

// kernel: vae_forward.7
= control target key start
LH: loop header
LB: loop body
LE: loop exit
PB: predicated region body
PF: predicated region fallthrough
CT: control target
= control target key end

     0   :  { %s868_s1 = inlined_call_operand.vmem [shape: bf16[256,128], index: 1, kind: input, shape index: {}]   ;;  %s869_s0 = inlined_call_operand.vmem [shape: bf16[128,256], index: 0, kind: input, shape index: {}]   ;;  %s870_s2 = inlined_call_operand.vmem [shape: f32[1,128], index: 2, kind: input, shape index: {}]   ;;  %s871_s3 = inlined_call_operand.vmem [shape: bf16[128,128], index: 3, kind: output, shape index: {}]  }
   0x1   :  { %v667_v0 = vld [vmem:[%s868_s1 + $0x40] sm:$0xff]   ;;  %v669_v2 = vld [vmem:[%s868_s1 + $0x48] sm:$0xff]   ;;  %v671_v4 = vld [vmem:[%s868_s1 + $0x50] sm:$0xff]  }
   0x2   :  { %v668_v1 = vld [vmem:[%s868_s1] sm:$0xff]   ;;  %587 = vmatprep.subr.bf16.mxu0 %v667_v0  ;;  %651 = vmatprep.subr.bf16.mxu1 %v667_v0  ;;  %v670_v3 = vld [vmem:[%s868_s1 + $0x8] sm:$0xff]   ;;  %v672_v5 = vld [vmem:[%s868_s1 + $0x10] sm:$0xff]  }
   0x3   :  { %588 = vmatpush3.bf16.msra.mxu0 %v668_v1  ;;  %659 = vmatpush3.bf16.msra.mxu1 %v668_v1  ;;  %v673_v6 = vld [vmem:[%s868_s1 + $0x58] sm:$0xff]   ;;  %v675_v8 = vld [vmem:[%s868_s1 + $0x60] sm:$0xff]   ;;  %v677_v10 = vld [vmem:[%s868_s1 + $0x68] sm:$0xff]  }
   0x4   :  { %589 = vmatprep.subr.bf16.mxu0 %v669_v2  ;;  %652 = vmatprep.subr.bf16.mxu1 %v669_v2  ;;  %v674_v7 = vld [vmem:[%s868_s1 + $0x18] sm:$0xff]   ;;  %v676_v9 = vld [vmem:[%s868_s1 + $0x20] sm:$0xff]   ;;  %v678_v13 = vld [vmem:[%s868_s1 + $0x28] sm:$0xff]  }
   0x5   :  { %v685_v11 = vld [vmem:[%s869_s0 + $0x4] ss:$8 sps:$4 sm:$0xff]   ;;  %v679_v14 = vld [vmem:[%s868_s1 + $0x70] sm:$0xff]   ;;  %v681_v16 = vld [vmem:[%s868_s1 + $0x78] sm:$0xff]  }
   0x6   :  { %v688_v12 = vld [vmem:[%s869_s0 + $0x44] ss:$8 sps:$4 sm:$0xff]   ;;  %278 = vmatprep.mubr.bf16.mxu0 %v685_v11  ;;  %v680_v15 = vld [vmem:[%s868_s1 + $0x30] sm:$0xff]   ;;  %v682_v17 = vld [vmem:[%s868_s1 + $0x38] sm:$0xff]  }
   0x7   :  { %590 = vmatpush3.bf16.msra.mxu0 %v670_v3  ;;  %660 = vmatpush3.bf16.msra.mxu1 %v670_v3  ;;  %v683_v18 = vld [vmem:[%s869_s0] ss:$8 sps:$4 sm:$0xff]   ;;  %v689_v20 = vld [vmem:[%s869_s0 + $0x14] ss:$8 sps:$4 sm:$0xff]   ;;  %v693_v22 = vld [vmem:[%s869_s0 + $0x10] ss:$8 sps:$4 sm:$0xff]  }
   0x8   :  { %591 = vmatprep.subr.bf16.mxu0 %v671_v4  ;;  %653 = vmatprep.subr.bf16.mxu1 %v671_v4  ;;  %v686_v19 = vld [vmem:[%s869_s0 + $0x40] ss:$8 sps:$4 sm:$0xff]   ;;  %v691_v21 = vld [vmem:[%s869_s0 + $0x54] ss:$8 sps:$4 sm:$0xff]   ;;  %v694_v23 = vld [vmem:[%s869_s0 + $0x50] ss:$8 sps:$4 sm:$0xff]  }
   0x9   :  { %310 = vmatprep.mubr.bf16.mxu1 %v688_v12  ;;  %v695_v24 = vld [vmem:[%s869_s0 + $0x24] ss:$8 sps:$4 sm:$0xff]   ;;  %v699_v26 = vld [vmem:[%s869_s0 + $0x20] ss:$8 sps:$4 sm:$0xff]   ;;  %v701_v28 = vld [vmem:[%s869_s0 + $0x34] ss:$8 sps:$4 sm:$0xff]  }
   0xa   :  { %v697_v25 = vld [vmem:[%s869_s0 + $0x64] ss:$8 sps:$4 sm:$0xff]   ;;  %v700_v27 = vld [vmem:[%s869_s0 + $0x60] ss:$8 sps:$4 sm:$0xff]   ;;  %v703_v29 = vld [vmem:[%s869_s0 + $0x74] ss:$8 sps:$4 sm:$0xff]  }
   0xb   :  { %592 = vmatpush3.bf16.msra.mxu0 %v672_v5  ;;  %661 = vmatpush3.bf16.msra.mxu1 %v672_v5  ;;  %v705_v30 = vld [vmem:[%s869_s0 + $0x30] ss:$8 sps:$4 sm:$0xff]   ;;  %v826_v34 = vld [vmem:[%s870_s2] ss:$0 sm:$0xff] }
   0xc   :  { %593 = vmatprep.subr.bf16.mxu0 %v673_v6  ;;  %654 = vmatprep.subr.bf16.mxu1 %v673_v6  ;;  %v706_v31 = vld [vmem:[%s869_s0 + $0x70] ss:$8 sps:$4 sm:$0xff]  }
   0xf   :  { %594 = vmatpush3.bf16.msra.mxu0 %v674_v7  ;;  %662 = vmatpush3.bf16.msra.mxu1 %v674_v7 }
  0x10   :  { %595 = vmatprep.subr.bf16.mxu0 %v675_v8  ;;  %655 = vmatprep.subr.bf16.mxu1 %v675_v8 }
  0x13   :  { %596 = vmatpush3.bf16.msra.mxu0 %v676_v9  ;;  %663 = vmatpush3.bf16.msra.mxu1 %v676_v9 }
  0x14   :  { %597 = vmatprep.subr.bf16.mxu0 %v677_v10  ;;  %656 = vmatprep.subr.bf16.mxu1 %v677_v10 }
  0x17   :  { %598 = vmatpush3.bf16.msra.mxu0 %v678_v13  ;;  %664 = vmatpush3.bf16.msra.mxu1 %v678_v13 }
  0x18   :  { %599 = vmatprep.subr.bf16.mxu0 %v679_v14  ;;  %657 = vmatprep.subr.bf16.mxu1 %v679_v14 }
  0x1b   :  { %600 = vmatpush3.bf16.msra.mxu0 %v680_v15  ;;  %665 = vmatpush3.bf16.msra.mxu1 %v680_v15 }
  0x1c   :  { %601 = vmatprep.subr.bf16.mxu0 %v681_v16  ;;  %658 = vmatprep.subr.bf16.mxu1 %v681_v16 }
  0x1f   :  { %602 = vmatpush3.bf16.msra.mxu0 %v682_v17  ;;  %666 = vmatpush3.bf16.msra.mxu1 %v682_v17 }
  0x22   :  { %279 = vmatmul.mubr.bf16.vlgmr.msra.gmra.mrb[0].mxu0 %v683_v18  ;;  %311 = vmatmul.mubr.bf16.vlgmr.msra.gmra.mrb[0].mxu1 %v686_v19 }
  0x23   :  { %286 = vmatprep.mubr.bf16.mxu0 %v689_v20  ;;  %318 = vmatprep.mubr.bf16.mxu1 %v691_v21 }
  0x2a   :  { %287 = vmatmul.mubr.bf16.gmra.mrb[4].mxu0 %v693_v22  ;;  %319 = vmatmul.mubr.bf16.gmra.mrb[4].mxu1 %v694_v23 }
  0x2b   :  { %294 = vmatprep.mubr.bf16.mxu0 %v695_v24  ;;  %326 = vmatprep.mubr.bf16.mxu1 %v697_v25 }
  0x32   :  { %295 = vmatmul.mubr.bf16.gmra.mrb[8].mxu0 %v699_v26  ;;  %327 = vmatmul.mubr.bf16.gmra.mrb[8].mxu1 %v700_v27 }
  0x33   :  { %302 = vmatprep.mubr.bf16.mxu0 %v701_v28  ;;  %334 = vmatprep.mubr.bf16.mxu1 %v703_v29 }
  0x3a   :  { %303 = vmatmul.mubr.bf16.gmra.mrb[12].mxu0 %v705_v30  ;;  %335 = vmatmul.mubr.bf16.gmra.mrb[12].mxu1 %v706_v31 }
  0xf5   :  { %v603_v32 = vpop.f32.mrb[0].mxu0  ;;  %v627_v33 = vpop.f32.mrb[0].mxu1 }
  0xf6   :  { %v604_v35 = vpop.f32.mrb[1].mxu0  ;;  %v628_v36 = vpop.f32.mrb[1].mxu1 }
  0xf7   :  { %v605_v37 = vadd.f32 %v604_v35, %v603_v32  ;;  %v629_v38 = vadd.f32 %v628_v36, %v627_v33  ;;  %v606_v39 = vpop.f32.mrb[2].mxu0  ;;  %v630_v40 = vpop.f32.mrb[2].mxu1 }
  0xf8   :  { %v607_v41 = vpop.f32.mrb[3].mxu0  ;;  %v631_v42 = vpop.f32.mrb[3].mxu1 }
  0xf9   :  { %v281_v43 = vadd.f32 %v605_v37, %v826_v34  ;;  %v313_v44 = vadd.f32 %v629_v38, %v826_v34  ;;  %v608_v45 = vadd.f32 %v607_v41, %v606_v39  ;;  %v632_v46 = vadd.f32 %v631_v42, %v630_v40 }
  0xfb   :  { %v359_v47 = vmul.f32 0.2, %v281_v43  ;;  %v367_v48 = vmul.f32 0.2, %v313_v44  ;;  %vm343_vm0 = vcmp.gt.f32.partialorder %v281_v43, 0.0  ;;  %vm351_vm1 = vcmp.gt.f32.partialorder %v313_v44, 0.0 }
  0xfc   :  { %v284_v49 = vadd.f32 %v608_v45, %v826_v34  ;;  %v316_v50 = vadd.f32 %v632_v46, %v826_v34 }
  0xfd   :  { %v609_v51 = vpop.f32.mrb[4].mxu0  ;;  %v633_v52 = vpop.f32.mrb[4].mxu1  ;;  %v375_v55 = vsel %vm343_vm0, %v281_v43, %v359_v47  ;;  %v383_v56 = vsel %vm351_vm1, %v313_v44, %v367_v48 }
  0xfe   :  { %vm344_vm2 = vcmp.gt.f32.partialorder %v284_v49, 0.0  ;;  %v360_v53 = vmul.f32 0.2, %v284_v49  ;;  %vm352_vm3 = vcmp.gt.f32.partialorder %v316_v50, 0.0  ;;  %v368_v54 = vmul.f32 0.2, %v316_v50 }
  0xff   :  { %v610_v57 = vpop.f32.mrb[5].mxu0  ;;  %v634_v58 = vpop.f32.mrb[5].mxu1 }
 0x100   :  { %v376_v59 = vsel %vm344_vm2, %v284_v49, %v360_v53  ;;  %v384_v60 = vsel %vm352_vm3, %v316_v50, %v368_v54  ;;  %v611_v61 = vadd.f32 %v610_v57, %v609_v51  ;;  %v635_v62 = vadd.f32 %v634_v58, %v633_v52  ;;  %v612_v63 = vpop.f32.mrb[6].mxu0  ;;  %v636_v0 = vpop.f32.mrb[6].mxu1 }
 0x101   :  { %v543_v1 = vpack.c.bf16 %v376_v59, %v375_v55  ;;  %v563_v2 = vpack.c.bf16 %v384_v60, %v383_v56  ;;  %v613_v3 = vpop.f32.mrb[7].mxu0  ;;  %v637_v4 = vpop.f32.mrb[7].mxu1 }
 0x102   :  { %v289_v5 = vadd.f32 %v611_v61, %v826_v34  ;;  %v321_v6 = vadd.f32 %v635_v62, %v826_v34  ;;  %v614_v7 = vadd.f32 %v613_v3, %v612_v63  ;;  %v638_v8 = vadd.f32 %v637_v4, %v636_v0 }
 0x103   :  { %544 = vst [vmem:[%s871_s3] sm:$0xff] %v543_v1   ;;  %583 = vst [vmem:[%s871_s3 + $0x20] sm:$0xff] %v563_v2  }
 0x104   :  { %v361_v9 = vmul.f32 0.2, %v289_v5  ;;  %v369_v10 = vmul.f32 0.2, %v321_v6  ;;  %v292_v11 = vadd.f32 %v614_v7, %v826_v34  ;;  %v324_v12 = vadd.f32 %v638_v8, %v826_v34 }
 0x105   :  { %v615_v13 = vpop.f32.mrb[8].mxu0  ;;  %v639_v14 = vpop.f32.mrb[8].mxu1  ;;  %vm345_vm4 = vcmp.gt.f32.partialorder %v289_v5, 0.0  ;;  %vm353_vm5 = vcmp.gt.f32.partialorder %v321_v6, 0.0 }
 0x106   :  { %v616_v15 = vpop.f32.mrb[9].mxu0  ;;  %v640_v16 = vpop.f32.mrb[9].mxu1  ;;  %vm346_vm6 = vcmp.gt.f32.partialorder %v292_v11, 0.0  ;;  %v362_v17 = vmul.f32 0.2, %v292_v11  ;;  %vm354_vm7 = vcmp.gt.f32.partialorder %v324_v12, 0.0  ;;  %v377_v23 = vsel %vm345_vm4, %v289_v5, %v361_v9 }
 0x107   :  { %v370_v18 = vmul.f32 0.2, %v324_v12  ;;  %v617_v19 = vadd.f32 %v616_v15, %v615_v13  ;;  %v641_v20 = vadd.f32 %v640_v16, %v639_v14  ;;  %v618_v21 = vpop.f32.mrb[10].mxu0  ;;  %v642_v22 = vpop.f32.mrb[10].mxu1  ;;  %v385_v24 = vsel %vm353_vm5, %v321_v6, %v369_v10 }
 0x108   :  { %v378_v25 = vsel %vm346_vm6, %v292_v11, %v362_v17  ;;  %v619_v27 = vpop.f32.mrb[11].mxu0  ;;  %v643_v28 = vpop.f32.mrb[11].mxu1 }
 0x109   :  { %v386_v26 = vsel %vm354_vm7, %v324_v12, %v370_v18  ;;  %v548_v29 = vpack.c.bf16 %v378_v25, %v377_v23  ;;  %v297_v31 = vadd.f32 %v617_v19, %v826_v34  ;;  %v329_v32 = vadd.f32 %v641_v20, %v826_v34 }
 0x10a   :  { %v568_v30 = vpack.c.bf16 %v386_v26, %v385_v24  ;;  %v620_v33 = vadd.f32 %v619_v27, %v618_v21  ;;  %v644_v35 = vadd.f32 %v643_v28, %v642_v22 }
 0x10b   :  { %580 = vst [vmem:[%s871_s3 + $0x8] sm:$0xff] %v548_v29   ;;  %v363_v36 = vmul.f32 0.2, %v297_v31  ;;  %v371_v37 = vmul.f32 0.2, %v329_v32  ;;  %vm347_vm8 = vcmp.gt.f32.partialorder %v297_v31, 0.0 }
 0x10c   :  { %584 = vst [vmem:[%s871_s3 + $0x28] sm:$0xff] %v568_v30   ;;  %v300_v38 = vadd.f32 %v620_v33, %v826_v34  ;;  %v332_v39 = vadd.f32 %v644_v35, %v826_v34  ;;  %vm355_vm9 = vcmp.gt.f32.partialorder %v329_v32, 0.0 }
 0x10d   :  { %v621_v40 = vpop.f32.mrb[12].mxu0  ;;  %v645_v41 = vpop.f32.mrb[12].mxu1  ;;  %v379_v50 = vsel %vm347_vm8, %v297_v31, %v363_v36  ;;  %v387_v51 = vsel %vm355_vm9, %v329_v32, %v371_v37 }
 0x10e   :  { %v622_v42 = vpop.f32.mrb[13].mxu0  ;;  %v646_v43 = vpop.f32.mrb[13].mxu1  ;;  %vm348_vm10 = vcmp.gt.f32.partialorder %v300_v38, 0.0  ;;  %v364_v44 = vmul.f32 0.2, %v300_v38  ;;  %vm356_vm11 = vcmp.gt.f32.partialorder %v332_v39, 0.0 }
 0x10f   :  { %v372_v45 = vmul.f32 0.2, %v332_v39  ;;  %v623_v46 = vadd.f32 %v622_v42, %v621_v40  ;;  %v647_v47 = vadd.f32 %v646_v43, %v645_v41  ;;  %v624_v48 = vpop.f32.mrb[14].mxu0  ;;  %v648_v49 = vpop.f32.mrb[14].mxu1 }
 0x110   :  { %v380_v52 = vsel %vm348_vm10, %v300_v38, %v364_v44  ;;  %v625_v54 = vpop.f32.mrb[15].mxu0  ;;  %v649_v55 = vpop.f32.mrb[15].mxu1 }
 0x111   :  { %v388_v53 = vsel %vm356_vm11, %v332_v39, %v372_v45  ;;  %v553_v56 = vpack.c.bf16 %v380_v52, %v379_v50  ;;  %v305_v58 = vadd.f32 %v623_v46, %v826_v34  ;;  %v337_v59 = vadd.f32 %v647_v47, %v826_v34 }
 0x112   :  { %v573_v57 = vpack.c.bf16 %v388_v53, %v387_v51  ;;  %v626_v60 = vadd.f32 %v625_v54, %v624_v48  ;;  %v650_v61 = vadd.f32 %v649_v55, %v648_v49 }
 0x113   :  { %581 = vst [vmem:[%s871_s3 + $0x10] sm:$0xff] %v553_v56   ;;  %v365_v62 = vmul.f32 0.2, %v305_v58  ;;  %v373_v63 = vmul.f32 0.2, %v337_v59  ;;  %vm349_vm12 = vcmp.gt.f32.partialorder %v305_v58, 0.0 }
 0x114   :  { %585 = vst [vmem:[%s871_s3 + $0x30] sm:$0xff] %v573_v57   ;;  %v308_v0 = vadd.f32 %v626_v60, %v826_v34  ;;  %v340_v1 = vadd.f32 %v650_v61, %v826_v34  ;;  %vm357_vm13 = vcmp.gt.f32.partialorder %v337_v59, 0.0 }
 0x115   :  { %v381_v4 = vsel %vm349_vm12, %v305_v58, %v365_v62  ;;  %v389_v5 = vsel %vm357_vm13, %v337_v59, %v373_v63 }
 0x116   :  { %vm350_vm14 = vcmp.gt.f32.partialorder %v308_v0, 0.0  ;;  %v366_v2 = vmul.f32 0.2, %v308_v0  ;;  %vm358_vm15 = vcmp.gt.f32.partialorder %v340_v1, 0.0  ;;  %v374_v3 = vmul.f32 0.2, %v340_v1 }
 0x118   :  { %v382_v6 = vsel %vm350_vm14, %v308_v0, %v366_v2  ;;  %v390_v7 = vsel %vm358_vm15, %v340_v1, %v374_v3 }
 0x119   :  { %v558_v8 = vpack.c.bf16 %v382_v6, %v381_v4  ;;  %v578_v9 = vpack.c.bf16 %v390_v7, %v389_v5 }
 0x11b   :  { %582 = vst [vmem:[%s871_s3 + $0x18] sm:$0xff] %v558_v8   ;;  %586 = vst [vmem:[%s871_s3 + $0x38] sm:$0xff] %v578_v9  }

// kernel: vae_forward.8
= control target key start
LH: loop header
LB: loop body
LE: loop exit
PB: predicated region body
PF: predicated region fallthrough
CT: control target
= control target key end

     0   :  { %s769_s1 = inlined_call_operand.vmem [shape: bf16[512,128], index: 1, kind: input, shape index: {}]   ;;  %s770_s0 = inlined_call_operand.vmem [shape: bf16[32,512], index: 0, kind: input, shape index: {}]   ;;  %s771_s2 = inlined_call_operand.vmem [shape: f32[1,128], index: 2, kind: input, shape index: {}]   ;;  %s772_s3 = inlined_call_operand.vmem [shape: bf16[32,128], index: 3, kind: output, shape index: {}]  }
   0x1   :  { %v576_v0 = vld [vmem:[%s769_s1 + $0x40] sm:$0xff]   ;;  %v580_v4 = vld [vmem:[%s769_s1 + $0x48] sm:$0xff]   ;;  %v584_v8 = vld [vmem:[%s769_s1 + $0x50] sm:$0xff]  }
   0x2   :  { %v577_v1 = vld [vmem:[%s769_s1 + $0xc0] sm:$0xff]   ;;  %520 = vmatprep.subr.bf16.mxu0 %v576_v0  ;;  %v581_v5 = vld [vmem:[%s769_s1 + $0xc8] sm:$0xff]   ;;  %v585_v9 = vld [vmem:[%s769_s1 + $0xd0] sm:$0xff]  }
   0x3   :  { %v578_v2 = vld [vmem:[%s769_s1] sm:$0xff]   ;;  %548 = vmatprep.subr.bf16.mxu1 %v577_v1  ;;  %v582_v6 = vld [vmem:[%s769_s1 + $0x8] sm:$0xff]   ;;  %v586_v10 = vld [vmem:[%s769_s1 + $0x10] sm:$0xff]  }
   0x4   :  { %v579_v3 = vld [vmem:[%s769_s1 + $0x80] sm:$0xff]   ;;  %521 = vmatpush3.bf16.msra.mxu0 %v578_v2  ;;  %v583_v7 = vld [vmem:[%s769_s1 + $0x88] sm:$0xff]   ;;  %v587_v11 = vld [vmem:[%s769_s1 + $0x90] sm:$0xff]  }
   0x5   :  { %549 = vmatpush3.bf16.msra.mxu1 %v579_v3  ;;  %522 = vmatprep.subr.bf16.mxu0 %v580_v4  ;;  %v588_v12 = vld [vmem:[%s769_s1 + $0x58] sm:$0xff]   ;;  %v592_v16 = vld [vmem:[%s769_s1 + $0x60] sm:$0xff]   ;;  %v596_v20 = vld [vmem:[%s769_s1 + $0x68] sm:$0xff]  }
   0x6   :  { %550 = vmatprep.subr.bf16.mxu1 %v581_v5  ;;  %v589_v13 = vld [vmem:[%s769_s1 + $0xd8] sm:$0xff]   ;;  %v593_v17 = vld [vmem:[%s769_s1 + $0xe0] sm:$0xff]   ;;  %v597_v21 = vld [vmem:[%s769_s1 + $0xe8] sm:$0xff]  }
   0x7   :  { %v590_v14 = vld [vmem:[%s769_s1 + $0x18] sm:$0xff]   ;;  %v594_v18 = vld [vmem:[%s769_s1 + $0x20] sm:$0xff]   ;;  %v598_v22 = vld [vmem:[%s769_s1 + $0x28] sm:$0xff]  }
   0x8   :  { %523 = vmatpush3.bf16.msra.mxu0 %v582_v6  ;;  %v591_v15 = vld [vmem:[%s769_s1 + $0x98] sm:$0xff]   ;;  %v595_v19 = vld [vmem:[%s769_s1 + $0xa0] sm:$0xff]   ;;  %v599_v23 = vld [vmem:[%s769_s1 + $0xa8] sm:$0xff]  }
   0x9   :  { %551 = vmatpush3.bf16.msra.mxu1 %v583_v7  ;;  %524 = vmatprep.subr.bf16.mxu0 %v584_v8  ;;  %v600_v24 = vld [vmem:[%s769_s1 + $0x70] sm:$0xff]   ;;  %v604_v28 = vld [vmem:[%s769_s1 + $0x78] sm:$0xff]   ;;  %v460_v42 = vld [vmem:[%s771_s2] ss:$0 sm:$0xff] }
   0xa   :  { %552 = vmatprep.subr.bf16.mxu1 %v585_v9  ;;  %v601_v25 = vld [vmem:[%s769_s1 + $0xf0] sm:$0xff]   ;;  %v605_v29 = vld [vmem:[%s769_s1 + $0xf8] sm:$0xff]  }
   0xb   :  { %v602_v26 = vld [vmem:[%s769_s1 + $0x30] sm:$0xff]   ;;  %v606_v30 = vld [vmem:[%s769_s1 + $0x38] sm:$0xff]  }
   0xc   :  { %525 = vmatpush3.bf16.msra.mxu0 %v586_v10  ;;  %v603_v27 = vld [vmem:[%s769_s1 + $0xb0] sm:$0xff]   ;;  %v607_v31 = vld [vmem:[%s769_s1 + $0xb8] sm:$0xff]  }
   0xd   :  { %553 = vmatpush3.bf16.msra.mxu1 %v587_v11  ;;  %526 = vmatprep.subr.bf16.mxu0 %v588_v12  ;;  %v608_v32 = vld [vmem:[%s770_s0] ss:$16 sps:$4 sm:$0xff]   ;;  %v610_v33 = vld [vmem:[%s770_s0 + $0x4] ss:$16 sps:$4 sm:$0xff]   ;;  %v611_v34 = vld [vmem:[%s770_s0 + $0x8] ss:$16 sps:$4 sm:$0xff]  }
   0xe   :  { %554 = vmatprep.subr.bf16.mxu1 %v589_v13  ;;  %v613_v35 = vld [vmem:[%s770_s0 + $0xc] ss:$16 sps:$4 sm:$0xff]   ;;  %358 = vmatprep.mubr.bf16.mxu0 %v610_v33  ;;  %v614_v36 = vld [vmem:[%s770_s0 + $0x24] ss:$16 sps:$4 sm:$0xff]   ;;  %v618_v38 = vld [vmem:[%s770_s0 + $0x20] ss:$16 sps:$4 sm:$0xff]  }
   0xf   :  { %407 = vmatprep.mubr.bf16.mxu1 %v613_v35  ;;  %v616_v37 = vld [vmem:[%s770_s0 + $0x2c] ss:$16 sps:$4 sm:$0xff]   ;;  %v619_v39 = vld [vmem:[%s770_s0 + $0x28] ss:$16 sps:$4 sm:$0xff]  }
  0x10   :  { %527 = vmatpush3.bf16.msra.mxu0 %v590_v14 }
  0x11   :  { %555 = vmatpush3.bf16.msra.mxu1 %v591_v15  ;;  %528 = vmatprep.subr.bf16.mxu0 %v592_v16 }
  0x12   :  { %556 = vmatprep.subr.bf16.mxu1 %v593_v17 }
  0x14   :  { %529 = vmatpush3.bf16.msra.mxu0 %v594_v18 }
  0x15   :  { %557 = vmatpush3.bf16.msra.mxu1 %v595_v19  ;;  %530 = vmatprep.subr.bf16.mxu0 %v596_v20 }
  0x16   :  { %558 = vmatprep.subr.bf16.mxu1 %v597_v21 }
  0x18   :  { %531 = vmatpush3.bf16.msra.mxu0 %v598_v22 }
  0x19   :  { %559 = vmatpush3.bf16.msra.mxu1 %v599_v23  ;;  %532 = vmatprep.subr.bf16.mxu0 %v600_v24 }
  0x1a   :  { %560 = vmatprep.subr.bf16.mxu1 %v601_v25 }
  0x1c   :  { %533 = vmatpush3.bf16.msra.mxu0 %v602_v26 }
  0x1d   :  { %561 = vmatpush3.bf16.msra.mxu1 %v603_v27  ;;  %534 = vmatprep.subr.bf16.mxu0 %v604_v28 }
  0x1e   :  { %562 = vmatprep.subr.bf16.mxu1 %v605_v29 }
  0x20   :  { %535 = vmatpush3.bf16.msra.mxu0 %v606_v30 }
  0x21   :  { %563 = vmatpush3.bf16.msra.mxu1 %v607_v31 }
  0x23   :  { %359 = vmatmul.mubr.bf16.vlgmr.msra.gmra.mrb[0].mxu0 %v608_v32 }
  0x24   :  { %408 = vmatmul.mubr.bf16.vlgmr.msra.gmra.mrb[0].mxu1 %v611_v34  ;;  %366 = vmatprep.mubr.bf16.mxu0 %v614_v36 }
  0x25   :  { %415 = vmatprep.mubr.bf16.mxu1 %v616_v37 }
  0x2b   :  { %367 = vmatmul.mubr.bf16.gmra.mrb[4].mxu0 %v618_v38 }
  0x2c   :  { %416 = vmatmul.mubr.bf16.gmra.mrb[4].mxu1 %v619_v39 }
  0xf6   :  { %v536_v40 = vpop.f32.mrb[0].mxu0 }
  0xf7   :  { %v564_v41 = vpop.f32.mrb[0].mxu1  ;;  %v537_v43 = vpop.f32.mrb[1].mxu0 }
  0xf8   :  { %v538_v44 = vadd.f32 %v537_v43, %v536_v40  ;;  %v565_v45 = vpop.f32.mrb[1].mxu1  ;;  %v539_v46 = vpop.f32.mrb[2].mxu0 }
  0xf9   :  { %v566_v47 = vadd.f32 %v565_v45, %v564_v41  ;;  %v567_v48 = vpop.f32.mrb[2].mxu1  ;;  %v540_v49 = vpop.f32.mrb[3].mxu0 }
  0xfa   :  { %v361_v50 = vadd.f32 %v538_v44, %v460_v42  ;;  %v541_v51 = vadd.f32 %v540_v49, %v539_v46  ;;  %v568_v52 = vpop.f32.mrb[3].mxu1 }
  0xfb   :  { %v569_v53 = vadd.f32 %v568_v52, %v567_v48 }
  0xfc   :  { %v410_v54 = vadd.f32 %v566_v47, %v361_v50  ;;  %v364_v55 = vadd.f32 %v541_v51, %v460_v42 }
  0xfe   :  { %v428_v56 = vmul.f32 0.2, %v410_v54  ;;  %v413_v57 = vadd.f32 %v569_v53, %v364_v55  ;;  %v542_v58 = vpop.f32.mrb[4].mxu0  ;;  %vm424_vm0 = vcmp.gt.f32.partialorder %v410_v54, 0.0 }
  0xff   :  { %v570_v59 = vpop.f32.mrb[4].mxu1  ;;  %v543_v60 = vpop.f32.mrb[5].mxu0 }
 0x100   :  { %vm425_vm1 = vcmp.gt.f32.partialorder %v413_v57, 0.0  ;;  %v429_v61 = vmul.f32 0.2, %v413_v57  ;;  %v544_v62 = vadd.f32 %v543_v60, %v542_v58  ;;  %v571_v63 = vpop.f32.mrb[5].mxu1  ;;  %v545_v0 = vpop.f32.mrb[6].mxu0  ;;  %v432_v4 = vsel %vm424_vm0, %v410_v54, %v428_v56 }
 0x101   :  { %v572_v1 = vadd.f32 %v571_v63, %v570_v59  ;;  %v573_v2 = vpop.f32.mrb[6].mxu1  ;;  %v546_v3 = vpop.f32.mrb[7].mxu0 }
 0x102   :  { %v433_v5 = vsel %vm425_vm1, %v413_v57, %v429_v61  ;;  %v369_v6 = vadd.f32 %v544_v62, %v460_v42  ;;  %v547_v7 = vadd.f32 %v546_v3, %v545_v0  ;;  %v574_v8 = vpop.f32.mrb[7].mxu1 }
 0x103   :  { %v512_v9 = vpack.c.bf16 %v433_v5, %v432_v4  ;;  %v575_v10 = vadd.f32 %v574_v8, %v573_v2 }
 0x104   :  { %v418_v11 = vadd.f32 %v572_v1, %v369_v6  ;;  %v372_v12 = vadd.f32 %v547_v7, %v460_v42 }
 0x105   :  { %513 = vst [vmem:[%s772_s3] sm:$0xff] %v512_v9  }
 0x106   :  { %v430_v13 = vmul.f32 0.2, %v418_v11  ;;  %v421_v14 = vadd.f32 %v575_v10, %v372_v12  ;;  %vm426_vm2 = vcmp.gt.f32.partialorder %v418_v11, 0.0 }
 0x108   :  { %vm427_vm3 = vcmp.gt.f32.partialorder %v421_v14, 0.0  ;;  %v431_v15 = vmul.f32 0.2, %v421_v14  ;;  %v434_v16 = vsel %vm426_vm2, %v418_v11, %v430_v13 }
 0x10a   :  { %v435_v17 = vsel %vm427_vm3, %v421_v14, %v431_v15 }
 0x10b   :  { %v517_v18 = vpack.c.bf16 %v435_v17, %v434_v16 }
 0x10d   :  { %519 = vst [vmem:[%s772_s3 + $0x8] sm:$0xff] %v517_v18  }

// kernel: vae_forward.9
= control target key start
LH: loop header
LB: loop body
LE: loop exit
PB: predicated region body
PF: predicated region fallthrough
CT: control target
= control target key end

     0   :  { %s1222_s1 = inlined_call_operand.vmem [shape: bf16[1024,128], index: 1, kind: input, shape index: {}]   ;;  %s1223_s0 = inlined_call_operand.vmem [shape: bf16[16,1024], index: 0, kind: input, shape index: {}]   ;;  %s1224_s2 = inlined_call_operand.vmem [shape: f32[1,128], index: 2, kind: input, shape index: {}]   ;;  %s1225_s3 = inlined_call_operand.vmem [shape: f32[16,128], index: 3, kind: output, shape index: {}]  }
   0x1   :  { %v913_v0 = vld [vmem:[%s1222_s1 + $0x40] sm:$0xff]   ;;  %v917_v4 = vld [vmem:[%s1222_s1 + $0x48] sm:$0xff]   ;;  %v921_v8 = vld [vmem:[%s1222_s1 + $0x50] sm:$0xff]  }
   0x2   :  { %v914_v1 = vld [vmem:[%s1222_s1 + $0xc0] sm:$0xff]   ;;  %825 = vmatprep.subr.bf16.mxu0 %v913_v0  ;;  %v918_v5 = vld [vmem:[%s1222_s1 + $0xc8] sm:$0xff]   ;;  %v922_v9 = vld [vmem:[%s1222_s1 + $0xd0] sm:$0xff]  }
   0x3   :  { %v915_v2 = vld [vmem:[%s1222_s1] sm:$0xff]   ;;  %847 = vmatprep.subr.bf16.mxu1 %v914_v1  ;;  %v919_v6 = vld [vmem:[%s1222_s1 + $0x8] sm:$0xff]   ;;  %v923_v10 = vld [vmem:[%s1222_s1 + $0x10] sm:$0xff]  }
   0x4   :  { %v916_v3 = vld [vmem:[%s1222_s1 + $0x80] sm:$0xff]   ;;  %826 = vmatpush3.bf16.msra.mxu0 %v915_v2  ;;  %v920_v7 = vld [vmem:[%s1222_s1 + $0x88] sm:$0xff]   ;;  %v924_v11 = vld [vmem:[%s1222_s1 + $0x90] sm:$0xff]  }
   0x5   :  { %848 = vmatpush3.bf16.msra.mxu1 %v916_v3  ;;  %827 = vmatprep.subr.bf16.mxu0 %v917_v4  ;;  %v925_v12 = vld [vmem:[%s1222_s1 + $0x58] sm:$0xff]   ;;  %v929_v16 = vld [vmem:[%s1222_s1 + $0x60] sm:$0xff]   ;;  %v933_v20 = vld [vmem:[%s1222_s1 + $0x68] sm:$0xff]  }
   0x6   :  { %849 = vmatprep.subr.bf16.mxu1 %v918_v5  ;;  %v926_v13 = vld [vmem:[%s1222_s1 + $0xd8] sm:$0xff]   ;;  %v930_v17 = vld [vmem:[%s1222_s1 + $0xe0] sm:$0xff]   ;;  %v934_v21 = vld [vmem:[%s1222_s1 + $0xe8] sm:$0xff]  }
   0x7   :  { %v927_v14 = vld [vmem:[%s1222_s1 + $0x18] sm:$0xff]   ;;  %v931_v18 = vld [vmem:[%s1222_s1 + $0x20] sm:$0xff]   ;;  %v935_v22 = vld [vmem:[%s1222_s1 + $0x28] sm:$0xff]  }
   0x8   :  { %828 = vmatpush3.bf16.msra.mxu0 %v919_v6  ;;  %v928_v15 = vld [vmem:[%s1222_s1 + $0x98] sm:$0xff]   ;;  %v932_v19 = vld [vmem:[%s1222_s1 + $0xa0] sm:$0xff]   ;;  %v936_v23 = vld [vmem:[%s1222_s1 + $0xa8] sm:$0xff]  }
   0x9   :  { %850 = vmatpush3.bf16.msra.mxu1 %v920_v7  ;;  %829 = vmatprep.subr.bf16.mxu0 %v921_v8  ;;  %v937_v24 = vld [vmem:[%s1222_s1 + $0x70] sm:$0xff]   ;;  %v941_v28 = vld [vmem:[%s1222_s1 + $0x78] sm:$0xff]   ;;  %v15_v32 = vld [vmem:[%s1223_s0] sm:$0xff] }
   0xa   :  { %851 = vmatprep.subr.bf16.mxu1 %v922_v9  ;;  %v938_v25 = vld [vmem:[%s1222_s1 + $0xf0] sm:$0xff]   ;;  %v942_v29 = vld [vmem:[%s1222_s1 + $0xf8] sm:$0xff]   ;;  %v19_v33 = vld [vmem:[%s1223_s0 + $0x20] sm:$0xff] }
   0xb   :  { %v939_v26 = vld [vmem:[%s1222_s1 + $0x30] sm:$0xff]   ;;  %v943_v30 = vld [vmem:[%s1222_s1 + $0x38] sm:$0xff]   ;;  %v16_v34 = vld [vmem:[%s1223_s0 + $0x8] sm:$0xff]  ;;  %v753_v35 = vcombine.low %v15_v32, %v19_v33  ;;  %v754_v36 = vcombine.high %v15_v32, %v19_v33 }
   0xc   :  { %830 = vmatpush3.bf16.msra.mxu0 %v923_v10  ;;  %v940_v27 = vld [vmem:[%s1222_s1 + $0xb0] sm:$0xff]   ;;  %v944_v31 = vld [vmem:[%s1222_s1 + $0xb8] sm:$0xff]   ;;  %v20_v37 = vld [vmem:[%s1223_s0 + $0x28] sm:$0xff] }
   0xd   :  { %852 = vmatpush3.bf16.msra.mxu1 %v924_v11  ;;  %831 = vmatprep.subr.bf16.mxu0 %v925_v12  ;;  %v755_v38 = vcombine.low %v16_v34, %v20_v37  ;;  %v756_v39 = vcombine.high %v16_v34, %v20_v37  ;;  %v945_v40 = vld [vmem:[%s1222_s1 + $0x140] sm:$0xff]   ;;  %v949_v44 = vld [vmem:[%s1222_s1 + $0x148] sm:$0xff]   ;;  %v953_v48 = vld [vmem:[%s1222_s1 + $0x150] sm:$0xff]  }
   0xe   :  { %853 = vmatprep.subr.bf16.mxu1 %v926_v13  ;;  %614 = vmatprep.mubr.bf16.mxu0 %v754_v36  ;;  %v946_v41 = vld [vmem:[%s1222_s1 + $0x1c0] sm:$0xff]   ;;  %v950_v45 = vld [vmem:[%s1222_s1 + $0x1c8] sm:$0xff]   ;;  %v954_v49 = vld [vmem:[%s1222_s1 + $0x1d0] sm:$0xff]  }
   0xf   :  { %655 = vmatprep.mubr.bf16.mxu1 %v756_v39  ;;  %v947_v42 = vld [vmem:[%s1222_s1 + $0x100] sm:$0xff]   ;;  %v951_v46 = vld [vmem:[%s1222_s1 + $0x108] sm:$0xff]   ;;  %v955_v50 = vld [vmem:[%s1222_s1 + $0x110] sm:$0xff]  }
  0x10   :  { %832 = vmatpush3.bf16.msra.mxu0 %v927_v14  ;;  %v948_v43 = vld [vmem:[%s1222_s1 + $0x180] sm:$0xff]   ;;  %v952_v47 = vld [vmem:[%s1222_s1 + $0x188] sm:$0xff]   ;;  %v956_v51 = vld [vmem:[%s1222_s1 + $0x190] sm:$0xff]  }
  0x11   :  { %854 = vmatpush3.bf16.msra.mxu1 %v928_v15  ;;  %833 = vmatprep.subr.bf16.mxu0 %v929_v16  ;;  %v957_v52 = vld [vmem:[%s1222_s1 + $0x158] sm:$0xff]   ;;  %v961_v56 = vld [vmem:[%s1222_s1 + $0x160] sm:$0xff]   ;;  %v965_v60 = vld [vmem:[%s1222_s1 + $0x168] sm:$0xff]  }
  0x12   :  { %855 = vmatprep.subr.bf16.mxu1 %v930_v17  ;;  %v958_v53 = vld [vmem:[%s1222_s1 + $0x1d8] sm:$0xff]   ;;  %v962_v57 = vld [vmem:[%s1222_s1 + $0x1e0] sm:$0xff]   ;;  %v966_v61 = vld [vmem:[%s1222_s1 + $0x1e8] sm:$0xff]  }
  0x13   :  { %v959_v54 = vld [vmem:[%s1222_s1 + $0x118] sm:$0xff]   ;;  %v963_v58 = vld [vmem:[%s1222_s1 + $0x120] sm:$0xff]   ;;  %v967_v62 = vld [vmem:[%s1222_s1 + $0x128] sm:$0xff]  }
  0x14   :  { %834 = vmatpush3.bf16.msra.mxu0 %v931_v18  ;;  %v960_v55 = vld [vmem:[%s1222_s1 + $0x198] sm:$0xff]   ;;  %v964_v59 = vld [vmem:[%s1222_s1 + $0x1a0] sm:$0xff]   ;;  %v968_v63 = vld [vmem:[%s1222_s1 + $0x1a8] sm:$0xff]  }
  0x15   :  { %856 = vmatpush3.bf16.msra.mxu1 %v932_v19  ;;  %835 = vmatprep.subr.bf16.mxu0 %v933_v20  ;;  %v969_v0 = vld [vmem:[%s1222_s1 + $0x170] sm:$0xff]   ;;  %v973_v4 = vld [vmem:[%s1222_s1 + $0x178] sm:$0xff]   ;;  %v752_v18 = vld [vmem:[%s1224_s2] ss:$0 sm:$0xff] }
  0x16   :  { %857 = vmatprep.subr.bf16.mxu1 %v934_v21  ;;  %v970_v1 = vld [vmem:[%s1222_s1 + $0x1f0] sm:$0xff]   ;;  %v974_v5 = vld [vmem:[%s1222_s1 + $0x1f8] sm:$0xff]  }
  0x17   :  { %v971_v2 = vld [vmem:[%s1222_s1 + $0x130] sm:$0xff]   ;;  %v975_v6 = vld [vmem:[%s1222_s1 + $0x138] sm:$0xff]  }
  0x18   :  { %836 = vmatpush3.bf16.msra.mxu0 %v935_v22  ;;  %v972_v3 = vld [vmem:[%s1222_s1 + $0x1b0] sm:$0xff]   ;;  %v976_v7 = vld [vmem:[%s1222_s1 + $0x1b8] sm:$0xff]  }
  0x19   :  { %858 = vmatpush3.bf16.msra.mxu1 %v936_v23  ;;  %837 = vmatprep.subr.bf16.mxu0 %v937_v24  ;;  %v17_v8 = vld [vmem:[%s1223_s0 + $0x10] sm:$0xff]  ;;  %v18_v12 = vld [vmem:[%s1223_s0 + $0x18] sm:$0xff] }
  0x1a   :  { %859 = vmatprep.subr.bf16.mxu1 %v938_v25  ;;  %v21_v9 = vld [vmem:[%s1223_s0 + $0x30] sm:$0xff]  ;;  %v22_v13 = vld [vmem:[%s1223_s0 + $0x38] sm:$0xff] }
  0x1b   :  { %v757_v10 = vcombine.low %v17_v8, %v21_v9  ;;  %v758_v11 = vcombine.high %v17_v8, %v21_v9  ;;  %v759_v14 = vcombine.low %v18_v12, %v22_v13  ;;  %v760_v15 = vcombine.high %v18_v12, %v22_v13 }
  0x1c   :  { %838 = vmatpush3.bf16.msra.mxu0 %v939_v26 }
  0x1d   :  { %860 = vmatpush3.bf16.msra.mxu1 %v940_v27  ;;  %839 = vmatprep.subr.bf16.mxu0 %v941_v28 }
  0x1e   :  { %861 = vmatprep.subr.bf16.mxu1 %v942_v29 }
  0x20   :  { %840 = vmatpush3.bf16.msra.mxu0 %v943_v30 }
  0x21   :  { %862 = vmatpush3.bf16.msra.mxu1 %v944_v31  ;;  %869 = vmatprep.subr.bf16.mxu0 %v945_v40 }
  0x22   :  { %891 = vmatprep.subr.bf16.mxu1 %v946_v41 }
  0x23   :  { %615 = vmatmul.mubr.bf16.vlgmr.msra.gmra.mrb[0].mxu0 %v753_v35 }
  0x24   :  { %656 = vmatmul.mubr.bf16.vlgmr.msra.gmra.mrb[0].mxu1 %v755_v38  ;;  %870 = vmatpush3.bf16.msra.mxu0 %v947_v42 }
  0x25   :  { %892 = vmatpush3.bf16.msra.mxu1 %v948_v43  ;;  %871 = vmatprep.subr.bf16.mxu0 %v949_v44 }
  0x26   :  { %893 = vmatprep.subr.bf16.mxu1 %v950_v45  ;;  %696 = vmatprep.mubr.bf16.mxu0 %v758_v11 }
  0x27   :  { %737 = vmatprep.mubr.bf16.mxu1 %v760_v15 }
  0x28   :  { %872 = vmatpush3.bf16.msra.mxu0 %v951_v46 }
  0x29   :  { %894 = vmatpush3.bf16.msra.mxu1 %v952_v47  ;;  %873 = vmatprep.subr.bf16.mxu0 %v953_v48 }
  0x2a   :  { %895 = vmatprep.subr.bf16.mxu1 %v954_v49 }
  0x2c   :  { %874 = vmatpush3.bf16.msra.mxu0 %v955_v50 }
  0x2d   :  { %896 = vmatpush3.bf16.msra.mxu1 %v956_v51  ;;  %875 = vmatprep.subr.bf16.mxu0 %v957_v52 }
  0x2e   :  { %897 = vmatprep.subr.bf16.mxu1 %v958_v53 }
  0x30   :  { %876 = vmatpush3.bf16.msra.mxu0 %v959_v54 }
  0x31   :  { %898 = vmatpush3.bf16.msra.mxu1 %v960_v55  ;;  %877 = vmatprep.subr.bf16.mxu0 %v961_v56 }
  0x32   :  { %899 = vmatprep.subr.bf16.mxu1 %v962_v57 }
  0x34   :  { %878 = vmatpush3.bf16.msra.mxu0 %v963_v58 }
  0x35   :  { %900 = vmatpush3.bf16.msra.mxu1 %v964_v59  ;;  %879 = vmatprep.subr.bf16.mxu0 %v965_v60 }
  0x36   :  { %901 = vmatprep.subr.bf16.mxu1 %v966_v61 }
  0x38   :  { %880 = vmatpush3.bf16.msra.mxu0 %v967_v62 }
  0x39   :  { %902 = vmatpush3.bf16.msra.mxu1 %v968_v63  ;;  %881 = vmatprep.subr.bf16.mxu0 %v969_v0 }
  0x3a   :  { %903 = vmatprep.subr.bf16.mxu1 %v970_v1 }
  0x3c   :  { %882 = vmatpush3.bf16.msra.mxu0 %v971_v2 }
  0x3d   :  { %904 = vmatpush3.bf16.msra.mxu1 %v972_v3  ;;  %883 = vmatprep.subr.bf16.mxu0 %v973_v4 }
  0x3e   :  { %905 = vmatprep.subr.bf16.mxu1 %v974_v5 }
  0x40   :  { %884 = vmatpush3.bf16.msra.mxu0 %v975_v6 }
  0x41   :  { %906 = vmatpush3.bf16.msra.mxu1 %v976_v7 }
  0x43   :  { %697 = vmatmul.mubr.bf16.vlgmr.msra.gmra.mrb[4].mxu0 %v757_v10 }
  0x44   :  { %738 = vmatmul.mubr.bf16.vlgmr.msra.gmra.mrb[4].mxu1 %v759_v14 }
  0xf6   :  { %v841_v16 = vpop.f32.mrb[0].mxu0 }
  0xf7   :  { %v863_v17 = vpop.f32.mrb[0].mxu1  ;;  %v842_v19 = vpop.f32.mrb[1].mxu0 }
  0xf8   :  { %v843_v20 = vadd.f32 %v842_v19, %v841_v16  ;;  %v864_v21 = vpop.f32.mrb[1].mxu1  ;;  %v844_v22 = vpop.f32.mrb[2].mxu0 }
  0xf9   :  { %v865_v23 = vadd.f32 %v864_v21, %v863_v17  ;;  %v866_v24 = vpop.f32.mrb[2].mxu1  ;;  %v845_v25 = vpop.f32.mrb[3].mxu0 }
  0xfa   :  { %v617_v26 = vadd.f32 %v843_v20, %v752_v18  ;;  %v846_v27 = vadd.f32 %v845_v25, %v844_v22  ;;  %v867_v28 = vpop.f32.mrb[3].mxu1 }
  0xfb   :  { %v868_v29 = vadd.f32 %v867_v28, %v866_v24 }
  0xfc   :  { %v658_v30 = vadd.f32 %v865_v23, %v617_v26  ;;  %v620_v31 = vadd.f32 %v846_v27, %v752_v18 }
  0xfe   :  { %v661_v32 = vadd.f32 %v868_v29, %v620_v31 }
 0x116   :  { %v885_v33 = vpop.f32.mrb[4].mxu0 }
 0x117   :  { %v907_v34 = vpop.f32.mrb[4].mxu1  ;;  %v886_v35 = vpop.f32.mrb[5].mxu0 }
 0x118   :  { %v887_v36 = vadd.f32 %v886_v35, %v885_v33  ;;  %v908_v37 = vpop.f32.mrb[5].mxu1  ;;  %v888_v38 = vpop.f32.mrb[6].mxu0 }
 0x119   :  { %v909_v39 = vadd.f32 %v908_v37, %v907_v34  ;;  %v910_v40 = vpop.f32.mrb[6].mxu1  ;;  %v889_v41 = vpop.f32.mrb[7].mxu0 }
 0x11a   :  { %v699_v42 = vadd.f32 %v887_v36, %v658_v30  ;;  %v890_v43 = vadd.f32 %v889_v41, %v888_v38  ;;  %v911_v44 = vpop.f32.mrb[7].mxu1 }
 0x11b   :  { %v912_v45 = vadd.f32 %v911_v44, %v910_v40 }
 0x11c   :  { %v740_v46 = vadd.f32 %v909_v39, %v699_v42  ;;  %v702_v47 = vadd.f32 %v890_v43, %v661_v32 }
 0x11e   :  { %746 = vst [vmem:[%s1225_s3] sm:$0xff] %v740_v46  ;;  %v743_v48 = vadd.f32 %v912_v45, %v702_v47 }
 0x120   :  { %747 = vst [vmem:[%s1225_s3 + $0x8] sm:$0xff] %v743_v48 }

</bundles_post_ra>
